<compile_context>
chip_gen: v5e
topology: v5e:2x2
jax: 0.10.0
libtpu: 0.0.40
codegen_flags: <defaults>
</compile_context>

<pallas_src>
import math
from functools import partial

import jax
import jax.numpy as jnp
from jax import lax
from jax.experimental import pallas as pl
from jax.experimental.pallas import tpu as pltpu


def _cdiv(a, b):
    return -(-a // b)


def _pe_sep_kernel(sin_a_ref, cos_a_ref, gy_ref, out_ref, *, h, tile_h, num_pos_feats):
    """One grid step writes a (2C, tile_h, w) row-block of the positional encoding.

    sin_a_ref / cos_a_ref: (C, 1, w)  sin/cos of the column angles (resident).
    gy_ref:                (C, 1)     2*pi * G[1, :] (row-frequency column vector).
    out_ref:               (2C, tile_h, w)  sin half = channels [0, C), cos half = [C, 2C).
    """
    C = num_pos_feats
    row0 = pl.program_id(0) * tile_h

    # Row indices of this block — exact integer iota (no float div / floor).
    # Ragged tail rows of the last block are computed but dropped on writeback.
    ii = lax.broadcasted_iota(jnp.int32, (C, tile_h), 1) + row0
    cy = (ii.astype(jnp.float32) + 0.5) * jnp.float32(2.0 / h) - 1.0     # (C, tile_h)
    b = gy_ref[...] * cy                      # (C, tile_h); 2*pi already folded into gy

    # Row-factor transcendentals at a dense 2-D shape: only C*tile_h elements.
    sin_b = jnp.sin(b)[:, :, None]            # (C, tile_h, 1)
    cos_b = jnp.cos(b)[:, :, None]

    sin_a = sin_a_ref[...]                    # (C, 1, w)
    cos_a = cos_a_ref[...]

    # Angle addition: ~3 VALU ops per output element, zero transcendentals.
    out_ref[:C, :, :] = sin_a * cos_b + cos_a * sin_b      # sin(A + B)
    out_ref[C:, :, :] = cos_a * cos_b - sin_a * sin_b      # cos(A + B)


def _generation_tiling_params():
    """(max_block_bytes, vmem_limit_bytes_or_None, prefer_even_steps) per TPU gen."""
    kind = ""
    try:
        kind = (getattr(jax.devices()[0], "device_kind", "") or "").lower()
    except Exception:
        kind = ""
    if "v5" in kind or "v6" in kind:
        # Single TensorCore, 128 MiB physical VMEM: larger blocks, raise scoped limit
        # explicitly (v5e scoped default is only 16 MiB).
        return 8 << 20, 80 << 20, False
    if "v7" in kind or "7x" in kind:
        # 64 MiB VMEM, 2 TCs split the "parallel" grid axis: smaller blocks, even steps.
        return 4 << 20, 32 << 20, True
    # Unknown hardware: conservative block size, compiler-default VMEM limit.
    return 2 << 20, None, True


def _choose_tile_h(h, w, c_out, *, max_block_bytes, prefer_even_steps):
    """Pick the row-block height: multiple of 8 (or == h), output block under the cap."""
    row_bytes = c_out * w * 4
    max_rows = max(8, (max_block_bytes // max(row_bytes, 1)) // 8 * 8)

    if h <= 8:
        return h                                    # full-extent minor-2 dim: always legal
    if h <= max_rows:
        if prefer_even_steps and h >= 16:
            # Split into exactly two blocks so both v7x TensorCores get equal work.
            half = _cdiv(h, 2)
            return min(h, _cdiv(half, 8) * 8)
        return h                                    # single block (fewest grid steps)

    tile = min((h // 8) * 8, max_rows)
    if prefer_even_steps:
        t = tile
        while t >= 8:
            if _cdiv(h, t) % 2 == 0:
                return t
            t -= 8
    return tile


def position_embedding_random_forward(gaussian_matrix: jax.Array, size):
    """JAX/Pallas equivalent of PositionEmbeddingRandom.forward(size).

    Args:
      gaussian_matrix: (2, num_pos_feats) float32 buffer.
      size: (h, w) static ints.

    Returns:
      (2*num_pos_feats, h, w) float32 array (CHW, matching the PyTorch output).
    """
    h, w = int(size[0]), int(size[1])
    num_pos_feats = gaussian_matrix.shape[1]
    c_out = 2 * num_pos_feats

    g = gaussian_matrix.astype(jnp.float32)
    two_pi = jnp.float32(2.0 * math.pi)

    # Column (x) angles and their sin/cos, computed ONCE: 2*C*w transcendentals total.
    cx = (jnp.arange(w, dtype=jnp.float32) + 0.5) * jnp.float32(2.0 / w) - 1.0   # (w,)
    a = two_pi * g[0][:, None] * cx[None, :]                                     # (C, w)
    sin_a = jnp.sin(a)[:, None, :]                                               # (C, 1, w)
    cos_a = jnp.cos(a)[:, None, :]                                               # (C, 1, w)
    # Row-frequency column vector with 2*pi folded in: used in-kernel for sinB/cosB.
    gy = (two_pi * g[1])[:, None]                                                # (C, 1)

    max_block_bytes, vmem_limit, prefer_even = _generation_tiling_params()
    tile_h = _choose_tile_h(h, w, c_out,
                            max_block_bytes=max_block_bytes,
                            prefer_even_steps=prefer_even)
    n_steps = pl.cdiv(h, tile_h)   # ragged last block handled by Pallas masking

    kernel = partial(_pe_sep_kernel, h=h, tile_h=tile_h, num_pos_feats=num_pos_feats)

    cost = pl.CostEstimate(
        flops=6 * num_pos_feats * h * w,            # 4 mul + 2 add per (sin, cos) pair
        transcendentals=2 * num_pos_feats * h,      # in-kernel row factors only
        bytes_accessed=(c_out * h * w + 2 * num_pos_feats * w + num_pos_feats) * 4,
    )

    out = pl.pallas_call(
        kernel,
        out_shape=jax.ShapeDtypeStruct((c_out, h, w), jnp.float32),
        grid_spec=pl.GridSpec(
            grid=(n_steps,),
            in_specs=[
                # Tiny constants: full-array blocks, resident across all grid steps.
                pl.BlockSpec((num_pos_feats, 1, w), lambda i: (0, 0, 0)),
                pl.BlockSpec((num_pos_feats, 1, w), lambda i: (0, 0, 0)),
                pl.BlockSpec((num_pos_feats, 1), lambda i: (0, 0)),
            ],
            out_specs=pl.BlockSpec((c_out, tile_h, w), lambda i: (0, i, 0)),
        ),
        compiler_params=pltpu.CompilerParams(
            dimension_semantics=("parallel",),
            vmem_limit_bytes=vmem_limit,
        ),
        cost_estimate=cost,
    )(sin_a, cos_a, gy)
    return out


def _reference_forward(gaussian_matrix, size):
    """Pure-JAX reference mirroring the PyTorch module exactly."""
    h, w = size
    grid = jnp.ones((h, w), dtype=jnp.float32)
    y_embed = (jnp.cumsum(grid, axis=0) - 0.5) / h
    x_embed = (jnp.cumsum(grid, axis=1) - 0.5) / w
    coords = jnp.stack([x_embed, y_embed], axis=-1)   # (h, w, 2)
    coords = 2.0 * coords - 1.0
    coords = coords @ gaussian_matrix                 # (h, w, C)
    coords = 2.0 * math.pi * coords
    pe = jnp.concatenate([jnp.sin(coords), jnp.cos(coords)], axis=-1)
    return jnp.transpose(pe, (2, 0, 1))


if __name__ == "__main__":
    num_pos_feats = 64
    scale = 1.0  # scale=None / <=0 -> 1.0 in the PyTorch module

    key = jax.random.PRNGKey(0)
    # Deterministic stand-in for the registered buffer scale * randn((2, C)).
    gaussian_matrix = scale * jax.random.normal(
        key, (2, num_pos_feats), dtype=jnp.float32
    )

    # Main (SAM-like, small) case.
    size = (16, 16)
    out = jax.block_until_ready(position_embedding_random_forward(gaussian_matrix, size))
    assert out.shape == (2 * num_pos_feats, size[0], size[1]), out.shape
    assert out.dtype == jnp.float32
    ref = jax.block_until_ready(_reference_forward(gaussian_matrix, size))
    assert jnp.allclose(out, ref, atol=1e-4, rtol=1e-4), "mismatch vs reference (16x16)"

    # Ragged / non-128-divisible size: exercises the cdiv grid + masked tail block.
    size2 = (20, 24)
    out2 = jax.block_until_ready(position_embedding_random_forward(gaussian_matrix, size2))
    ref2 = jax.block_until_ready(_reference_forward(gaussian_matrix, size2))
    assert out2.shape == (2 * num_pos_feats, size2[0], size2[1]), out2.shape
    assert jnp.allclose(out2, ref2, atol=1e-4, rtol=1e-4), "mismatch vs reference (20x24)"

    print("KERNEL_OK")
</pallas_src>

<mosaic_0001>
module attributes {stable_mosaic.version = 11 : i64} {
  func.func @_pe_sep_kernel(%arg0: i32, %arg1: memref<64x1x16xf32, #tpu.memory_space<vmem>>, %arg2: memref<64x1x16xf32, #tpu.memory_space<vmem>>, %arg3: memref<64x1xf32, #tpu.memory_space<vmem>>, %arg4: memref<128x8x16xf32, #tpu.memory_space<vmem>>) attributes {dimension_semantics = [#tpu.dimension_semantics<parallel>], iteration_bounds = array<i64: 2>, scalar_prefetch = 0 : i64, scratch_operands = 0 : i64, tpu.core_type = #tpu.core_type<tc>, window_params = [{pipeline_mode = #tpu.pipeline_mode<synchronous>, transform_indices = @transform_0, window_bounds = array<i64: 64, 1, 16>}, {pipeline_mode = #tpu.pipeline_mode<synchronous>, transform_indices = @transform_1, window_bounds = array<i64: 64, 1, 16>}, {pipeline_mode = #tpu.pipeline_mode<synchronous>, transform_indices = @transform_2, window_bounds = array<i64: 64, 1>}, {transform_indices = @transform_3, window_bounds = array<i64: 128, 8, 16>}]} {
    %c8_i32 = arith.constant 8 : i32
    %0 = arith.muli %arg0, %c8_i32 : i32
    %1 = tpu.iota {dimensions = array<i32: 1>} : vector<64x8xi32>
    %2 = vector.broadcast %0 : i32 to vector<64x8xi32>
    %3 = arith.addi %1, %2 : vector<64x8xi32>
    %4 = arith.sitofp %3 : vector<64x8xi32> to vector<64x8xf32>
    %cst = arith.constant 5.000000e-01 : f32
    %5 = vector.broadcast %cst : f32 to vector<64x8xf32>
    %6 = arith.addf %4, %5 : vector<64x8xf32>
    %cst_0 = arith.constant 1.250000e-01 : f32
    %7 = vector.broadcast %cst_0 : f32 to vector<64x8xf32>
    %8 = arith.mulf %6, %7 : vector<64x8xf32>
    %cst_1 = arith.constant 1.000000e+00 : f32
    %9 = vector.broadcast %cst_1 : f32 to vector<64x8xf32>
    %10 = arith.subf %8, %9 : vector<64x8xf32>
    %c0 = arith.constant 0 : index
    %c0_2 = arith.constant 0 : index
    %11 = vector.load %arg3[%c0, %c0_2] : memref<64x1xf32, #tpu.memory_space<vmem>>, vector<64x1xf32>
    %12 = vector.broadcast %11 : vector<64x1xf32> to vector<64x8xf32>
    %13 = arith.mulf %12, %10 : vector<64x8xf32>
    %14 = math.sin %13 : vector<64x8xf32>
    %15 = vector.shape_cast %14 : vector<64x8xf32> to vector<64x8x1xf32>
    %16 = math.cos %13 : vector<64x8xf32>
    %17 = vector.shape_cast %16 : vector<64x8xf32> to vector<64x8x1xf32>
    %c0_3 = arith.constant 0 : index
    %c0_4 = arith.constant 0 : index
    %c0_5 = arith.constant 0 : index
    %18 = vector.load %arg1[%c0_3, %c0_4, %c0_5] : memref<64x1x16xf32, #tpu.memory_space<vmem>>, vector<64x1x16xf32>
    %c0_6 = arith.constant 0 : index
    %c0_7 = arith.constant 0 : index
    %c0_8 = arith.constant 0 : index
    %19 = vector.load %arg2[%c0_6, %c0_7, %c0_8] : memref<64x1x16xf32, #tpu.memory_space<vmem>>, vector<64x1x16xf32>
    %20 = vector.broadcast %18 : vector<64x1x16xf32> to vector<64x8x16xf32>
    %21 = vector.broadcast %17 : vector<64x8x1xf32> to vector<64x8x16xf32>
    %22 = arith.mulf %20, %21 : vector<64x8x16xf32>
    %23 = vector.broadcast %19 : vector<64x1x16xf32> to vector<64x8x16xf32>
    %24 = vector.broadcast %15 : vector<64x8x1xf32> to vector<64x8x16xf32>
    %25 = arith.mulf %23, %24 : vector<64x8x16xf32>
    %26 = arith.addf %22, %25 : vector<64x8x16xf32>
    %c0_9 = arith.constant 0 : index
    %c0_10 = arith.constant 0 : index
    %c0_11 = arith.constant 0 : index
    %27 = vector.load %arg4[%c0_9, %c0_10, %c0_11] : memref<128x8x16xf32, #tpu.memory_space<vmem>>, vector<64x8x16xf32>
    tpu.vector_store %arg4[%c0_9, %c0_10, %c0_11], %26 {strides = array<i32>} : memref<128x8x16xf32, #tpu.memory_space<vmem>>, vector<64x8x16xf32>,
    %28 = vector.broadcast %19 : vector<64x1x16xf32> to vector<64x8x16xf32>
    %29 = vector.broadcast %17 : vector<64x8x1xf32> to vector<64x8x16xf32>
    %30 = arith.mulf %28, %29 : vector<64x8x16xf32>
    %31 = vector.broadcast %18 : vector<64x1x16xf32> to vector<64x8x16xf32>
    %32 = vector.broadcast %15 : vector<64x8x1xf32> to vector<64x8x16xf32>
    %33 = arith.mulf %31, %32 : vector<64x8x16xf32>
    %34 = arith.subf %30, %33 : vector<64x8x16xf32>
    %c64 = arith.constant 64 : index
    %c0_12 = arith.constant 0 : index
    %c0_13 = arith.constant 0 : index
    %35 = vector.load %arg4[%c64, %c0_12, %c0_13] : memref<128x8x16xf32, #tpu.memory_space<vmem>>, vector<64x8x16xf32>
    tpu.vector_store %arg4[%c64, %c0_12, %c0_13], %34 {strides = array<i32>} : memref<128x8x16xf32, #tpu.memory_space<vmem>>, vector<64x8x16xf32>,
    return
  }
  func.func @transform_0(%arg0: i32) -> (i32, i32, i32) {
    %c0_i32 = arith.constant 0 : i32
    %c0_i32_0 = arith.constant 0 : i32
    %c0_i32_1 = arith.constant 0 : i32
    %c0_i32_2 = arith.constant 0 : i32
    return %c0_i32, %c0_i32_0, %c0_i32_1 : i32, i32, i32
  }
  func.func @transform_1(%arg0: i32) -> (i32, i32, i32) {
    %c0_i32 = arith.constant 0 : i32
    %c0_i32_0 = arith.constant 0 : i32
    %c0_i32_1 = arith.constant 0 : i32
    %c0_i32_2 = arith.constant 0 : i32
    return %c0_i32, %c0_i32_0, %c0_i32_1 : i32, i32, i32
  }
  func.func @transform_2(%arg0: i32) -> (i32, i32) {
    %c0_i32 = arith.constant 0 : i32
    %c0_i32_0 = arith.constant 0 : i32
    %c0_i32_1 = arith.constant 0 : i32
    return %c0_i32, %c0_i32_0 : i32, i32
  }
  func.func @transform_3(%arg0: i32) -> (i32, i32, i32) {
    %c0_i32 = arith.constant 0 : i32
    %c0_i32_0 = arith.constant 0 : i32
    %c0_i32_1 = arith.constant 0 : i32
    return %c0_i32, %arg0, %c0_i32_0 : i32, i32, i32
  }
}

</mosaic_0001>

<bundles_post_ra>
// kernel: tpu_custom_call.1
= control target key start
LH: loop header
LB: loop body
LE: loop exit
PB: predicated region body
PF: predicated region fallthrough
CT: control target
= control target key end

     0   :  { %s5531_s12 = smov 0   ;;  %s5533_s13 = smov 0   ;;  %s7872_s0 = inlined_call_operand.vmem [shape: f32[64,1,16], index: 0, kind: input, shape index: {}]   ;;  %s7873_s1 = inlined_call_operand.vmem [shape: f32[64,1,16], index: 1, kind: input, shape index: {}]   ;;  %s7874_s2 = inlined_call_operand.vmem [shape: f32[64,1], index: 2, kind: input, shape index: {}]   ;;  %s7875_s3 = inlined_call_operand.vmem [shape: f32[128,16,16], index: 3, kind: output, shape index: {}]  }
   0x1   :  { %s5535_s14 = smov 0  }
   0x2 LB: > { %s5192_s15 = sadd.s32 4294967295, %s5502_s14   ;;  %s5548_s16 = sadd.s32 1, %s5502_s14   ;;  %s5502_s14 = sphi %s5535_s14, %s8046_s14   ;;  %s5498_s13 = sphi %s5533_s13, %s8045_s13   ;;  %s5494_s12 = sphi %s5531_s12, %s8044_s12  }
   0x3   : > { %s80_s17 = ssub.s32 %s5502_s14, %s5548_s16  ;;  %s83_s18 = sadd.s32 1, %s5498_s13 }
   0x4   : > { %p81_p0 = scmp.eq.s32.totalorder %s80_s17, 0  ;;  %p93_p1 = scmp.ne.s32.totalorder %s5498_s13, %s5494_s12 }
   0x5   : > { %p94_p2 = scmp.eq.s32.totalorder %s5192_s15, 1  ;;  %p5195_p3 = scmp.ge.s32.totalorder %s5502_s14, 1 }
   0x6   : > { %s5559_s19 = scalar_select %p81_p0, %s5498_s13, %s83_s18  }
   0x7   : > { %p5561_p4 = por %p94_p2, %p93_p1  ;;  %p127_p5 = scmp.lt.s32.totalorder %s5502_s14, 3 }
   0x9   : > { %p128_p6 = pnand %p5195_p3, %p127_p5 }
   0xb   : > { %131 = sbr.rel (%p128_p6) target bundleno = 983 (0x3d7), region = 32 }
  0x10   : > { %v156_v0 = vld [vmem:[%s7874_s2 + $0x10] sm:$0xff]  ;;  %v154_v1 = vld [vmem:[%s7874_s2] sm:$0xff]  ;;  %v7900_v2 = vmov 0   ;;  %v157_v4 = vld [vmem:[%s7874_s2 + $0x18] sm:$0xff]  ;;  %v7882_v9 = vlaneseq  ;;  %s5595_s10 = sshll.u32 %s5192_s15, 3  ;;  %s142_s11 = sand.u32 1, %s5494_s12  }
  0x11   : > { %5347 = vset.pattern.permute.xlu1 %v7900_v2  ;;  %5346 = vset.pattern.permute.xlu0 %v7900_v2  ;;  %v158_v3 = vld [vmem:[%s7874_s2 + $0x20] sm:$0xff]  ;;  %v155_v5 = vld [vmem:[%s7874_s2 + $0x8] sm:$0xff]  ;;  %v161_v7 = vld [vmem:[%s7874_s2 + $0x38] sm:$0xff]  ;;  %v148_v11 = vstv %s5595_s10  ;;  %v7904_v36 = vmov 683565275   ;;  %s5196_s21 = sshll.u32 %s142_s11, 10  ;;  %s7604_s23 = scalar_lea.vmem (%p5561_p4), %s7875_s3, %s5595_s10 }
  0x12   : > { %174 = vperm.xlu1 %5347, %v156_v0   ;;  %164 = vperm.xlu0 %5346, %v154_v1   ;;  %v159_v6 = vld [vmem:[%s7874_s2 + $0x28] sm:$0xff]  ;;  %v160_v8 = vld [vmem:[%s7874_s2 + $0x30] sm:$0xff]  ;;  %v147_v10 = vand.u32 127, %v7882_v9  ;;  %v7896_v38 = vmov 2475754826   ;;  %s6815_s25 = scalar_lea.vmem [#allocation2], %s5196_s21 }
  0x13   : > { %5348 = vset.pattern.permute.xlu2 %v7900_v2  ;;  %v7893_v40 = vmov 2131351028   ;;  %v7891_v42 = vmov 2102212464   ;;  %v7889_v44 = vmov 920167782  }
  0x14   : > { %184 = vperm.xlu2 %5348, %v158_v3   ;;  %v149_v12 = vadd.s32 %v148_v11, %v147_v10  ;;  %v7884_v53 = vmov 1326507024  }
  0x16   : > { %v150_v13 = vcvt.s32.f32 %v149_v12 }
  0x18   : > { %v151_v14 = vadd.f32 0.5, %v150_v13 }
  0x1a   : > { %179 = vperm.xlu1 %5347, %v157_v4   ;;  %169 = vperm.xlu0 %5346, %v155_v5   ;;  %v152_v15 = vmul.f32 0.125, %v151_v14 }
  0x1c   : > { %189 = vperm.xlu2 %5348, %v159_v6   ;;  %v5599_v16 = vadd.f32 -1.0, %v152_v15 }
  0x22   : > { %199 = vperm.xlu1 %5347, %v161_v7   ;;  %194 = vperm.xlu0 %5346, %v160_v8  }
  0x6e   : > { %v185_v17 = vpop.permute.xlu2 %184 }
  0x6f   : > { %v5602_v18 = vmul.f32 %v5599_v16, %v185_v17 }
  0x71   : > { %v830_v19 = vand.u32 2147483647, %v5602_v18  ;;  %v833_v20 = vand.u32 2139095040, %v5602_v18 }
  0x73   : > { %v834_v21 = vshrl.u32 %v833_v20, 23  ;;  %v837_v22 = vand.u32 8388607, %v830_v19 }
  0x75   : > { %v5211_v23 = vadd.s32 4294967169, %v834_v21  ;;  %v838_v24 = vor.u32 8388608, %v837_v22 }
  0x76   : > { %v190_v25 = vpop.permute.xlu2 %189 }
  0x77   : > { %v840_v26 = vadd.s32 1, %v5211_v23  ;;  %v5609_v27 = vmul.f32 %v5599_v16, %v190_v25  ;;  %v5611_v29 = vshll.u32 %v838_v24, 8 }
  0x79   : > { %7942 = vst [vmem:[#allocation3_spill] sm:$0xff] %v5609_v27  ;;  %vm841_vm0 = vcmp.gt.s32.totalorder %v840_v26, 0  ;;  %v985_v30 = vand.u32 2147483647, %v5609_v27  ;;  %v988_v31 = vand.u32 2139095040, %v5609_v27  ;;  %v879_v46 = vand.u32 65535, %v5611_v29 }
  0x7a   : > { %v842_v28 = vsel %vm841_vm0, %v840_v26, 0  ;;  %v880_v61 = vshrl.u32 %v5611_v29, 16 }
  0x7b   : > { %v843_v32 = vshrl.u32 %v842_v28, 5  ;;  %v844_v33 = vand.u32 31, %v842_v28  ;;  %v989_v34 = vshrl.u32 %v988_v31, 23  ;;  %v992_v47 = vand.u32 8388607, %v985_v30 }
  0x7d   : > { %v845_v35 = vsub.s32 32, %v844_v33  ;;  %v847_v37 = vshll.u32 %v7904_v36, %v844_v33  ;;  %v850_v39 = vshll.u32 %v7896_v38, %v844_v33  ;;  %v853_v41 = vshll.u32 %v7893_v40, %v844_v33 }
  0x7e   : > { %v856_v43 = vshll.u32 %v7891_v42, %v844_v33  ;;  %v859_v45 = vshll.u32 %v7889_v44, %v844_v33  ;;  %vm862_vm1 = vcmp.lt.s32.totalorder %v843_v32, 1  ;;  %vm865_vm2 = vcmp.lt.s32.totalorder %v843_v32, 4 }
  0x7f   : > { %v848_v48 = vshrl.u32 %v7896_v38, %v845_v35  ;;  %v851_v49 = vshrl.u32 %v7893_v40, %v845_v35  ;;  %v854_v50 = vshrl.u32 %v7891_v42, %v845_v35  ;;  %v846_v51 = vshrl.u32 %v7904_v36, %v845_v35 }
  0x80   : > { %v857_v52 = vshrl.u32 %v7889_v44, %v845_v35  ;;  %v860_v54 = vshrl.u32 %v7884_v53, %v845_v35  ;;  %v5214_v58 = vadd.s32 4294967169, %v989_v34  ;;  %vm864_vm3 = vcmp.lt.s32.totalorder %v843_v32, 3 }
  0x81   : > { %v849_v55 = vor.u32 %v848_v48, %v847_v37  ;;  %v852_v56 = vor.u32 %v851_v49, %v850_v39  ;;  %v855_v57 = vor.u32 %v854_v50, %v853_v41  ;;  %vm863_vm4 = vcmp.lt.s32.totalorder %v843_v32, 2 }
  0x82   : > { %v858_v59 = vor.u32 %v857_v52, %v856_v43  ;;  %v861_v60 = vor.u32 %v860_v54, %v859_v45  ;;  %v993_v4 = vor.u32 8388608, %v992_v47  ;;  %v995_v5 = vadd.s32 1, %v5214_v58 }
  0x83   : > { %v867_v62 = vsel %vm865_vm2, %v855_v57, 2102212464  ;;  %v870_v63 = vsel %vm862_vm1, %v849_v55, %v852_v56  ;;  %v874_v0 = vsel %vm862_vm1, %v852_v56, %v855_v57  ;;  %v866_v6 = vsel %vm862_vm1, %v846_v51, %v849_v55 }
  0x84   : > { %v871_v1 = vsel %vm865_vm2, %v858_v59, 920167782  ;;  %v875_v3 = vsel %vm865_vm2, %v861_v60, 1326507024  ;;  %v868_v7 = vsel %vm864_vm3, %v852_v56, %v867_v62  ;;  %vm996_vm5 = vcmp.gt.s32.totalorder %v995_v5, 0 }
  0x85   : > { %v872_v8 = vsel %vm864_vm3, %v855_v57, %v871_v1  ;;  %v876_v10 = vsel %vm864_vm3, %v858_v59, %v875_v3  ;;  %v5636_v20 = vsel %vm863_vm4, %v866_v6, %v868_v7  ;;  %v5638_v24 = vshll.u32 %v993_v4, 8 }
  0x86   : > { %v873_v11 = vsel %vm863_vm4, %v870_v63, %v872_v8  ;;  %v877_v12 = vsel %vm863_vm4, %v874_v0, %v876_v10  ;;  %v997_v31 = vsel %vm996_vm5, %v995_v5, 0 }
  0x87   : > { %v881_v13 = vand.u32 65535, %v877_v12  ;;  %v882_v14 = vshrl.u32 %v877_v12, 16  ;;  %v903_v15 = vand.u32 65535, %v873_v11  ;;  %v904_v17 = vshrl.u32 %v873_v11, 16 }
  0x88   : > { %v999_v48 = vand.u32 31, %v997_v31  ;;  %v5645_v57 = vshrl.u32 %v997_v31, 5  ;;  %v1034_v31 = vand.u32 65535, %v5638_v24 }
  0x89   : > { %v883_v21 = vmul.u32 %v881_v13, %v879_v46  ;;  %v884_v22 = vmul.u32 %v882_v14, %v879_v46  ;;  %v885_v23 = vmul.u32 %v881_v13, %v880_v61  ;;  %v905_v25 = vmul.u32 %v903_v15, %v879_v46 }
  0x8a   : > { %v906_v26 = vmul.u32 %v904_v17, %v879_v46  ;;  %v907_v28 = vmul.u32 %v903_v15, %v880_v61  ;;  %v886_v33 = vmul.u32 %v882_v14, %v880_v61  ;;  %v908_v37 = vmul.u32 %v904_v17, %v880_v61 }
  0x8b   : > { %v887_v34 = vshll.u32 %v884_v22, 16  ;;  %v889_v35 = vshll.u32 %v885_v23, 16  ;;  %v888_v39 = vshrl.u32 %v884_v22, 16  ;;  %v890_v41 = vshrl.u32 %v885_v23, 16 }
  0x8c   : > { %v909_v43 = vshll.u32 %v906_v26, 16  ;;  %v911_v45 = vshll.u32 %v907_v28, 16  ;;  %v910_v47 = vshrl.u32 %v906_v26, 16  ;;  %v912_v50 = vshrl.u32 %v907_v28, 16 }
  0x8d   : > { %vm891_vm6 = vc.u32 %v883_v21, %v887_v34  ;;  %v893_v32 = vadd.s32 %v887_v34, %v883_v21  ;;  %v5642_v54 = vsub.s32 32, %v999_v48  ;;  %v1002_v61 = vshll.u32 %v7904_v36, %v999_v48 }
  0x8e   : > { %v892_v49 = vsel %vm891_vm6, 1, %v7900_v2  ;;  %vm913_vm7 = vc.u32 %v905_v25, %v909_v43  ;;  %v915_v51 = vadd.s32 %v909_v43, %v905_v25  ;;  %v1005_v0 = vshll.u32 %v7896_v38, %v999_v48 }
  0x8f   : > { %v894_v46 = vadd.s32 %v892_v49, %v886_v33  ;;  %vm895_vm8 = vc.u32 %v893_v32, %v889_v35  ;;  %v914_v52 = vsel %vm913_vm7, 1, %v7900_v2  ;;  %v1003_v63 = vshrl.u32 %v7896_v38, %v5642_v54  ;;  %v175_v49 = vpop.permute.xlu1 %174 }
  0x90   : > { %v896_v55 = vsel %vm895_vm8, 1, %v7900_v2  ;;  %v916_v56 = vadd.s32 %v914_v52, %v908_v37  ;;  %vm917_vm9 = vc.u32 %v915_v51, %v911_v45  ;;  %v5648_v60 = vadd.s32 %v915_v51, %v911_v45 }
  0x91   : > { %v898_v58 = vadd.s32 %v896_v55, %v894_v46  ;;  %v918_v59 = vsel %vm917_vm9, 1, %v7900_v2  ;;  %v1006_v1 = vshrl.u32 %v7893_v40, %v5642_v54  ;;  %v1008_v4 = vshll.u32 %v7893_v40, %v999_v48 }
  0x92   : > { %v920_v62 = vadd.s32 %v918_v59, %v916_v56  ;;  %v1009_v5 = vshrl.u32 %v7891_v42, %v5642_v54  ;;  %v1011_v6 = vshll.u32 %v7891_v42, %v999_v48  ;;  %v5660_v8 = vor.u32 %v1003_v63, %v1002_v61 }
  0x93   : > { %v899_v3 = vadd.s32 %v898_v58, %v888_v39  ;;  %v5662_v10 = vor.u32 %v1006_v1, %v1005_v0  ;;  %v1012_v11 = vshrl.u32 %v7889_v44, %v5642_v54  ;;  %v1014_v14 = vshll.u32 %v7889_v44, %v999_v48 }
  0x94   : > { %v921_v7 = vadd.s32 %v920_v62, %v910_v47  ;;  %v5668_v13 = vor.u32 %v1009_v5, %v1008_v4  ;;  %v1015_v15 = vshrl.u32 %v7884_v53, %v5642_v54  ;;  %vm1017_vm10 = vcmp.lt.s32.totalorder %v5645_v57, 1 }
  0x95   : > { %v5666_v12 = vadd.s32 %v899_v3, %v890_v41  ;;  %v1013_v21 = vor.u32 %v1012_v11, %v1011_v6  ;;  %v923_v22 = vmul.u32 %v5611_v29, %v5636_v20  ;;  %vm1019_vm12 = vcmp.lt.s32.totalorder %v5645_v57, 3 }
  0x96   : > { %v922_v17 = vadd.s32 %v921_v7, %v912_v50  ;;  %v1016_v23 = vor.u32 %v1015_v15, %v1014_v14  ;;  %vm1018_vm13 = vcmp.lt.s32.totalorder %v5645_v57, 2  ;;  %vm1020_vm14 = vcmp.lt.s32.totalorder %v5645_v57, 4 }
  0x97   : > { %vm925_vm11 = vc.u32 %v5666_v12, %v5648_v60  ;;  %v1025_v26 = vsel %vm1017_vm10, %v5660_v8, %v5662_v10  ;;  %v1026_v28 = vsel %vm1020_vm14, %v1013_v21, 920167782  ;;  %v1029_v29 = vsel %vm1017_vm10, %v5662_v10, %v5668_v13 }
  0x98   : > { %v926_v25 = vadd.s32 1, %v922_v17  ;;  %v1030_v20 = vsel %vm1020_vm14, %v1016_v23, 1326507024  ;;  %v1027_v34 = vsel %vm1019_vm12, %v5668_v13, %v1026_v28  ;;  %v1035_v37 = vshrl.u32 %v5638_v24, 16 }
  0x99   : > { %v1031_v35 = vsel %vm1019_vm12, %v1013_v21, %v1030_v20  ;;  %v1028_v41 = vsel %vm1018_vm13, %v1025_v26, %v1027_v34  ;;  %v5707_v59 = vmul.f32 %v5599_v16, %v175_v49  ;;  %vm5756_vm7 = vcmp.le.f32.partialorder %v830_v19, 0.7853982 }
  0x9a   : > { %v927_v33 = vsel %vm925_vm11, %v926_v25, %v922_v17  ;;  %v1032_v43 = vsel %vm1018_vm13, %v1029_v29, %v1031_v35  ;;  %v1058_v47 = vand.u32 65535, %v1028_v41  ;;  %v1059_v48 = vshrl.u32 %v1028_v41, 16 }
  0x9b   : > { %v928_v39 = vadd.s32 %v927_v33, %v923_v22  ;;  %v1036_v45 = vand.u32 65535, %v1032_v43  ;;  %v1037_v32 = vshrl.u32 %v1032_v43, 16  ;;  %v523_v14 = vand.u32 2139095040, %v5707_v59 }
  0x9c   : > { %v1061_v58 = vmul.u32 %v1059_v48, %v1034_v31  ;;  %v1060_v63 = vmul.u32 %v1058_v47, %v1034_v31  ;;  %v1062_v0 = vmul.u32 %v1058_v47, %v1035_v37  ;;  %v1063_v5 = vmul.u32 %v1059_v48, %v1035_v37 }
  0x9d   : > { %v929_v50 = vadd.s32 536870912, %v928_v39  ;;  %v1038_v51 = vmul.u32 %v1036_v45, %v1034_v31  ;;  %v1039_v46 = vmul.u32 %v1037_v32, %v1034_v31  ;;  %v1040_v52 = vmul.u32 %v1036_v45, %v1035_v37 }
  0x9e   : > { %v1041_v56 = vmul.u32 %v1037_v32, %v1035_v37  ;;  %v1064_v3 = vshll.u32 %v1061_v58, 16  ;;  %v1066_v17 = vshll.u32 %v1062_v0, 16  ;;  %v1001_v25 = vshrl.u32 %v7904_v36, %v5642_v54 }
  0x9f   : > { %v5704_v55 = vshrl.u32 %v929_v50, 30  ;;  %v1042_v61 = vshll.u32 %v1039_v46, 16  ;;  %v1044_v62 = vshll.u32 %v1040_v52, 16  ;;  %v1043_v7 = vshrl.u32 %v1039_v46, 16 }
  0xa0   : > { %vm1068_vm1 = vc.u32 %v1060_v63, %v1064_v3  ;;  %v1070_v28 = vadd.s32 %v1064_v3, %v1060_v63  ;;  %v1022_v31 = vsel %vm1020_vm14, %v5668_v13, 2102212464  ;;  %v1045_v33 = vshrl.u32 %v1040_v52, 16 }
  0xa1   : > { %v931_v1 = vshll.u32 %v5704_v55, 30  ;;  %vm1046_vm15 = vc.u32 %v1038_v51, %v1042_v61  ;;  %v1048_v4 = vadd.s32 %v1042_v61, %v1038_v51  ;;  %v1069_v23 = vsel %vm1068_vm1, 1, %v7900_v2 }
  0xa2   : > { %v1047_v11 = vsel %vm1046_vm15, 1, %v7900_v2  ;;  %v1071_v29 = vadd.s32 %v1069_v23, %v1063_v5  ;;  %v524_v34 = vshrl.u32 %v523_v14, 23  ;;  %vm1072_vm3 = vc.u32 %v1070_v28, %v1066_v17 }
  0xa3   : > { %v932_v6 = vsub.s32 %v928_v39, %v931_v1  ;;  %v1049_v15 = vadd.s32 %v1047_v11, %v1041_v56  ;;  %vm1050_vm0 = vc.u32 %v1048_v4, %v1044_v62  ;;  %v1065_v39 = vshrl.u32 %v1061_v58, 16 }
  0xa4   : > { %v1051_v22 = vsel %vm1050_vm0, 1, %v7900_v2  ;;  %v1073_v41 = vsel %vm1072_vm3, 1, %v7900_v2  ;;  %v5205_v43 = vadd.s32 4294967169, %v524_v34  ;;  %v924_v54 = vadd.s32 %v5648_v60, %v5666_v12 }
  0xa5   : > { %vm933_vm2 = vcmp.lt.s32.totalorder %v932_v6, 0  ;;  %v934_v21 = vsub.s32 0, %v932_v6  ;;  %v1053_v26 = vadd.s32 %v1051_v22, %v1049_v15  ;;  %v1075_v32 = vadd.s32 %v1073_v41, %v1071_v29 }
  0xa6   : > { %v1021_v47 = vsel %vm1017_vm10, %v1001_v25, %v5660_v8  ;;  %v1023_v13 = vsel %vm1019_vm12, %v5662_v10, %v1022_v31  ;;  %v1067_v48 = vshrl.u32 %v1062_v0, 16  ;;  %v530_v49 = vadd.s32 1, %v5205_v43 }
  0xa7   : > { %v935_v20 = vsel %vm933_vm2, %v934_v21, %v932_v6  ;;  %v1054_v37 = vadd.s32 %v1053_v26, %v1043_v7  ;;  %v5730_v51 = vadd.s32 %v1070_v28, %v1066_v17  ;;  %v1076_v46 = vadd.s32 %v1075_v32, %v1065_v39 }
  0xa8   : > { %v936_v35 = vclz %v935_v20  ;;  %v520_v60 = vand.u32 2147483647, %v5707_v59  ;;  %vm531_vm5 = vcmp.gt.s32.totalorder %v530_v49, 0  ;;  %v1024_v8 = vsel %vm1018_vm13, %v1021_v47, %v1023_v13 }
  0xa9   : > { %v5728_v50 = vadd.s32 %v1054_v37, %v1045_v33  ;;  %v1077_v61 = vadd.s32 %v1076_v46, %v1067_v48  ;;  %v532_v10 = vsel %vm531_vm5, %v530_v49, 0  ;;  %v1078_v0 = vmul.u32 %v5638_v24, %v1024_v8 }
  0xaa   : > { %v5212_v45 = vadd.s32 4294967294, %v936_v35  ;;  %v527_v3 = vand.u32 8388607, %v520_v60  ;;  %v534_v4 = vand.u32 31, %v532_v10  ;;  %v954_v15 = vsub.s32 4, %v5704_v55 }
  0xab   : > { %vm1080_vm6 = vc.u32 %v5728_v50, %v5730_v51  ;;  %v1081_v1 = vadd.s32 1, %v1077_v61  ;;  %v5743_v22 = vshrl.u32 %v532_v10, 5  ;;  %vm832_vm8 = vcmp.lt.s32.totalorder %v5602_v18, 0 }
  0xac   : > { %vm5213_vm4 = vcmp.lt.s32.totalorder %v5212_v45, 0  ;;  %v5740_v11 = vsub.s32 32, %v534_v4  ;;  %v528_v21 = vor.u32 8388608, %v527_v3  ;;  %v540_v24 = vshll.u32 %v7896_v38, %v534_v4 }
  0xad   : > { %v939_v52 = vsel %vm5213_vm4, 0, %v5212_v45  ;;  %v1082_v7 = vsel %vm1080_vm6, %v1081_v1, %v1077_v61  ;;  %v543_v26 = vshll.u32 %v7893_v40, %v534_v4  ;;  %v546_v20 = vshll.u32 %v7891_v42, %v534_v4 }
  0xae   : > { %v940_v12 = vsub.s32 32, %v939_v52  ;;  %v941_v56 = vshll.u32 %v932_v6, %v939_v52  ;;  %v944_v58 = vsub.s32 4294967266, %v939_v52  ;;  %v1083_v17 = vadd.s32 %v1082_v7, %v1078_v0 }
  0xaf   : > { %v541_v25 = vshrl.u32 %v7893_v40, %v5740_v11  ;;  %v544_v29 = vshrl.u32 %v7891_v42, %v5740_v11  ;;  %v547_v31 = vshrl.u32 %v7889_v44, %v5740_v11  ;;  %v549_v35 = vshll.u32 %v7889_v44, %v534_v4 }
  0xb0   : > { %v942_v62 = vshrl.u32 %v924_v54, %v940_v12  ;;  %v945_v63 = vadd.s32 127, %v944_v58  ;;  %v1084_v28 = vadd.s32 536870912, %v1083_v17  ;;  %v537_v39 = vshll.u32 %v7904_v36, %v534_v4 }
  0xb1   : > { %v538_v41 = vshrl.u32 %v7896_v38, %v5740_v11  ;;  %v550_v43 = vshrl.u32 %v7884_v53, %v5740_v11  ;;  %v955_v19 = vsel %vm832_vm8, %v954_v15, %v5704_v55  ;;  %v548_v45 = vor.u32 %v547_v31, %v546_v20 }
  0xb2   : > { %v943_v5 = vor.u32 %v942_v62, %v941_v56  ;;  %v946_v6 = vshll.u32 %v945_v63, 23  ;;  %v5762_v37 = vshrl.u32 %v1084_v28, 30  ;;  %v5770_v32 = vshll.u32 %v528_v21, 8 }
  0xb3   : > { %v5773_v13 = vor.u32 %v541_v25, %v540_v24  ;;  %v5775_v48 = vor.u32 %v544_v29, %v543_v26  ;;  %vm555_vm9 = vcmp.lt.s32.totalorder %v5743_v22, 4  ;;  %v551_v46 = vor.u32 %v550_v43, %v549_v35 }
  0xb4   : > { %v947_v57 = vor.u32 4788187, %v946_v6  ;;  %v950_v14 = vcvt.s32.f32 %v943_v5  ;;  %v1086_v47 = vshll.u32 %v5762_v37, 30  ;;  %vm552_vm10 = vcmp.lt.s32.totalorder %v5743_v22, 1 }
  0xb5   : > { %v5784_v55 = vsel %vm5756_vm7, 0, %v955_v19  ;;  %v5786_v56 = vor.u32 %v538_v41, %v537_v39  ;;  %vm554_vm11 = vcmp.lt.s32.totalorder %v5743_v22, 3  ;;  %v561_v8 = vsel %vm555_vm9, %v548_v45, 920167782 }
  0xb6   : > { %v948_v23 = vand.u32 2147483647, %v947_v57  ;;  %v1087_v12 = vsub.s32 %v1083_v17, %v1086_v47  ;;  %v5792_v61 = vand.u32 65535, %v5770_v32  ;;  %vm553_vm13 = vcmp.lt.s32.totalorder %v5743_v22, 2  ;;  %v165_v17 = vpop.permute.xlu0 %164 }
  0xb7   : > { %v564_v62 = vsel %vm552_vm10, %v5773_v13, %v5775_v48  ;;  %v565_v1 = vsel %vm555_vm9, %v551_v46, 1326507024  ;;  %v560_v4 = vsel %vm552_vm10, %v5786_v56, %v5773_v13  ;;  %v562_v5 = vsel %vm554_vm11, %v5775_v48, %v561_v8 }
  0xb8   : > { %v951_v34 = vmul.f32 %v950_v14, %v948_v23  ;;  %vm1088_vm12 = vcmp.lt.s32.totalorder %v1087_v12, 0  ;;  %v1089_v10 = vsub.s32 0, %v1087_v12  ;;  %v566_v6 = vsel %vm554_vm11, %v548_v45, %v565_v1 }
  0xb9   : > { %v567_v15 = vsel %vm553_vm13, %v564_v62, %v566_v6  ;;  %v2658_v21 = vand.u32 3, %v5784_v55  ;;  %v563_v28 = vsel %vm553_vm13, %v560_v4, %v562_v5  ;;  %v570_v29 = vshrl.u32 %v5770_v32, 16 }
  0xba   : > { %v952_v54 = vxor.u32 2147483648, %v951_v34  ;;  %v1090_v3 = vsel %vm1088_vm12, %v1089_v10, %v1087_v12  ;;  %v572_v23 = vshrl.u32 %v567_v15, 16  ;;  %v571_v20 = vand.u32 65535, %v567_v15 }
  0xbb   : > { %v1091_v14 = vclz %v1090_v3  ;;  %v5820_v33 = vmul.f32 %v5599_v16, %v165_v17  ;;  %v1079_v39 = vadd.s32 %v5730_v51, %v5728_v50  ;;  %vm973_vm15 = vweird.f32 %v5602_v18 }
  0xbc   : > { %v953_v49 = vsel %vm832_vm8, %v952_v54, %v951_v34  ;;  %v5817_v31 = vmul.u32 %v572_v23, %v5792_v61  ;;  %vm2659_vm0 = vcmp.lt.s32.totalorder %v2658_v21, 2  ;;  %v594_v43 = vshrl.u32 %v563_v28, 16 }
  0xbd   : > { %v956_v52 = vsel %vm5756_vm7, %v5602_v18, %v953_v49  ;;  %v5215_v26 = vadd.s32 4294967294, %v1091_v14  ;;  %v573_v46 = vmul.u32 %v571_v20, %v5792_v61  ;;  %v5826_v8 = vmul.u32 %v571_v20, %v570_v29 }
  0xbe   : > { %v958_v58 = vmul.f32 %v956_v52, %v956_v52  ;;  %v577_v10 = vshll.u32 %v5817_v31, 16  ;;  %vm2660_vm1 = vcmp.eq.s32.totalorder %v2658_v21, 0  ;;  %vm2663_vm2 = vcmp.eq.s32.totalorder %v2658_v21, 2 }
  0xbf   : > { %vm5216_vm14 = vcmp.lt.s32.totalorder %v5215_v26, 0  ;;  %v596_v1 = vmul.u32 %v594_v43, %v5792_v61  ;;  %vm987_vm3 = vcmp.lt.s32.totalorder %v5609_v27, 0  ;;  %v576_v4 = vmul.u32 %v572_v23, %v570_v29 }
  0xc0   : > { %v959_v63 = vmul.f32 -0.001358992, %v958_v58  ;;  %v966_v0 = vmul.f32 -0.00019511016, %v958_v58  ;;  %v1094_v41 = vsel %vm5216_vm14, 0, %v5215_v26  ;;  %vm581_vm5 = vc.u32 %v573_v46, %v577_v10 }
  0xc1   : > { %v1095_v45 = vsub.s32 32, %v1094_v41  ;;  %v1096_v47 = vshll.u32 %v1087_v12, %v1094_v41  ;;  %v1099_v49 = vsub.s32 4294967266, %v1094_v41  ;;  %vm5838_vm4 = vcmp.le.f32.partialorder %v985_v30, 0.7853982 }
  0xc2   : > { %v960_v7 = vadd.f32 0.041655596, %v959_v63  ;;  %v967_v57 = vadd.f32 0.008332121, %v966_v0  ;;  %v593_v63 = vand.u32 65535, %v563_v28  ;;  %v599_v20 = vshll.u32 %v596_v1, 16 }
  0xc3   : > { %v1097_v51 = vshrl.u32 %v1079_v39, %v1095_v45  ;;  %v1100_v0 = vadd.s32 127, %v1099_v49  ;;  %v557_v30 = vsel %vm555_vm9, %v5775_v48, 2102212464  ;;  %v578_v48 = vshrl.u32 %v5817_v31, 16 }
  0xc4   : > { %v961_v24 = vmul.f32 %v960_v7, %v958_v58  ;;  %v968_v25 = vmul.f32 %v967_v57, %v958_v58  ;;  %v536_v7 = vshrl.u32 %v7904_v36, %v5740_v11  ;;  %v579_v57 = vshll.u32 %v5826_v8, 16 }
  0xc5   : > { %v1098_v3 = vor.u32 %v1097_v51, %v1096_v47  ;;  %v1101_v6 = vshll.u32 %v1100_v0, 23  ;;  %v597_v15 = vmul.u32 %v593_v63, %v570_v29  ;;  %v595_v28 = vmul.u32 %v593_v63, %v5792_v61 }
  0xc6   : > { %v962_v34 = vadd.f32 -0.4999988, %v961_v24  ;;  %v969_v35 = vadd.f32 -0.16666654, %v968_v25  ;;  %v582_v24 = vsel %vm581_vm5, 1, %v7900_v2  ;;  %v583_v25 = vadd.s32 %v577_v10, %v573_v46 }
  0xc7   : > { %v1102_v17 = vor.u32 4788187, %v1101_v6  ;;  %v1105_v23 = vcvt.s32.f32 %v1098_v3  ;;  %v584_v26 = vadd.s32 %v582_v24, %v576_v4  ;;  %v1109_v41 = vsub.s32 4, %v5762_v37 }
  0xc8   : > { %v963_v54 = vmul.f32 %v962_v34, %v958_v58  ;;  %v970_v19 = vmul.f32 %v969_v35, %v958_v58  ;;  %vm585_vm6 = vc.u32 %v583_v25, %v579_v57  ;;  %v556_v61 = vsel %vm552_vm10, %v536_v7, %v5786_v56 }
  0xc9   : > { %v1103_v35 = vand.u32 2147483647, %v1102_v17  ;;  %v601_v47 = vshll.u32 %v597_v15, 16  ;;  %v558_v31 = vsel %vm554_vm11, %v5773_v13, %v557_v30  ;;  %vm603_vm7 = vc.u32 %v595_v28, %v599_v20 }
  0xca   : > { %v5829_v62 = vadd.f32 1.0, %v963_v54  ;;  %v971_v50 = vadd.f32 1.0, %v970_v19  ;;  %v586_v54 = vsel %vm585_vm6, 1, %v7900_v2  ;;  %v598_v19 = vmul.u32 %v594_v43, %v570_v29 }
  0xcb   : > { %v1106_v45 = vmul.f32 %v1105_v23, %v1103_v35  ;;  %v588_v21 = vadd.s32 %v586_v54, %v584_v26  ;;  %v605_v49 = vadd.s32 %v599_v20, %v595_v28  ;;  %v213_v46 = vand.u32 2139095040, %v5820_v33 }
  0xcc   : > { %v5832_v58 = vmul.f32 %v971_v50, %v956_v52  ;;  %v7878_v12 = vxor.u32 2147483648, %v5829_v62  ;;  %v580_v50 = vshrl.u32 %v5826_v8, 16  ;;  %v604_v29 = vsel %vm603_vm7, 1, %v7900_v2 }
  0xcd   : > { %v1107_v10 = vxor.u32 2147483648, %v1106_v45  ;;  %v589_v51 = vadd.s32 %v588_v21, %v578_v48  ;;  %v600_v43 = vshrl.u32 %v596_v1, 16  ;;  %v606_v63 = vadd.s32 %v604_v29, %v598_v19 }
  0xce   : > { %v7879_v52 = vxor.u32 2147483648, %v5832_v58  ;;  %v2665_v14 = vsel %vm2663_vm2, %v7878_v12, %v5832_v58  ;;  %vm607_vm8 = vc.u32 %v605_v49, %v601_v47  ;;  %v214_v56 = vshrl.u32 %v213_v46, 23 }
  0xcf   : > { %v1108_v0 = vsel %vm987_vm3, %v1107_v10, %v1106_v45  ;;  %v1110_v13 = vsel %vm987_vm3, %v1109_v41, %v5762_v37  ;;  %v608_v3 = vsel %vm607_vm8, 1, %v7900_v2  ;;  %v602_v4 = vshrl.u32 %v597_v15, 16 }
  0xd0   : > { %v2662_v11 = vsel %vm2660_vm1, %v5829_v62, %v7879_v52  ;;  %v1111_v8 = vsel %vm5838_vm4, %v5609_v27, %v1108_v0  ;;  %v610_v6 = vadd.s32 %v608_v3, %v606_v63  ;;  %v5199_v7 = vadd.s32 4294967169, %v214_v56 }
  0xd1   : > { %v2666_v34 = vsel %vm2659_vm0, %v2662_v11, %v2665_v14  ;;  %v1113_v1 = vmul.f32 %v1111_v8, %v1111_v8  ;;  %v559_v57 = vsel %vm553_vm13, %v556_v61, %v558_v31  ;;  %v5886_v14 = vadd.s32 %v589_v51, %v580_v50 }
  0xd2   : > { %v5862_v39 = vsel %vm973_vm15, nan, %v2666_v34  ;;  %v5888_v30 = vadd.s32 %v605_v49, %v601_v47  ;;  %v611_v17 = vadd.s32 %v610_v6, %v600_v43  ;;  %v220_v23 = vadd.s32 1, %v5199_v7 }
  0xd3   : > { %7947 = vst [vmem:[#allocation4_spill] sm:$0xff] %v5862_v39  ;;  %v1114_v37 = vmul.f32 -0.001358992, %v1113_v1  ;;  %v1121_v24 = vmul.f32 -0.00019511016, %v1113_v1  ;;  %v5893_v11 = vsel %vm5838_vm4, 0, %v1110_v13  ;;  %v613_v26 = vmul.u32 %v5770_v32, %v559_v57 }
  0xd4   : > { %v210_v25 = vand.u32 2147483647, %v5820_v33  ;;  %v612_v15 = vadd.s32 %v611_v17, %v602_v4  ;;  %vm221_vm9 = vcmp.gt.s32.totalorder %v220_v23, 0  ;;  %vm615_vm10 = vc.u32 %v5886_v14, %v5888_v30 }
  0xd5   : > { %v1115_v22 = vadd.f32 0.041655596, %v1114_v37  ;;  %v1122_v28 = vadd.f32 0.008332121, %v1121_v24  ;;  %v222_v20 = vsel %vm221_vm9, %v220_v23, 0  ;;  %v2812_v34 = vand.u32 3, %v5893_v11 }
  0xd6   : > { %v616_v35 = vadd.s32 1, %v612_v15  ;;  %v224_v48 = vand.u32 31, %v222_v20  ;;  %v217_v5 = vand.u32 8388607, %v210_v25  ;;  %vm1128_vm11 = vweird.f32 %v5609_v27 }
  0xd7   : > { %v1116_v41 = vmul.f32 %v1115_v22, %v1113_v1  ;;  %v1123_v54 = vmul.f32 %v1122_v28, %v1113_v1  ;;  %vm2814_vm12 = vcmp.eq.s32.totalorder %v2812_v34, 0  ;;  %vm2817_vm13 = vcmp.eq.s32.totalorder %v2812_v34, 2 }
  0xd8   : > { %v617_v19 = vsel %vm615_vm10, %v616_v35, %v612_v15  ;;  %v5901_v45 = vsub.s32 32, %v224_v48  ;;  %v218_v46 = vor.u32 8388608, %v217_v5  ;;  %v5904_v10 = vshrl.u32 %v222_v20, 5  ;;  %v180_v35 = vpop.permute.xlu1 %179 }
  0xd9   : > { %v1117_v32 = vadd.f32 -0.4999988, %v1116_v41  ;;  %v1124_v61 = vadd.f32 -0.16666654, %v1123_v54  ;;  %v618_v21 = vadd.s32 %v617_v19, %v613_v26  ;;  %v236_v0 = vshll.u32 %v7891_v42, %v224_v48 }
  0xda   : > { %v228_v50 = vshrl.u32 %v7896_v38, %v5901_v45  ;;  %v231_v51 = vshrl.u32 %v7893_v40, %v5901_v45  ;;  %v237_v29 = vshrl.u32 %v7889_v44, %v5901_v45  ;;  %v227_v13 = vshll.u32 %v7904_v36, %v224_v48 }
  0xdb   : > { %v1118_v47 = vmul.f32 %v1117_v32, %v1113_v1  ;;  %v1125_v31 = vmul.f32 %v1124_v61, %v1113_v1  ;;  %v619_v49 = vadd.s32 536870912, %v618_v21  ;;  %v230_v3 = vshll.u32 %v7896_v38, %v224_v48 }
  0xdc   : > { %v234_v4 = vshrl.u32 %v7891_v42, %v5901_v45  ;;  %v240_v6 = vshrl.u32 %v7884_v53, %v5901_v45  ;;  %v238_v17 = vor.u32 %v237_v29, %v236_v0  ;;  %v5927_v23 = vor.u32 %v228_v50, %v227_v13 }
  0xdd   : > { %v5912_v43 = vadd.f32 1.0, %v1118_v47  ;;  %v1126_v63 = vadd.f32 1.0, %v1125_v31  ;;  %v5914_v56 = vshrl.u32 %v619_v49, 30  ;;  %v5929_v37 = vor.u32 %v231_v51, %v230_v3 }
  0xde   : > { %v233_v24 = vshll.u32 %v7893_v40, %v224_v48  ;;  %v239_v15 = vshll.u32 %v7889_v44, %v224_v48  ;;  %vm2813_vm14 = vcmp.lt.s32.totalorder %v2812_v34, 2  ;;  %vm242_vm0 = vcmp.lt.s32.totalorder %v5904_v10, 1 }
  0xdf   : > { %7948 = vst [vmem:[#allocation5_spill] sm:$0xff] %v5912_v43  ;;  %v5923_v7 = vmul.f32 %v1126_v63, %v1111_v8  ;;  %v7876_v1 = vxor.u32 2147483648, %v5912_v43  ;;  %v621_v57 = vshll.u32 %v5914_v56, 30  ;;  %vm245_vm1 = vcmp.lt.s32.totalorder %v5904_v10, 4 }
  0xe0   : > { %v235_v28 = vor.u32 %v234_v4, %v233_v24  ;;  %v241_v20 = vor.u32 %v240_v6, %v239_v15  ;;  %v251_v54 = vsel %vm245_vm1, %v238_v17, 920167782  ;;  %v250_v19 = vsel %vm242_vm0, %v5927_v23, %v5929_v37 }
  0xe1   : > { %v7877_v26 = vxor.u32 2147483648, %v5923_v7  ;;  %v2819_v8 = vsel %vm2817_vm13, %v7876_v1, %v5923_v7  ;;  %v622_v22 = vsub.s32 %v618_v21, %v621_v57  ;;  %v5950_v32 = vshll.u32 %v218_v46, 8 }
  0xe2   : > { %vm244_vm3 = vcmp.lt.s32.totalorder %v5904_v10, 3  ;;  %v5958_v34 = vmul.f32 %v5599_v16, %v180_v35  ;;  %vm243_vm4 = vcmp.lt.s32.totalorder %v5904_v10, 2  ;;  %v254_v46 = vsel %vm242_vm0, %v5929_v37, %v235_v28 }
  0xe3   : > { %v2816_v48 = vsel %vm2814_vm12, %v5912_v43, %v7877_v26  ;;  %vm623_vm2 = vcmp.lt.s32.totalorder %v622_v22, 0  ;;  %v624_v41 = vsub.s32 0, %v622_v22  ;;  %v252_v31 = vsel %vm244_vm3, %v235_v28, %v251_v54 }
  0xe4   : > { %v2820_v5 = vsel %vm2813_vm14, %v2816_v48, %v2819_v8  ;;  %v253_v49 = vsel %vm243_vm4, %v250_v19, %v252_v31  ;;  %v255_v50 = vsel %vm245_vm1, %v241_v20, 1326507024  ;;  %v259_v63 = vand.u32 65535, %v5950_v32 }
  0xe5   : > { %v5954_v61 = vsel %vm1128_vm11, nan, %v2820_v5  ;;  %v625_v21 = vsel %vm623_vm2, %v624_v41, %v622_v22  ;;  %v256_v29 = vsel %vm244_vm3, %v238_v17, %v255_v50  ;;  %v678_v0 = vand.u32 2139095040, %v5958_v34 }
  0xe6   : > { %7949 = vst [vmem:[#allocation6_spill] sm:$0xff] %v5954_v61  ;;  %v626_v47 = vclz %v625_v21  ;;  %v257_v13 = vsel %vm243_vm4, %v254_v46, %v256_v29  ;;  %v283_v3 = vand.u32 65535, %v253_v49  ;;  %v284_v4 = vshrl.u32 %v253_v49, 16 }
  0xe7   : > { %v260_v57 = vshrl.u32 %v5950_v32, 16  ;;  %v261_v24 = vand.u32 65535, %v257_v13  ;;  %v262_v15 = vshrl.u32 %v257_v13, 16  ;;  %v614_v8 = vadd.s32 %v5888_v30, %v5886_v14 }
  0xe8   : > { %v5206_v51 = vadd.s32 4294967294, %v626_v47  ;;  %v679_v54 = vshrl.u32 %v678_v0, 23  ;;  %v286_v21 = vmul.u32 %v284_v4, %v259_v63  ;;  %v226_v31 = vshrl.u32 %v7904_v36, %v5901_v45 }
  0xe9   : > { %v264_v48 = vmul.u32 %v262_v15, %v259_v63  ;;  %v265_v41 = vmul.u32 %v261_v24, %v260_v57  ;;  %v287_v47 = vmul.u32 %v283_v3, %v260_v57  ;;  %v247_v49 = vsel %vm245_vm1, %v235_v28, 2102212464 }
  0xea   : > { %vm5207_vm5 = vcmp.lt.s32.totalorder %v5206_v51, 0  ;;  %v263_v46 = vmul.u32 %v261_v24, %v259_v63  ;;  %v285_v30 = vmul.u32 %v283_v3, %v259_v63  ;;  %v289_v29 = vshll.u32 %v286_v21, 16 }
  0xeb   : > { %v629_v6 = vsel %vm5207_vm5, 0, %v5206_v51  ;;  %v267_v50 = vshll.u32 %v264_v48, 16  ;;  %v269_v13 = vshll.u32 %v265_v41, 16  ;;  %v268_v3 = vshrl.u32 %v264_v48, 16 }
  0xec   : > { %v630_v20 = vsub.s32 32, %v629_v6  ;;  %v634_v17 = vsub.s32 4294967266, %v629_v6  ;;  %v631_v35 = vshll.u32 %v622_v22, %v629_v6  ;;  %v266_v22 = vmul.u32 %v262_v15, %v260_v57 }
  0xed   : > { %vm271_vm6 = vc.u32 %v263_v46, %v267_v50  ;;  %v273_v0 = vadd.s32 %v267_v50, %v263_v46  ;;  %vm293_vm8 = vc.u32 %v285_v30, %v289_v29  ;;  %v295_v45 = vadd.s32 %v289_v29, %v285_v30 }
  0xee   : > { %v632_v5 = vshrl.u32 %v614_v8, %v630_v20  ;;  %v635_v19 = vadd.s32 127, %v634_v17  ;;  %v272_v8 = vsel %vm271_vm6, 1, %v7900_v2  ;;  %v288_v20 = vmul.u32 %v284_v4, %v260_v57 }
  0xef   : > { %v291_v17 = vshll.u32 %v287_v47, 16  ;;  %v274_v1 = vadd.s32 %v272_v8, %v266_v22  ;;  %vm275_vm7 = vc.u32 %v273_v0, %v269_v13  ;;  %v294_v63 = vsel %vm293_vm8, 1, %v7900_v2 }
  0xf0   : > { %v633_v51 = vor.u32 %v632_v5, %v631_v35  ;;  %v636_v14 = vshll.u32 %v635_v19, 23  ;;  %v276_v35 = vsel %vm275_vm7, 1, %v7900_v2  ;;  %v296_v5 = vadd.s32 %v294_v63, %v288_v20 }
  0xf1   : > { %v278_v15 = vadd.s32 %v276_v35, %v274_v1  ;;  %vm297_vm9 = vc.u32 %v295_v45, %v291_v17  ;;  %v644_v46 = vsub.s32 4, %v5914_v56  ;;  %v5208_v57 = vadd.s32 4294967169, %v679_v54 }
  0xf2   : > { %v637_v6 = vor.u32 4788187, %v636_v14  ;;  %v640_v24 = vcvt.s32.f32 %v633_v51  ;;  %v298_v4 = vsel %vm297_vm9, 1, %v7900_v2  ;;  %v270_v50 = vshrl.u32 %v265_v41, 16 }
  0xf3   : > { %v279_v14 = vadd.s32 %v278_v15, %v268_v3  ;;  %v290_v22 = vshrl.u32 %v286_v21, 16  ;;  %v300_v30 = vadd.s32 %v298_v4, %v296_v5  ;;  %v246_v51 = vsel %vm242_vm0, %v226_v31, %v5927_v23 }
  0xf4   : > { %v638_v28 = vand.u32 2147483647, %v637_v6  ;;  %v248_v1 = vsel %vm244_vm3, %v5929_v37, %v247_v49  ;;  %v685_v48 = vadd.s32 1, %v5208_v57  ;;  %vm522_vm10 = vcmp.lt.s32.totalorder %v5707_v59, 0 }
  0xf5   : > { %v5995_v13 = vadd.s32 %v279_v14, %v270_v50  ;;  %v292_v0 = vshrl.u32 %v287_v47, 16  ;;  %v301_v54 = vadd.s32 %v300_v30, %v290_v22  ;;  %vm521_vm12 = vcmp.le.f32.partialorder %v520_v60, 0.7853982 }
  0xf6   : > { %v641_v19 = vmul.f32 %v640_v24, %v638_v28  ;;  %v5999_v21 = vadd.s32 %v295_v45, %v291_v17  ;;  %vm686_vm13 = vcmp.gt.s32.totalorder %v685_v48, 0  ;;  %v645_v23 = vsel %vm522_vm10, %v644_v46, %v5914_v56 }
  0xf7   : > { %v249_v37 = vsel %vm243_vm4, %v246_v51, %v248_v1  ;;  %v302_v49 = vadd.s32 %v301_v54, %v292_v0  ;;  %v687_v47 = vsel %vm686_vm13, %v685_v48, 0  ;;  %v7883_v60 = vand.u32 2147483647, %v5958_v34  ;;  %v170_v1 = vpop.permute.xlu0 %169 }
  0xf8   : > { %v642_v29 = vxor.u32 2147483648, %v641_v19  ;;  %vm305_vm14 = vc.u32 %v5995_v13, %v5999_v21  ;;  %v689_v20 = vand.u32 31, %v687_v47  ;;  %v6008_v17 = vsel %vm521_vm12, 0, %v645_v23 }
  0xf9   : > { %v306_v8 = vadd.s32 1, %v302_v49  ;;  %v303_v56 = vmul.u32 %v5950_v32, %v249_v37  ;;  %v2350_v15 = vand.u32 3, %v6008_v17  ;;  %v682_v4 = vand.u32 8388607, %v7883_v60 }
  0xfa   : > { %v643_v41 = vsel %vm522_vm10, %v642_v29, %v641_v19  ;;  %v690_v35 = vsub.s32 32, %v689_v20  ;;  %v692_v57 = vshll.u32 %v7904_v36, %v689_v20  ;;  %v701_v14 = vshll.u32 %v7891_v42, %v689_v20 }
  0xfb   : > { %v646_v31 = vsel %vm521_vm12, %v5707_v59, %v643_v41  ;;  %v307_v24 = vsel %vm305_vm14, %v306_v8, %v302_v49  ;;  %v6020_v51 = vshrl.u32 %v687_v47, 5  ;;  %v695_v48 = vshll.u32 %v7896_v38, %v689_v20 }
  0xfc   : > { %v648_v6 = vmul.f32 %v646_v31, %v646_v31  ;;  %v308_v3 = vadd.s32 %v307_v24, %v303_v56  ;;  %v693_v50 = vshrl.u32 %v7896_v38, %v690_v35  ;;  %v702_v32 = vshrl.u32 %v7889_v44, %v690_v35 }
  0xfd   : > { %v696_v0 = vshrl.u32 %v7893_v40, %v690_v35  ;;  %v698_v54 = vshll.u32 %v7893_v40, %v689_v20  ;;  %v699_v41 = vshrl.u32 %v7891_v42, %v690_v35  ;;  %vm2351_vm0 = vcmp.lt.s32.totalorder %v2350_v15, 2 }
  0xfe   : > { %v649_v45 = vmul.f32 -0.001358992, %v648_v6  ;;  %v656_v28 = vmul.f32 -0.00019511016, %v648_v6  ;;  %v309_v46 = vadd.s32 536870912, %v308_v3  ;;  %vm2355_vm1 = vcmp.eq.s32.totalorder %v2350_v15, 2 }
  0xff   : > { %vm663_vm2 = vweird.f32 %v5707_v59  ;;  %v683_v8 = vor.u32 8388608, %v682_v4  ;;  %v694_v47 = vor.u32 %v693_v50, %v692_v57  ;;  %vm710_vm3 = vcmp.lt.s32.totalorder %v6020_v51, 4 }
 0x100   : > { %v650_v10 = vadd.f32 0.041655596, %v649_v45  ;;  %v657_v63 = vadd.f32 0.008332121, %v656_v28  ;;  %v6018_v29 = vshrl.u32 %v309_v46, 30  ;;  %v703_v45 = vor.u32 %v702_v32, %v701_v14 }
 0x101   : > { %v6029_v28 = vmul.f32 %v5599_v16, %v170_v1  ;;  %vm707_vm5 = vcmp.lt.s32.totalorder %v6020_v51, 1  ;;  %vm709_vm6 = vcmp.lt.s32.totalorder %v6020_v51, 3  ;;  %v6049_v32 = vshll.u32 %v683_v8, 8 }
 0x102   : > { %v651_v5 = vmul.f32 %v650_v10, %v648_v6  ;;  %v658_v19 = vmul.f32 %v657_v63, %v648_v6  ;;  %v311_v49 = vshll.u32 %v6018_v29, 30  ;;  %v697_v63 = vor.u32 %v696_v0, %v695_v48 }
 0x103   : > { %v368_v50 = vand.u32 2139095040, %v6029_v28  ;;  %vm2352_vm7 = vcmp.eq.s32.totalorder %v2350_v15, 0  ;;  %vm708_vm8 = vcmp.lt.s32.totalorder %v6020_v51, 2  ;;  %v724_v8 = vand.u32 65535, %v6049_v32 }
 0x104   : > { %v652_v22 = vadd.f32 -0.4999988, %v651_v5  ;;  %v659_v30 = vadd.f32 -0.16666654, %v658_v19  ;;  %v312_v10 = vsub.s32 %v308_v3, %v311_v49  ;;  %v704_v5 = vshll.u32 %v7889_v44, %v689_v20 }
 0x105   : > { %v705_v19 = vshrl.u32 %v7884_v53, %v690_v35  ;;  %v716_v3 = vsel %vm710_vm3, %v703_v45, 920167782  ;;  %v715_v0 = vsel %vm707_vm5, %v694_v47, %v697_v63  ;;  %v334_v49 = vsub.s32 4, %v6018_v29 }
 0x106   : > { %v653_v23 = vmul.f32 %v652_v22, %v648_v6  ;;  %v660_v37 = vmul.f32 %v659_v30, %v648_v6  ;;  %v700_v6 = vor.u32 %v699_v41, %v698_v54  ;;  %vm313_vm4 = vcmp.lt.s32.totalorder %v312_v10, 0 }
 0x107   : > { %v314_v57 = vsub.s32 0, %v312_v10  ;;  %v304_v22 = vadd.s32 %v5999_v21, %v5995_v13  ;;  %v706_v1 = vor.u32 %v705_v19, %v704_v5  ;;  %v369_v13 = vshrl.u32 %v368_v50, 23 }
 0x108   : > { %v6031_v56 = vadd.f32 1.0, %v653_v23  ;;  %v661_v24 = vadd.f32 1.0, %v660_v37  ;;  %v717_v54 = vsel %vm709_vm6, %v700_v6, %v716_v3  ;;  %v691_v37 = vshrl.u32 %v7904_v36, %v690_v35 }
 0x109   : > { %v315_v20 = vsel %vm313_vm4, %v314_v57, %v312_v10  ;;  %v718_v5 = vsel %vm708_vm8, %v715_v0, %v717_v54  ;;  %v719_v15 = vsel %vm707_vm5, %v697_v63, %v700_v6  ;;  %v720_v35 = vsel %vm710_vm3, %v706_v1, 1326507024 }
 0x10a   : > { %v6036_v46 = vmul.f32 %v661_v24, %v646_v31  ;;  %v7880_v4 = vxor.u32 2147483648, %v6031_v56  ;;  %v316_v30 = vclz %v315_v20  ;;  %v725_v24 = vshrl.u32 %v6049_v32, 16 }
 0x10b   : > { %v721_v57 = vsel %vm709_vm6, %v703_v45, %v720_v35  ;;  %v748_v3 = vand.u32 65535, %v718_v5  ;;  %v749_v50 = vshrl.u32 %v718_v5, 16  ;;  %v712_v0 = vsel %vm710_vm3, %v700_v6, 2102212464 }
 0x10c   : > { %v7881_v14 = vxor.u32 2147483648, %v6036_v46  ;;  %v2357_v31 = vsel %vm2355_vm1, %v7880_v4, %v6036_v46  ;;  %v5200_v23 = vadd.s32 4294967294, %v316_v30  ;;  %v711_v30 = vsel %vm707_vm5, %v691_v37, %v694_v47 }
 0x10d   : > { %v751_v1 = vmul.u32 %v749_v50, %v724_v8  ;;  %v752_v45 = vmul.u32 %v748_v3, %v725_v24  ;;  %v750_v4 = vmul.u32 %v748_v3, %v724_v8  ;;  %v713_v47 = vsel %vm709_vm6, %v697_v63, %v712_v0 }
 0x10e   : > { %v2354_v48 = vsel %vm2352_vm7, %v6031_v56, %v7881_v14  ;;  %vm5201_vm9 = vcmp.lt.s32.totalorder %v5200_v23, 0  ;;  %v753_v60 = vmul.u32 %v749_v50, %v725_v24  ;;  %vm211_vm1 = vcmp.le.f32.partialorder %v210_v25, 0.7853982 }
 0x10f   : > { %v2358_v41 = vsel %vm2351_vm0, %v2354_v48, %v2357_v31  ;;  %v319_v19 = vsel %vm5201_vm9, 0, %v5200_v23  ;;  %v722_v48 = vsel %vm708_vm8, %v719_v15, %v721_v57  ;;  %v754_v37 = vshll.u32 %v751_v1, 16 }
 0x110   : > { %v6065_v21 = vsel %vm663_vm2, nan, %v2358_v41  ;;  %v320_v31 = vsub.s32 32, %v319_v19  ;;  %v324_v20 = vsub.s32 4294967266, %v319_v19  ;;  %v726_v54 = vand.u32 65535, %v722_v48 }
 0x111   : > { %7950 = vst [vmem:[#allocation7_spill] sm:$0xff] %v6065_v21  ;;  %v727_v41 = vshrl.u32 %v722_v48, 16  ;;  %v321_v23 = vshll.u32 %v312_v10, %v319_v19  ;;  %v755_v10 = vshrl.u32 %v751_v1, 16  ;;  %vm758_vm12 = vc.u32 %v750_v4, %v754_v37 }
 0x112   : > { %v322_v26 = vshrl.u32 %v304_v22, %v320_v31  ;;  %v325_v12 = vadd.s32 127, %v324_v20  ;;  %v728_v35 = vmul.u32 %v726_v54, %v724_v8  ;;  %v730_v52 = vmul.u32 %v726_v54, %v725_v24 }
 0x113   : > { %v729_v5 = vmul.u32 %v727_v41, %v724_v8  ;;  %v731_v15 = vmul.u32 %v727_v41, %v725_v24  ;;  %v756_v22 = vshll.u32 %v752_v45, 16  ;;  %v760_v31 = vadd.s32 %v754_v37, %v750_v4 }
 0x114   : > { %v323_v14 = vor.u32 %v322_v26, %v321_v23  ;;  %v326_v9 = vshll.u32 %v325_v12, 23  ;;  %v734_v6 = vshll.u32 %v730_v52, 16  ;;  %v759_v26 = vsel %vm758_vm12, 1, %v7900_v2 }
 0x115   : > { %v732_v57 = vshll.u32 %v729_v5, 16  ;;  %v733_v53 = vshrl.u32 %v729_v5, 16  ;;  %v761_v3 = vadd.s32 %v759_v26, %v753_v60  ;;  %vm762_vm14 = vc.u32 %v760_v31, %v756_v22 }
 0x116   : > { %v327_v48 = vor.u32 4788187, %v326_v9  ;;  %v330_v8 = vcvt.s32.f32 %v323_v14  ;;  %v735_v24 = vshrl.u32 %v730_v52, 16  ;;  %v763_v50 = vsel %vm762_vm14, 1, %v7900_v2 }
 0x117   : > { %vm736_vm10 = vc.u32 %v728_v35, %v732_v57  ;;  %v738_v19 = vadd.s32 %v732_v57, %v728_v35  ;;  %v757_v41 = vshrl.u32 %v752_v45, 16  ;;  %v765_v1 = vadd.s32 %v763_v50, %v761_v3 }
 0x118   : > { %v328_v20 = vand.u32 2147483647, %v327_v48  ;;  %v737_v12 = vsel %vm736_vm10, 1, %v7900_v2  ;;  %v5202_v4 = vadd.s32 4294967169, %v369_v13  ;;  %vm212_vm0 = vcmp.lt.s32.totalorder %v5820_v33, 0 }
 0x119   : > { %v739_v63 = vadd.s32 %v737_v12, %v731_v15  ;;  %vm740_vm13 = vc.u32 %v738_v19, %v734_v6  ;;  %v714_v23 = vsel %vm708_vm8, %v711_v30, %v713_v47  ;;  %v6093_v5 = vadd.s32 %v760_v31, %v756_v22 }
 0x11a   : > { %v331_v0 = vmul.f32 %v330_v8, %v328_v20  ;;  %v741_v9 = vsel %vm740_vm13, 1, %v7900_v2  ;;  %v766_v60 = vadd.s32 %v765_v1, %v755_v10  ;;  %v375_v37 = vadd.s32 1, %v5202_v4 }
 0x11b   : > { %v743_v54 = vadd.s32 %v741_v9, %v739_v63  ;;  %v335_v45 = vsel %vm212_vm0, %v334_v49, %v6018_v29  ;;  %v7888_v26 = vand.u32 2147483647, %v6029_v28  ;;  %vm353_vm13 = vweird.f32 %v5820_v33 }
 0x11c   : > { %v332_v14 = vxor.u32 2147483648, %v331_v0  ;;  %v767_v57 = vadd.s32 %v766_v60, %v757_v41  ;;  %vm376_vm3 = vcmp.gt.s32.totalorder %v375_v37, 0  ;;  %v6106_v25 = vsel %vm211_vm1, 0, %v335_v45 }
 0x11d   : > { %v744_v35 = vadd.s32 %v743_v54, %v733_v53  ;;  %v768_v53 = vmul.u32 %v6049_v32, %v714_v23  ;;  %v377_v30 = vsel %vm376_vm3, %v375_v37, 0  ;;  %v2042_v20 = vand.u32 3, %v6106_v25 }
 0x11e   : > { %v333_v52 = vsel %vm212_vm0, %v332_v14, %v331_v0  ;;  %v771_v47 = vadd.s32 1, %v767_v57  ;;  %v379_v10 = vand.u32 31, %v377_v30  ;;  %v6118_v50 = vshrl.u32 %v377_v30, 5 }
 0x11f   : > { %v336_v13 = vsel %vm211_vm1, %v5820_v33, %v333_v52  ;;  %v6101_v15 = vadd.s32 %v744_v35, %v735_v24  ;;  %vm2044_vm5 = vcmp.eq.s32.totalorder %v2042_v20, 0  ;;  %v372_v60 = vand.u32 8388607, %v7888_v26 }
 0x120   : > { %v338_v51 = vmul.f32 %v336_v13, %v336_v13  ;;  %v6108_v31 = vsub.s32 32, %v379_v10  ;;  %v391_v1 = vshll.u32 %v7891_v42, %v379_v10  ;;  %v382_v35 = vshll.u32 %v7904_v36, %v379_v10 }
 0x121   : > { %vm770_vm4 = vc.u32 %v6101_v15, %v6093_v5  ;;  %v385_v37 = vshll.u32 %v7896_v38, %v379_v10  ;;  %v388_v52 = vshll.u32 %v7893_v40, %v379_v10  ;;  %vm400_vm6 = vcmp.lt.s32.totalorder %v6118_v50, 4 }
 0x122   : > { %v339_v6 = vmul.f32 -0.001358992, %v338_v51  ;;  %v346_v48 = vmul.f32 -0.00019511016, %v338_v51  ;;  %v772_v29 = vsel %vm770_vm4, %v771_v47, %v767_v57  ;;  %v392_v63 = vshrl.u32 %v7889_v44, %v6108_v31 }
 0x123   : > { %v773_v19 = vadd.s32 %v772_v29, %v768_v53  ;;  %v383_v9 = vshrl.u32 %v7896_v38, %v6108_v31  ;;  %v386_v54 = vshrl.u32 %v7893_v40, %v6108_v31  ;;  %v389_v41 = vshrl.u32 %v7891_v42, %v6108_v31 }
 0x124   : > { %v340_v49 = vadd.f32 0.041655596, %v339_v6  ;;  %v347_v22 = vadd.f32 0.008332121, %v346_v48  ;;  %v393_v45 = vor.u32 %v392_v63, %v391_v1  ;;  %v7951_v48 = vmov 1326507024  }
 0x125   : > { %v774_v12 = vadd.s32 536870912, %v773_v19  ;;  %v6133_v47 = vor.u32 %v383_v9, %v382_v35  ;;  %v6135_v6 = vor.u32 %v386_v54, %v385_v37  ;;  %v395_v29 = vshrl.u32 %v7951_v48, %v6108_v31 }
 0x126   : > { %v341_v8 = vmul.f32 %v340_v49, %v338_v51  ;;  %v348_v32 = vmul.f32 %v347_v22, %v338_v51  ;;  %v200_v49 = vpop.permute.xlu1 %199  ;;  %vm2047_vm8 = vcmp.eq.s32.totalorder %v2042_v20, 2  ;;  %v406_v63 = vsel %vm400_vm6, %v393_v45, 920167782 }
 0x127   : > { %v6114_v24 = vshrl.u32 %v774_v12, 30  ;;  %v394_v12 = vshll.u32 %v7889_v44, %v379_v10  ;;  %vm397_vm9 = vcmp.lt.s32.totalorder %v6118_v50, 1  ;;  %vm399_vm10 = vcmp.lt.s32.totalorder %v6118_v50, 3 }
 0x128   : > { %v342_v3 = vadd.f32 -0.4999988, %v341_v8  ;;  %v349_v0 = vadd.f32 -0.16666654, %v348_v32  ;;  %vm2043_vm12 = vcmp.lt.s32.totalorder %v2042_v20, 2  ;;  %v405_v1 = vsel %vm397_vm9, %v6133_v47, %v6135_v6 }
 0x129   : > { %v776_v23 = vshll.u32 %v6114_v24, 30  ;;  %vm398_vm14 = vcmp.lt.s32.totalorder %v6118_v50, 2  ;;  %v381_v26 = vshrl.u32 %v7904_v36, %v6108_v31  ;;  %vm677_vm1 = vcmp.lt.s32.totalorder %v5958_v34, 0 }
 0x12a   : > { %v343_v4 = vmul.f32 %v342_v3, %v338_v51  ;;  %v350_v14 = vmul.f32 %v349_v0, %v338_v51  ;;  %v6137_v51 = vor.u32 %v389_v41, %v388_v52  ;;  %v396_v41 = vor.u32 %v395_v29, %v394_v12 }
 0x12b   : > { %v777_v30 = vsub.s32 %v773_v19, %v776_v23  ;;  %v373_v19 = vor.u32 8388608, %v372_v60  ;;  %v769_v29 = vadd.s32 %v6093_v5, %v6101_v15  ;;  %v7984_v18 = vxor.u32 2147483648, %v5923_v7 }
 0x12c   : > { %v6131_v57 = vadd.f32 1.0, %v343_v4  ;;  %v351_v53 = vadd.f32 1.0, %v350_v14  ;;  %v407_v4 = vsel %vm399_vm10, %v6137_v51, %v406_v63  ;;  %v409_v52 = vsel %vm397_vm9, %v6135_v6, %v6137_v51 }
 0x12d   : > { %vm778_vm7 = vcmp.lt.s32.totalorder %v777_v30, 0  ;;  %v779_v32 = vsub.s32 0, %v777_v30  ;;  %v6169_v35 = vshll.u32 %v373_v19, 8  ;;  %v408_v37 = vsel %vm398_vm14, %v405_v1, %v407_v4 }
 0x12e   : > { %v6142_v22 = vmul.f32 %v351_v53, %v336_v13  ;;  %v7886_v8 = vxor.u32 2147483648, %v6131_v57  ;;  %v6153_v13 = vmul.f32 %v5599_v16, %v200_v49  ;;  %v410_v53 = vsel %vm400_vm6, %v396_v41, 1326507024 }
 0x12f   : > { %v780_v9 = vsel %vm778_vm7, %v779_v32, %v777_v30  ;;  %v411_v32 = vsel %vm399_vm10, %v393_v45, %v410_v53  ;;  %v438_v19 = vand.u32 65535, %v408_v37  ;;  %v439_v41 = vshrl.u32 %v408_v37, 16 }
 0x130   : > { %v7887_v3 = vxor.u32 2147483648, %v6142_v22  ;;  %v2049_v0 = vsel %vm2047_vm8, %v7886_v8, %v6142_v22  ;;  %v781_v54 = vclz %v780_v9  ;;  %v1298_v20 = vand.u32 2139095040, %v6153_v13 }
 0x131   : > { %v414_v9 = vand.u32 65535, %v6169_v35 }
 0x132   : > { %v2046_v10 = vsel %vm2044_vm5, %v6131_v57, %v7887_v3  ;;  %v5209_v23 = vadd.s32 4294967294, %v781_v54  ;;  %v415_v54 = vshrl.u32 %v6169_v35, 16  ;;  %v1299_v45 = vshrl.u32 %v1298_v20, 23 }
 0x133   : > { %v2050_v14 = vsel %vm2043_vm12, %v2046_v10, %v2049_v0  ;;  %v412_v0 = vsel %vm398_vm14, %v409_v52, %v411_v32  ;;  %v441_v52 = vmul.u32 %v439_v41, %v414_v9 }
 0x134   : > { %v6173_v60 = vsel %vm353_vm13, nan, %v2050_v14  ;;  %vm5210_vm0 = vcmp.lt.s32.totalorder %v5209_v23, 0  ;;  %v416_v10 = vand.u32 65535, %v412_v0  ;;  %v417_v1 = vshrl.u32 %v412_v0, 16 }
 0x135   : > { %7952 = vst [vmem:[#allocation8_spill] sm:$0xff] %v6173_v60  ;;  %v784_v49 = vsel %vm5210_vm0, 0, %v5209_v23  ;;  %v442_v8 = vmul.u32 %v438_v19, %v415_v54  ;;  %v440_v0 = vmul.u32 %v438_v19, %v414_v9  ;;  %v402_v19 = vsel %vm400_vm6, %v6137_v51, 2102212464 }
 0x136   : > { %v785_v12 = vsub.s32 32, %v784_v49  ;;  %v789_v63 = vsub.s32 4294967266, %v784_v49  ;;  %v786_v4 = vshll.u32 %v777_v30, %v784_v49  ;;  %v419_v15 = vmul.u32 %v417_v1, %v414_v9 }
 0x137   : > { %v420_v23 = vmul.u32 %v416_v10, %v415_v54  ;;  %v418_v32 = vmul.u32 %v416_v10, %v414_v9  ;;  %v421_v44 = vmul.u32 %v417_v1, %v415_v54  ;;  %v7953_v30 = vand.u32 2147483647, %v5958_v34 }
 0x138   : > { %v787_v14 = vshrl.u32 %v769_v29, %v785_v12  ;;  %v790_v5 = vadd.s32 127, %v789_v63  ;;  %v422_v42 = vshll.u32 %v419_v15, 16  ;;  %v443_v49 = vmul.u32 %v439_v41, %v415_v54 }
 0x139   : > { %vm6198_vm3 = vcmp.le.f32.partialorder %v7953_v30, 0.7853982  ;;  %v424_v20 = vshll.u32 %v420_v23, 16  ;;  %v444_v12 = vshll.u32 %v441_v52, 16  ;;  %v5220_v40 = vadd.s32 4294967169, %v1299_v45 }
 0x13a   : > { %v788_v53 = vor.u32 %v787_v14, %v786_v4  ;;  %v791_v3 = vshll.u32 %v790_v5, 23  ;;  %vm426_vm4 = vc.u32 %v418_v32, %v422_v42  ;;  %v428_v31 = vadd.s32 %v422_v42, %v418_v32 }
 0x13b   : > { %v446_v4 = vshll.u32 %v442_v8, 16  ;;  %v427_v10 = vsel %vm426_vm4, 1, %v7900_v2  ;;  %vm448_vm5 = vc.u32 %v440_v0, %v444_v12  ;;  %v450_v1 = vadd.s32 %v444_v12, %v440_v0 }
 0x13c   : > { %v792_v29 = vor.u32 4788187, %v791_v3  ;;  %v795_v63 = vcvt.s32.f32 %v788_v53  ;;  %v429_v9 = vadd.s32 %v427_v10, %v421_v44  ;;  %vm430_vm7 = vc.u32 %v428_v31, %v424_v20 }
 0x13d   : > { %v449_v3 = vsel %vm448_vm5, 1, %v7900_v2  ;;  %v431_v54 = vsel %vm430_vm7, 1, %v7900_v2  ;;  %vm452_vm8 = vc.u32 %v450_v1, %v446_v4  ;;  %v799_v42 = vsub.s32 4, %v6114_v24 }
 0x13e   : > { %v793_v14 = vand.u32 2147483647, %v792_v29  ;;  %v451_v41 = vadd.s32 %v449_v3, %v443_v49  ;;  %v423_v53 = vshrl.u32 %v419_v15, 16  ;;  %v433_v32 = vadd.s32 %v431_v54, %v429_v9 }
 0x13f   : > { %v453_v30 = vsel %vm452_vm8, 1, %v7900_v2  ;;  %v445_v29 = vshrl.u32 %v441_v52, 16  ;;  %v401_v44 = vsel %vm397_vm9, %v381_v26, %v6133_v47  ;;  %v403_v51 = vsel %vm399_vm10, %v6135_v6, %v402_v19 }
 0x140   : > { %v796_v5 = vmul.f32 %v795_v63, %v793_v14  ;;  %v455_v12 = vadd.s32 %v453_v30, %v451_v41  ;;  %v425_v20 = vshrl.u32 %v420_v23, 16  ;;  %v434_v49 = vadd.s32 %v433_v32, %v423_v53 }
 0x141   : > { %v447_v63 = vshrl.u32 %v442_v8, 16  ;;  %v1305_v14 = vadd.s32 1, %v5220_v40  ;;  %v800_v45 = vsel %vm677_vm1, %v799_v42, %v6114_v24  ;;  %v6226_v52 = vadd.s32 %v450_v1, %v446_v4 }
 0x142   : > { %v797_v0 = vxor.u32 2147483648, %v796_v5  ;;  %v456_v31 = vadd.s32 %v455_v12, %v445_v29  ;;  %v6224_v47 = vadd.s32 %v434_v49, %v425_v20  ;;  %v404_v23 = vsel %vm398_vm14, %v401_v44, %v403_v51 }
 0x143   : > { %vm1306_vm6 = vcmp.gt.s32.totalorder %v1305_v14, 0  ;;  %v7895_v40 = vand.u32 2147483647, %v6153_v13  ;;  %v6235_v8 = vsel %vm6198_vm3, 0, %v800_v45  ;;  %v458_v1 = vmul.u32 %v6169_v35, %v404_v23 }
 0x144   : > { %v798_v15 = vsel %vm677_vm1, %v797_v0, %v796_v5  ;;  %v457_v10 = vadd.s32 %v456_v31, %v447_v63  ;;  %vm460_vm9 = vc.u32 %v6224_v47, %v6226_v52  ;;  %v1307_v24 = vsel %vm1306_vm6, %v1305_v14, 0 }
 0x145   : > { %v801_v26 = vsel %vm6198_vm3, %v5958_v34, %v798_v15  ;;  %v1309_v54 = vand.u32 31, %v1307_v24  ;;  %v2504_v41 = vand.u32 3, %v6235_v8  ;;  %v1302_v30 = vand.u32 8388607, %v7895_v40 }
 0x146   : > { %v803_v6 = vmul.f32 %v801_v26, %v801_v26  ;;  %v461_v4 = vadd.s32 1, %v457_v10  ;;  %v6245_v49 = vshrl.u32 %v1307_v24, 5  ;;  %v7956_v14 = vmov 2131351028  }
 0x147   : > { %v6241_v12 = vsub.s32 32, %v1309_v54  ;;  %vm2506_vm10 = vcmp.eq.s32.totalorder %v2504_v41, 0  ;;  %vm2505_vm12 = vcmp.lt.s32.totalorder %v2504_v41, 2  ;;  %v1303_v20 = vor.u32 8388608, %v1302_v30 }
 0x148   : > { %v804_v19 = vmul.f32 -0.001358992, %v803_v6  ;;  %v811_v9 = vmul.f32 -0.00019511016, %v803_v6  ;;  %v462_v5 = vsel %vm460_vm9, %v461_v4, %v457_v10  ;;  %v1312_v63 = vshll.u32 %v7904_v36, %v1309_v54 }
 0x149   : > { %v463_v42 = vadd.s32 %v462_v5, %v458_v1  ;;  %v1315_v31 = vshll.u32 %v7896_v38, %v1309_v54  ;;  %v1318_v45 = vshll.u32 %v7956_v14, %v1309_v54  ;;  %v1316_v24 = vshrl.u32 %v7956_v14, %v6241_v12 }
 0x14a   : > { %v805_v3 = vadd.f32 0.041655596, %v804_v19  ;;  %v812_v50 = vadd.f32 0.008332121, %v811_v9  ;;  %v1313_v19 = vshrl.u32 %v7896_v38, %v6241_v12  ;;  %v7957_v9 = vmov 2102212464   ;;  %v195_v38 = vpop.permute.xlu0 %194 }
 0x14b   : > { %v464_v37 = vadd.s32 536870912, %v463_v42  ;;  %v1319_v1 = vshrl.u32 %v7957_v9, %v6241_v12  ;;  %v1325_v30 = vshrl.u32 %v7951_v48, %v6241_v12  ;;  %vm2509_vm14 = vcmp.eq.s32.totalorder %v2504_v41, 2 }
 0x14c   : > { %v806_v53 = vmul.f32 %v805_v3, %v803_v6  ;;  %v813_v32 = vmul.f32 %v812_v50, %v803_v6  ;;  %v7958_v3 = vmov 920167782   ;;  %vm1327_vm1 = vcmp.lt.s32.totalorder %v6245_v49, 1 }
 0x14d   : > { %v6243_v44 = vshrl.u32 %v464_v37, 30  ;;  %v1322_v50 = vshrl.u32 %v7958_v3, %v6241_v12  ;;  %v6268_v37 = vshll.u32 %v1303_v20, 8  ;;  %vm1330_vm3 = vcmp.lt.s32.totalorder %v6245_v49, 4 }
 0x14e   : > { %v807_v0 = vadd.f32 -0.4999988, %v806_v53  ;;  %v814_v29 = vadd.f32 -0.16666654, %v813_v32  ;;  %v1324_v32 = vshll.u32 %v7958_v3, %v1309_v54  ;;  %vm818_vm4 = vweird.f32 %v5958_v34 }
 0x14f   : > { %v466_v15 = vshll.u32 %v6243_v44, 30  ;;  %vm1329_vm5 = vcmp.lt.s32.totalorder %v6245_v49, 3  ;;  %vm1328_vm7 = vcmp.lt.s32.totalorder %v6245_v49, 2  ;;  %vm367_vm6 = vcmp.lt.s32.totalorder %v6029_v28, 0 }
 0x150   : > { %v808_v35 = vmul.f32 %v807_v0, %v803_v6  ;;  %v815_v51 = vmul.f32 %v814_v29, %v803_v6  ;;  %v1321_v6 = vshll.u32 %v7957_v9, %v1309_v54  ;;  %v6277_v54 = vor.u32 %v1316_v24, %v1315_v31 }
 0x151   : > { %v467_v4 = vsub.s32 %v463_v42, %v466_v15  ;;  %v1326_v40 = vor.u32 %v1325_v30, %v1324_v32  ;;  %v6302_v24 = vmul.f32 %v5599_v16, %v195_v38  ;;  %v1344_v32 = vand.u32 65535, %v6268_v37 }
 0x152   : > { %v6251_v23 = vadd.f32 1.0, %v808_v35  ;;  %v816_v10 = vadd.f32 1.0, %v815_v51  ;;  %v1320_v51 = vor.u32 %v1319_v1, %v1318_v45  ;;  %v1323_v15 = vor.u32 %v1322_v50, %v1321_v6 }
 0x153   : > { %vm468_vm0 = vcmp.lt.s32.totalorder %v467_v4, 0  ;;  %v469_v42 = vsub.s32 0, %v467_v4  ;;  %v1340_v50 = vsel %vm1330_vm3, %v1326_v40, 1326507024  ;;  %v459_v16 = vadd.s32 %v6226_v52, %v6224_v47 }
 0x154   : > { %v6262_v5 = vmul.f32 %v816_v10, %v801_v26  ;;  %v7898_v53 = vxor.u32 2147483648, %v6251_v23  ;;  %v6274_v26 = vor.u32 %v1313_v19, %v1312_v63  ;;  %v1336_v6 = vsel %vm1330_vm3, %v1323_v15, 920167782 }
 0x155   : > { %v470_v35 = vsel %vm468_vm0, %v469_v42, %v467_v4  ;;  %v1339_v41 = vsel %vm1327_vm1, %v6277_v54, %v1320_v51  ;;  %v1337_v1 = vsel %vm1329_vm5, %v1320_v51, %v1336_v6  ;;  %v7982_v34 = vxor.u32 2147483648, %v5832_v58 }
 0x156   : > { %v7899_v0 = vxor.u32 2147483648, %v6262_v5  ;;  %v2511_v29 = vsel %vm2509_vm14, %v7898_v53, %v6262_v5  ;;  %v471_v10 = vclz %v470_v35  ;;  %v1335_v19 = vsel %vm1327_vm1, %v6274_v26, %v6277_v54 }
 0x157   : > { %v1338_v42 = vsel %vm1328_vm7, %v1335_v19, %v1337_v1  ;;  %v1345_v35 = vshrl.u32 %v6268_v37, 16  ;;  %v1332_v1 = vsel %vm1330_vm3, %v1320_v51, 2102212464 }
 0x158   : > { %v2508_v20 = vsel %vm2506_vm10, %v6251_v23, %v7899_v0  ;;  %v5203_v45 = vadd.s32 4294967294, %v471_v10  ;;  %v1368_v6 = vand.u32 65535, %v1338_v42 }
 0x159   : > { %v2512_v63 = vsel %vm2505_vm12, %v2508_v20, %v2511_v29  ;;  %v1341_v29 = vsel %vm1329_vm5, %v1323_v15, %v1340_v50  ;;  %v1311_v15 = vshrl.u32 %v7904_v36, %v6241_v12 }
 0x15a   : > { %v6289_v31 = vsel %vm818_vm4, nan, %v2512_v63  ;;  %vm5204_vm8 = vcmp.lt.s32.totalorder %v5203_v45, 0  ;;  %v1342_v10 = vsel %vm1328_vm7, %v1339_v41, %v1341_v29  ;;  %v1143_v41 = vand.u32 2139095040, %v6302_v24 }
 0x15b   : > { %7959 = vst [vmem:[#allocation9_spill] sm:$0xff] %v6289_v31  ;;  %v474_v30 = vsel %vm5204_vm8, 0, %v5203_v45  ;;  %v1346_v40 = vand.u32 65535, %v1342_v10  ;;  %v1347_v63 = vshrl.u32 %v1342_v10, 16  ;;  %v1369_v45 = vshrl.u32 %v1338_v42, 16 }
 0x15c   : > { %v475_v38 = vsub.s32 32, %v474_v30  ;;  %v479_v20 = vsub.s32 4294967266, %v474_v30  ;;  %v476_v53 = vshll.u32 %v467_v4, %v474_v30  ;;  %v1370_v29 = vmul.u32 %v1368_v6, %v1344_v32 }
 0x15d   : > { %v1348_v50 = vmul.u32 %v1346_v40, %v1344_v32  ;;  %v1349_v47 = vmul.u32 %v1347_v63, %v1344_v32  ;;  %v1350_v52 = vmul.u32 %v1346_v40, %v1345_v35  ;;  %v1371_v39 = vmul.u32 %v1369_v45, %v1344_v32 }
 0x15e   : > { %v477_v0 = vshrl.u32 %v459_v16, %v475_v38  ;;  %v480_v19 = vadd.s32 127, %v479_v20  ;;  %v1351_v42 = vmul.u32 %v1347_v63, %v1345_v35  ;;  %v7960_v16 = vand.u32 2147483647, %v6029_v28 }
 0x15f   : > { %v1352_v4 = vshll.u32 %v1349_v47, 16  ;;  %v1354_v30 = vshll.u32 %v1350_v52, 16  ;;  %v1353_v38 = vshrl.u32 %v1349_v47, 16  ;;  %v1355_v20 = vshrl.u32 %v1350_v52, 16 }
 0x160   : > { %v478_v2 = vor.u32 %v477_v0, %v476_v53  ;;  %v481_v61 = vshll.u32 %v480_v19, 23  ;;  %vm6326_vm9 = vcmp.le.f32.partialorder %v7960_v16, 0.7853982  ;;  %v1372_v53 = vmul.u32 %v1368_v6, %v1345_v35 }
 0x161   : > { %vm1356_vm10 = vc.u32 %v1348_v50, %v1352_v4  ;;  %v1358_v0 = vadd.s32 %v1352_v4, %v1348_v50  ;;  %v1373_v10 = vmul.u32 %v1369_v45, %v1345_v35  ;;  %v1374_v40 = vshll.u32 %v1371_v39, 16 }
 0x162   : > { %v482_v51 = vor.u32 4788187, %v481_v61  ;;  %v485_v36 = vcvt.s32.f32 %v478_v2  ;;  %v7963_v63 = vmov 0   ;;  %v1376_v21 = vshll.u32 %v1372_v53, 16 }
 0x163   : > { %v1357_v31 = vsel %vm1356_vm10, 1, %v7963_v63  ;;  %vm1360_vm12 = vc.u32 %v1358_v0, %v1354_v30  ;;  %vm1378_vm14 = vc.u32 %v1370_v29, %v1374_v40  ;;  %v1380_v16 = vadd.s32 %v1374_v40, %v1370_v29 }
 0x164   : > { %v483_v19 = vand.u32 2147483647, %v482_v51  ;;  %v1359_v32 = vadd.s32 %v1357_v31, %v1351_v42  ;;  %v1361_v27 = vsel %vm1360_vm12, 1, %v7963_v63  ;;  %v1379_v61 = vsel %vm1378_vm14, 1, %v7963_v63 }
 0x165   : > { %v1144_v47 = vshrl.u32 %v1143_v41, 23  ;;  %v1375_v52 = vshrl.u32 %v1371_v39, 16  ;;  %v1381_v50 = vadd.s32 %v1379_v61, %v1373_v10  ;;  %vm1382_vm0 = vc.u32 %v1380_v16, %v1376_v21 }
 0x166   : > { %v486_v60 = vmul.f32 %v485_v36, %v483_v19  ;;  %v1363_v6 = vadd.s32 %v1361_v27, %v1359_v32  ;;  %v489_v2 = vsub.s32 4, %v6243_v44  ;;  %v1383_v45 = vsel %vm1382_vm0, 1, %v7963_v63 }
 0x167   : > { %v5217_v4 = vadd.s32 4294967169, %v1144_v47  ;;  %v1331_v31 = vsel %vm1327_vm1, %v1311_v15, %v6274_v26  ;;  %v1377_v42 = vshrl.u32 %v1372_v53, 16  ;;  %v1385_v30 = vadd.s32 %v1383_v45, %v1381_v50 }
 0x168   : > { %v487_v35 = vxor.u32 2147483648, %v486_v60  ;;  %v1364_v36 = vadd.s32 %v1363_v6, %v1353_v38  ;;  %v1333_v27 = vsel %vm1329_vm5, %v6277_v54, %v1332_v1  ;;  %v6343_v39 = vadd.s32 %v1380_v16, %v1376_v21 }
 0x169   : > { %v1150_v29 = vadd.s32 1, %v5217_v4  ;;  %v1386_v26 = vadd.s32 %v1385_v30, %v1375_v52  ;;  %v490_v15 = vsel %vm367_vm6, %v489_v2, %v6243_v44  ;;  %v7910_v61 = vand.u32 2147483647, %v6302_v24 }
 0x16a   : > { %v488_v41 = vsel %vm367_vm6, %v487_v35, %v486_v60  ;;  %v6348_v0 = vadd.s32 %v1364_v36, %v1355_v20  ;;  %v1334_v60 = vsel %vm1328_vm7, %v1331_v31, %v1333_v27  ;;  %v6359_v20 = vsel %vm6326_vm9, 0, %v490_v15 }
 0x16b   : > { %v491_v51 = vsel %vm6326_vm9, %v6029_v28, %v488_v41  ;;  %vm1151_vm1 = vcmp.gt.s32.totalorder %v1150_v29, 0  ;;  %v1387_v54 = vadd.s32 %v1386_v26, %v1377_v42  ;;  %v1388_v32 = vmul.u32 %v6268_v37, %v1334_v60 }
 0x16c   : > { %v493_v38 = vmul.f32 %v491_v51, %v491_v51  ;;  %v1152_v21 = vsel %vm1151_vm1, %v1150_v29, 0  ;;  %vm1390_vm3 = vc.u32 %v6348_v0, %v6343_v39  ;;  %v2196_v50 = vand.u32 3, %v6359_v20 }
 0x16d   : > { %v1154_v10 = vand.u32 31, %v1152_v21  ;;  %v1391_v40 = vadd.s32 1, %v1387_v54  ;;  %v1147_v4 = vand.u32 8388607, %v7910_v61  ;;  %v6370_v37 = vshrl.u32 %v1152_v21, 5 }
 0x16e   : > { %v494_v1 = vmul.f32 -0.001358992, %v493_v38  ;;  %v501_v53 = vmul.f32 -0.00019511016, %v493_v38  ;;  %v7964_v31 = vmov 2475754826   ;;  %vm508_vm5 = vweird.f32 %v6029_v28 }
 0x16f   : > { %v6362_v16 = vsub.s32 32, %v1154_v10  ;;  %v1392_v49 = vsel %vm1390_vm3, %v1391_v40, %v1387_v54  ;;  %v1166_v42 = vshll.u32 %v7957_v9, %v1154_v10  ;;  %v7965_v26 = vmov 683565275  }
 0x170   : > { %v495_v19 = vadd.f32 0.041655596, %v494_v1  ;;  %v502_v44 = vadd.f32 0.008332121, %v501_v53  ;;  %v1393_v52 = vadd.s32 %v1392_v49, %v1388_v32  ;;  %v1157_v15 = vshll.u32 %v7965_v26, %v1154_v10 }
 0x171   : > { %v1167_v45 = vshrl.u32 %v7958_v3, %v6362_v16  ;;  %v1158_v36 = vshrl.u32 %v7964_v31, %v6362_v16  ;;  %v1161_v29 = vshrl.u32 %v7956_v14, %v6362_v16  ;;  %v1160_v60 = vshll.u32 %v7964_v31, %v1154_v10 }
 0x172   : > { %v496_v47 = vmul.f32 %v495_v19, %v493_v38  ;;  %v503_v6 = vmul.f32 %v502_v44, %v493_v38  ;;  %v1394_v12 = vadd.s32 536870912, %v1393_v52  ;;  %v1164_v54 = vshrl.u32 %v7957_v9, %v6362_v16 }
 0x173   : > { %v1170_v21 = vshrl.u32 %v7951_v48, %v6362_v16  ;;  %v1168_v40 = vor.u32 %v1167_v45, %v1166_v42  ;;  %v1148_v19 = vor.u32 8388608, %v1147_v4  ;;  %v6389_v44 = vor.u32 %v1158_v36, %v1157_v15 }
 0x174   : > { %v497_v35 = vadd.f32 -0.4999988, %v496_v47  ;;  %v504_v2 = vadd.f32 -0.16666654, %v503_v6  ;;  %v6375_v27 = vshrl.u32 %v1394_v12, 30  ;;  %v1163_v32 = vshll.u32 %v7956_v14, %v1154_v10 }
 0x175   : > { %v1169_v49 = vshll.u32 %v7958_v3, %v1154_v10  ;;  %vm2201_vm7 = vcmp.eq.s32.totalorder %v2196_v50, 2  ;;  %vm1175_vm8 = vcmp.lt.s32.totalorder %v6370_v37, 4  ;;  %vm2197_vm9 = vcmp.lt.s32.totalorder %v2196_v50, 2 }
 0x176   : > { %v498_v30 = vmul.f32 %v497_v35, %v493_v38  ;;  %v505_v41 = vmul.f32 %v504_v2, %v493_v38  ;;  %v1396_v53 = vshll.u32 %v6375_v27, 30  ;;  %v6396_v35 = vor.u32 %v1161_v29, %v1160_v60 }
 0x177   : > { %v1165_v48 = vor.u32 %v1164_v54, %v1163_v32  ;;  %v1171_v2 = vor.u32 %v1170_v21, %v1169_v49  ;;  %v1181_v3 = vsel %vm1175_vm8, %v1168_v40, 920167782  ;;  %vm2198_vm10 = vcmp.eq.s32.totalorder %v2196_v50, 0 }
 0x178   : > { %v6386_v1 = vadd.f32 1.0, %v498_v30  ;;  %v506_v38 = vadd.f32 1.0, %v505_v41  ;;  %v1397_v6 = vsub.s32 %v1393_v52, %v1396_v53  ;;  %vm1172_vm12 = vcmp.lt.s32.totalorder %v6370_v37, 1 }
 0x179   : > { %vm1174_vm14 = vcmp.lt.s32.totalorder %v6370_v37, 3  ;;  %v1180_v52 = vsel %vm1172_vm12, %v6389_v44, %v6396_v35  ;;  %v6414_v45 = vshll.u32 %v1148_v19, 8  ;;  %v1185_v36 = vsel %vm1175_vm8, %v1171_v2, 1326507024 }
 0x17a   : > { %v6393_v47 = vmul.f32 %v506_v38, %v491_v51  ;;  %v7911_v9 = vxor.u32 2147483648, %v6386_v1  ;;  %vm1398_vm6 = vcmp.lt.s32.totalorder %v1397_v6, 0  ;;  %v1399_v51 = vsub.s32 0, %v1397_v6 }
 0x17b   : > { %v1182_v50 = vsel %vm1174_vm14, %v1165_v48, %v1181_v3  ;;  %v1184_v41 = vsel %vm1172_vm12, %v6396_v35, %v1165_v48  ;;  %vm1173_vm0 = vcmp.lt.s32.totalorder %v6370_v37, 2  ;;  %v1186_v60 = vsel %vm1174_vm14, %v1168_v40, %v1185_v36 }
 0x17c   : > { %v7912_v12 = vxor.u32 2147483648, %v6393_v47  ;;  %v2203_v14 = vsel %vm2201_vm7, %v7911_v9, %v6393_v47  ;;  %v1400_v31 = vsel %vm1398_vm6, %v1399_v51, %v1397_v6  ;;  %v1183_v15 = vsel %vm1173_vm0, %v1180_v52, %v1182_v50 }
 0x17d   : > { %v1401_v30 = vclz %v1400_v31  ;;  %v1187_v54 = vsel %vm1173_vm0, %v1184_v41, %v1186_v60  ;;  %v1189_v21 = vand.u32 65535, %v6414_v45  ;;  %v1213_v38 = vand.u32 65535, %v1183_v15 }
 0x17e   : > { %v2200_v10 = vsel %vm2198_vm10, %v6386_v1, %v7912_v12  ;;  %v1214_v53 = vshrl.u32 %v1183_v15, 16  ;;  %v1190_v19 = vshrl.u32 %v6414_v45, 16  ;;  %v1191_v32 = vand.u32 65535, %v1187_v54 }
 0x17f   : > { %v2204_v4 = vsel %vm2197_vm9, %v2200_v10, %v2203_v14  ;;  %v5221_v29 = vadd.s32 4294967294, %v1401_v30  ;;  %v1192_v49 = vshrl.u32 %v1187_v54, 16  ;;  %v1389_v3 = vadd.s32 %v6343_v39, %v6348_v0 }
 0x180   : > { %v6422_v42 = vsel %vm508_vm5, nan, %v2204_v4  ;;  %v1216_v14 = vmul.u32 %v1214_v53, %v1189_v21  ;;  %v1217_v40 = vmul.u32 %v1213_v38, %v1190_v19  ;;  %v1156_v52 = vshrl.u32 %v7965_v26, %v6362_v16 }
 0x181   : > { %7966 = vst [vmem:[#allocation10_spill] sm:$0xff] %v6422_v42  ;;  %vm5222_vm1 = vcmp.lt.s32.totalorder %v5221_v29, 0  ;;  %v1194_v4 = vmul.u32 %v1192_v49, %v1189_v21  ;;  %v1195_v31 = vmul.u32 %v1191_v32, %v1190_v19  ;;  %v1215_v50 = vmul.u32 %v1213_v38, %v1189_v21 }
 0x182   : > { %v1404_v2 = vsel %vm5222_vm1, 0, %v5221_v29  ;;  %v1219_v15 = vshll.u32 %v1216_v14, 16  ;;  %v1193_v60 = vmul.u32 %v1191_v32, %v1189_v21  ;;  %v1196_v54 = vmul.u32 %v1192_v49, %v1190_v19 }
 0x183   : > { %v1405_v51 = vsub.s32 32, %v1404_v2  ;;  %v1409_v10 = vsub.s32 4294967266, %v1404_v2  ;;  %v1406_v36 = vshll.u32 %v1397_v6, %v1404_v2  ;;  %v1197_v29 = vshll.u32 %v1194_v4, 16 }
 0x184   : > { %v1218_v61 = vmul.u32 %v1214_v53, %v1190_v19  ;;  %v1199_v39 = vshll.u32 %v1195_v31, 16  ;;  %v1221_v0 = vshll.u32 %v1217_v40, 16  ;;  %vm1223_vm7 = vc.u32 %v1215_v50, %v1219_v15 }
 0x185   : > { %v1407_v30 = vshrl.u32 %v1389_v3, %v1405_v51  ;;  %v1410_v41 = vadd.s32 127, %v1409_v10  ;;  %vm1201_vm3 = vc.u32 %v1193_v60, %v1197_v29  ;;  %v1203_v42 = vadd.s32 %v1197_v29, %v1193_v60 }
 0x186   : > { %v1225_v43 = vadd.s32 %v1219_v15, %v1215_v50  ;;  %v1177_v26 = vsel %vm1175_vm8, %v1165_v48, 2102212464  ;;  %v1202_v6 = vsel %vm1201_vm3, 1, %v7963_v63  ;;  %v1224_v38 = vsel %vm1223_vm7, 1, %v7963_v63 }
 0x187   : > { %v1408_v9 = vor.u32 %v1407_v30, %v1406_v36  ;;  %v1411_v12 = vshll.u32 %v1410_v41, 23  ;;  %v1204_v21 = vadd.s32 %v1202_v6, %v1196_v54  ;;  %vm1205_vm6 = vc.u32 %v1203_v42, %v1199_v39 }
 0x188   : > { %v1226_v32 = vadd.s32 %v1224_v38, %v1218_v61  ;;  %vm1227_vm9 = vc.u32 %v1225_v43, %v1221_v0  ;;  %v1206_v49 = vsel %vm1205_vm6, 1, %v7963_v63  ;;  %v1198_v3 = vshrl.u32 %v1194_v4, 16 }
 0x189   : > { %v1412_v16 = vor.u32 4788187, %v1411_v12  ;;  %v1415_v19 = vcvt.s32.f32 %v1408_v9  ;;  %v1228_v2 = vsel %vm1227_vm9, 1, %v7963_v63  ;;  %v1208_v51 = vadd.s32 %v1206_v49, %v1204_v21 }
 0x18a   : > { %v1220_v12 = vshrl.u32 %v1216_v14, 16  ;;  %v1230_v10 = vadd.s32 %v1228_v2, %v1226_v32  ;;  %v354_v48 = vadd.s32 3, %v6106_v25  ;;  %v1176_v36 = vsel %vm1172_vm12, %v1156_v52, %v6389_v44 }
 0x18b   : > { %v1413_v53 = vand.u32 2147483647, %v1412_v16  ;;  %v1178_v61 = vsel %vm1174_vm14, %v6396_v35, %v1177_v26  ;;  %v1200_v9 = vshrl.u32 %v1195_v31, 16  ;;  %v1209_v42 = vadd.s32 %v1208_v51, %v1198_v3 }
 0x18c   : > { %v1222_v30 = vshrl.u32 %v1217_v40, 16  ;;  %v1231_v41 = vadd.s32 %v1230_v10, %v1220_v12  ;;  %vm1297_vm8 = vcmp.lt.s32.totalorder %v6153_v13, 0  ;;  %v1179_v14 = vsel %vm1173_vm0, %v1176_v36, %v1178_v61 }
 0x18d   : > { %v1416_v50 = vmul.f32 %v1415_v19, %v1413_v53  ;;  %v6456_v25 = vadd.s32 %v1209_v42, %v1200_v9  ;;  %v6458_v4 = vadd.s32 %v1225_v43, %v1221_v0  ;;  %v355_v44 = vand.u32 3, %v354_v48 }
 0x18e   : > { %v1232_v15 = vadd.s32 %v1231_v41, %v1222_v30  ;;  %v7967_v52 = vand.u32 2147483647, %v6153_v13  ;;  %v1233_v60 = vmul.u32 %v6414_v45, %v1179_v14  ;;  %v1419_v54 = vsub.s32 4, %v6375_v27 }
 0x18f   : > { %v1417_v63 = vxor.u32 2147483648, %v1416_v50  ;;  %vm1235_vm12 = vc.u32 %v6456_v25, %v6458_v4  ;;  %vm357_vm14 = vcmp.eq.s32.totalorder %v355_v44, 0  ;;  %v7970_v26 = vxor.u32 2147483648, %v6142_v22 }
 0x190   : > { %vm6462_vm10 = vcmp.le.f32.partialorder %v7967_v52, 0.7853982  ;;  %v1236_v43 = vadd.s32 1, %v1232_v15  ;;  %v7971_v53 = vlaneseq  ;;  %vm356_vm0 = vcmp.lt.s32.totalorder %v355_v44, 2 }
 0x191   : > { %v1418_v40 = vsel %vm1297_vm8, %v1417_v63, %v1416_v50  ;;  %v359_v6 = vsel %vm357_vm14, %v6131_v57, %v7970_v26  ;;  %vm360_vm1 = vcmp.eq.s32.totalorder %v355_v44, 2  ;;  %v1420_v45 = vsel %vm1297_vm8, %v1419_v54, %v6375_v27 }
 0x192   : > { %v1421_v37 = vsel %vm6462_vm10, %v6153_v13, %v1418_v40  ;;  %v1237_v29 = vsel %vm1235_vm12, %v1236_v43, %v1232_v15  ;;  %v1452_v19 = vshrl.u32 %v7971_v53, 7  ;;  %v7972_v49 = vxor.u32 2147483648, %v6131_v57 }
 0x193   : > { %v1423_v31 = vmul.f32 %v1421_v37, %v1421_v37  ;;  %v1238_v16 = vadd.s32 %v1237_v29, %v1233_v60  ;;  %v6489_v48 = vsel %vm6462_vm10, 0, %v1420_v45  ;;  %v509_v42 = vadd.s32 3, %v6359_v20 }
 0x194   : > { %v362_v2 = vsel %vm360_vm1, %v7972_v49, %v6142_v22  ;;  %5351 = vset.pattern.permute.xlu1 %v1452_v19  ;;  %5350 = vset.pattern.permute.xlu0 %v1452_v19  ;;  %v3120_v30 = vand.u32 3, %v6489_v48  ;;  %vm1438_vm6 = vweird.f32 %v6153_v13  ;;  %v1234_v26 = vadd.s32 %v6458_v4, %v6456_v25 }
 0x195   : > { %v1424_v39 = vmul.f32 -0.001358992, %v1423_v31  ;;  %v1431_v0 = vmul.f32 -0.00019511016, %v1423_v31  ;;  %v1239_v32 = vadd.s32 536870912, %v1238_v16  ;;  %v363_v10 = vsel %vm356_vm0, %v359_v6, %v362_v2  ;;  %5349 = vset.pattern.permute.xlu2 %v1452_v19 }
 0x196   : > { %v6494_v57 = vsel %vm353_vm13, nan, %v363_v10  ;;  %v510_v43 = vand.u32 3, %v509_v42  ;;  %vm3125_vm13 = vcmp.eq.s32.totalorder %v3120_v30, 2  ;;  %vm3122_vm7 = vcmp.eq.s32.totalorder %v3120_v30, 0 }
 0x197   : > { %v1425_v38 = vadd.f32 0.041655596, %v1424_v39  ;;  %v1432_v21 = vadd.f32 0.008332121, %v1431_v0  ;;  %v6485_v12 = vshrl.u32 %v1239_v32, 30  ;;  %v1464_v15 = vperm.slane %v6494_v57, 2 }
 0x198   : > { %v1457_v44 = vperm.slane %v6494_v57, 1  ;;  %v1450_v40 = vperm.slane %v6494_v57, 0  ;;  %vm3121_vm9 = vcmp.lt.s32.totalorder %v3120_v30, 2  ;;  %vm512_vm8 = vcmp.eq.s32.totalorder %v510_v43, 0 }
 0x199   : > { %v1426_v3 = vmul.f32 %v1425_v38, %v1423_v31  ;;  %v1433_v51 = vmul.f32 %v1432_v21, %v1423_v31  ;;  %v1241_v27 = vshll.u32 %v6485_v12, 30  ;;  %vm515_vm10 = vcmp.eq.s32.totalorder %v510_v43, 2 }
 0x19a   : > { %v7973_v39 = vxor.u32 2147483648, %v6393_v47  ;;  %v1478_v32 = vperm.slane %v6494_v57, 4  ;;  %v1492_v53 = vperm.slane %v6494_v57, 6  ;;  %vm511_vm14 = vcmp.lt.s32.totalorder %v510_v43, 2 }
 0x19b   : > { %v1427_v50 = vadd.f32 -0.4999988, %v1426_v3  ;;  %v1434_v36 = vadd.f32 -0.16666654, %v1433_v51  ;;  %v1242_v9 = vsub.s32 %v1238_v16, %v1241_v27  ;;  %v7974_v19 = vxor.u32 2147483648, %v6386_v1 }
 0x19c   : > { %1469 = vperm.xlu1 %5351, %v1464_v15   ;;  %1462 = vperm.xlu0 %5350, %v1457_v44   ;;  %v514_v0 = vsel %vm512_vm8, %v6386_v1, %v7973_v39  ;;  %v1471_v49 = vperm.slane %v6494_v57, 3  ;;  %v1499_v1 = vperm.slane %v6494_v57, 7  ;;  %vm1142_vm0 = vcmp.lt.s32.totalorder %v6302_v24, 0 }
 0x19d   : > { %v1428_v22 = vmul.f32 %v1427_v50, %v1423_v31  ;;  %v1435_v61 = vmul.f32 %v1434_v36, %v1423_v31  ;;  %vm1243_vm3 = vcmp.lt.s32.totalorder %v1242_v9, 0  ;;  %v1244_v14 = vsub.s32 0, %v1242_v9  ;;  %1455 = vperm.xlu2 %5349, %v1450_v40  }
 0x19e   : > { %v517_v45 = vsel %vm515_vm10, %v7974_v19, %v6393_v47  ;;  %v664_v28 = vadd.s32 3, %v6008_v17  ;;  %v7975_v30 = vand.u32 2147483647, %v6302_v24  ;;  %v1264_v15 = vsub.s32 4, %v6485_v12 }
 0x19f   : > { %v6498_v41 = vadd.f32 1.0, %v1428_v22  ;;  %v1436_v63 = vadd.f32 1.0, %v1435_v61  ;;  %v1245_v35 = vsel %vm1243_vm3, %v1244_v14, %v1242_v9  ;;  %v518_v2 = vsel %vm511_vm14, %v514_v0, %v517_v45 }
 0x1a0   : > { %v1246_v20 = vclz %v1245_v35  ;;  %v6531_v50 = vsel %vm508_vm5, nan, %v518_v2  ;;  %v1485_v61 = vperm.slane %v6494_v57, 5  ;;  %vm6540_vm5 = vcmp.le.f32.partialorder %v7975_v30, 0.7853982 }
 0x1a1   : > { %v6502_v52 = vmul.f32 %v1436_v63, %v1421_v37  ;;  %v1446_v33 = vxor.u32 2147483648, %v6498_v41  ;;  %v1513_v47 = vperm.slane %v6531_v50, 1  ;;  %v1520_v35 = vperm.slane %v6531_v50, 2 }
 0x1a2   : > { %v5218_v37 = vadd.s32 4294967294, %v1246_v20  ;;  %v1534_v17 = vperm.slane %v6531_v50, 4  ;;  %v1506_v40 = vperm.slane %v6531_v50, 0  ;;  %v665_v43 = vand.u32 3, %v664_v28 }
 0x1a3   : > { %v1443_v31 = vxor.u32 2147483648, %v6502_v52  ;;  %v3127_v60 = vsel %vm3125_vm13, %v1446_v33, %v6502_v52  ;;  %v7979_v19 = vxor.u32 2147483648, %v6031_v56  ;;  %vm1283_vm8 = vweird.f32 %v6302_v24 }
 0x1a4   : > { %vm5219_vm12 = vcmp.lt.s32.totalorder %v5218_v37, 0  ;;  %1483 = vperm.xlu1 %5351, %v1478_v32   ;;  %1497 = vperm.xlu0 %5350, %v1492_v53   ;;  %vm667_vm1 = vcmp.eq.s32.totalorder %v665_v43, 0  ;;  %vm670_vm3 = vcmp.eq.s32.totalorder %v665_v43, 2  ;;  %v1541_v53 = vperm.slane %v6531_v50, 5 }
 0x1a5   : > { %v3124_v54 = vsel %vm3122_vm7, %v6498_v41, %v1443_v31  ;;  %v1249_v6 = vsel %vm5219_vm12, 0, %v5218_v37  ;;  %1476 = vperm.xlu2 %5349, %v1471_v49   ;;  %v1265_v37 = vsel %vm1142_vm0, %v1264_v15, %v6485_v12  ;;  %v1555_v12 = vperm.slane %v6531_v50, 7 }
 0x1a6   : > { %v3128_v29 = vsel %vm3121_vm9, %v3124_v54, %v3127_v60  ;;  %v1250_v38 = vsub.s32 32, %v1249_v6  ;;  %v1254_v21 = vsub.s32 4294967266, %v1249_v6  ;;  %v1251_v3 = vshll.u32 %v1242_v9, %v1249_v6 }
 0x1a7   : > { %v6519_v16 = vsel %vm1438_vm6, nan, %v3128_v29  ;;  %vm666_vm13 = vcmp.lt.s32.totalorder %v665_v43, 2  ;;  %v672_v45 = vsel %vm670_vm3, %v7979_v19, %v6036_v46  ;;  %v1527_v49 = vperm.slane %v6531_v50, 3 }
 0x1a8   : > { %v1252_v51 = vshrl.u32 %v1234_v26, %v1250_v38  ;;  %v1255_v10 = vadd.s32 127, %v1254_v21  ;;  %v7978_v26 = vxor.u32 2147483648, %v6036_v46  ;;  %v6561_v38 = vsel %vm6540_vm5, 0, %v1265_v37 }
 0x1a9   : > { %v7980_v30 = vxor.u32 2147483648, %v6262_v5 }
 0x1aa   : > { %v1253_v25 = vor.u32 %v1252_v51, %v1251_v3  ;;  %v1256_v4 = vshll.u32 %v1255_v10, 23  ;;  %v669_v6 = vsel %vm667_vm1, %v6031_v56, %v7978_v26  ;;  %v2966_v10 = vand.u32 3, %v6561_v38 }
 0x1ab   : > { %v673_v2 = vsel %vm666_vm13, %v669_v6, %v672_v45  ;;  %v1129_v45 = vadd.s32 3, %v5893_v11 }
 0x1ac   : > { %v1257_v36 = vor.u32 4788187, %v1256_v4  ;;  %v1260_v22 = vcvt.s32.f32 %v1253_v25  ;;  %1504 = vperm.xlu1 %5351, %v1499_v1   ;;  %1518 = vperm.xlu0 %5350, %v1513_v47   ;;  %vm2971_vm7 = vcmp.eq.s32.totalorder %v2966_v10, 2  ;;  %vm2968_vm9 = vcmp.eq.s32.totalorder %v2966_v10, 0 }
 0x1ad   : > { %1490 = vperm.xlu2 %5349, %v1485_v61  }
 0x1ae   : > { %v1258_v27 = vand.u32 2147483647, %v1257_v36  ;;  %v674_v36 = vsel %vm663_vm2, nan, %v673_v2  ;;  %vm2967_vm2 = vcmp.lt.s32.totalorder %v2966_v10, 2 }
 0x1af   : > { %v1562_v47 = vperm.slane %v674_v36, 0  ;;  %v1576_v61 = vperm.slane %v674_v36, 2  ;;  %v1583_v63 = vperm.slane %v674_v36, 3 }
 0x1b0   : > { %v1261_v9 = vmul.f32 %v1260_v22, %v1258_v27  ;;  %v819_v27 = vadd.s32 3, %v6235_v8 }
 0x1b2   : > { %v1262_v42 = vxor.u32 2147483648, %v1261_v9  ;;  %v820_v59 = vand.u32 3, %v819_v27 }
 0x1b4   : > { %v1263_v14 = vsel %vm1142_vm0, %v1262_v42, %v1261_v9  ;;  %1525 = vperm.xlu1 %5351, %v1520_v35   ;;  %1539 = vperm.xlu0 %5350, %v1534_v17   ;;  %v1548_v9 = vperm.slane %v6531_v50, 6  ;;  %vm822_vm10 = vcmp.eq.s32.totalorder %v820_v59, 0  ;;  %vm825_vm12 = vcmp.eq.s32.totalorder %v820_v59, 2 }
 0x1b5   : > { %v1266_v57 = vsel %vm6540_vm5, %v6302_v24, %v1263_v14  ;;  %1511 = vperm.xlu2 %5349, %v1506_v40   ;;  %v824_v50 = vsel %vm822_vm10, %v6251_v23, %v7980_v30  ;;  %v1597_v14 = vperm.slane %v674_v36, 5  ;;  %vm821_vm14 = vcmp.lt.s32.totalorder %v820_v59, 2 }
 0x1b6   : > { %v1268_v44 = vmul.f32 %v1266_v57, %v1266_v57  ;;  %v1604_v40 = vperm.slane %v674_v36, 6 }
 0x1b8   : > { %v1269_v20 = vmul.f32 -0.001358992, %v1268_v44  ;;  %v1276_v60 = vmul.f32 -0.00019511016, %v1268_v44 }
 0x1ba   : > { %v1270_v54 = vadd.f32 0.041655596, %v1269_v20  ;;  %v1277_v29 = vadd.f32 0.008332121, %v1276_v60  ;;  %v1590_v20 = vperm.slane %v674_v36, 4  ;;  %v974_v60 = vadd.s32 3, %v5784_v55 }
 0x1bc   : > { %v1271_v39 = vmul.f32 %v1270_v54, %v1268_v44  ;;  %v1278_v0 = vmul.f32 %v1277_v29, %v1268_v44  ;;  %1546 = vperm.xlu1 %5351, %v1541_v53   ;;  %1560 = vperm.xlu0 %5350, %v1555_v12   ;;  %v975_v37 = vand.u32 3, %v974_v60 }
 0x1bd   : > { %1532 = vperm.xlu2 %5349, %v1527_v49  }
 0x1be   : > { %v1272_v21 = vadd.f32 -0.4999988, %v1271_v39  ;;  %v1279_v32 = vadd.f32 -0.16666654, %v1278_v0  ;;  %vm977_vm0 = vcmp.eq.s32.totalorder %v975_v37, 0  ;;  %vm980_vm5 = vcmp.eq.s32.totalorder %v975_v37, 2 }
 0x1bf   : > { %vm976_vm1 = vcmp.lt.s32.totalorder %v975_v37, 2  ;;  %v979_v29 = vsel %vm977_vm0, %v5829_v62, %v7982_v34  ;;  %v7983_v39 = vxor.u32 2147483648, %v5829_v62  ;;  %v1130_v62 = vand.u32 3, %v1129_v45 }
 0x1c0   : > { %v1273_v3 = vmul.f32 %v1272_v21, %v1268_v44  ;;  %v1280_v51 = vmul.f32 %v1279_v32, %v1268_v44  ;;  %v1569_v44 = vperm.slane %v674_v36, 1 }
 0x1c1   : > { %v982_v0 = vsel %vm980_vm5, %v7983_v39, %v5832_v58  ;;  %vm1135_vm3 = vcmp.eq.s32.totalorder %v1130_v62, 2 }
 0x1c2   : > { %v6570_v25 = vadd.f32 1.0, %v1273_v3  ;;  %v1281_v4 = vadd.f32 1.0, %v1280_v51  ;;  %v983_v21 = vsel %vm976_vm1, %v979_v29, %v982_v0  ;;  %v7985_v51 = vld [vmem:[#allocation5_spill] sm:$0xff] }
 0x1c3   : > { %v984_v32 = vsel %vm973_vm15, nan, %v983_v21  ;;  %vm1131_vm15 = vcmp.lt.s32.totalorder %v1130_v62, 2 }
 0x1c4   : > { %v6575_v56 = vmul.f32 %v1281_v4, %v1266_v57  ;;  %v1291_v46 = vxor.u32 2147483648, %v6570_v25  ;;  %1567 = vperm.xlu1 %5351, %v1562_v47   ;;  %1581 = vperm.xlu0 %5350, %v1576_v61   ;;  %v7981_v57 = vxor.u32 2147483648, %v6251_v23  ;;  %v1681_v12 = vperm.slane %v984_v32, 1  ;;  %v7988_v61 = vld [vmem:[#allocation8_spill] sm:$0xff] }
 0x1c5   : > { %1553 = vperm.xlu2 %5349, %v1548_v9   ;;  %v1688_v58 = vperm.slane %v984_v32, 2  ;;  %v1702_v49 = vperm.slane %v984_v32, 4  ;;  %v1674_v2 = vperm.slane %v984_v32, 0  ;;  %v7986_v4 = vxor.u32 2147483648, %v7985_v51 }
 0x1c6   : > { %v1288_v22 = vxor.u32 2147483648, %v6575_v56  ;;  %v2973_v1 = vsel %vm2971_vm7, %v1291_v46, %v6575_v56  ;;  %v827_v15 = vsel %vm825_vm12, %v7981_v57, %v6262_v5  ;;  %v1611_v5 = vperm.slane %v674_v36, 7 }
 0x1c7   : > { %v828_v35 = vsel %vm821_vm14, %v824_v50, %v827_v15  ;;  %v1137_v11 = vsel %vm1135_vm3, %v7986_v4, %v5923_v7  ;;  %v1709_v36 = vperm.slane %v984_v32, 5  ;;  %v1723_v27 = vperm.slane %v984_v32, 7 }
 0x1c8   : > { %v2970_v8 = vsel %vm2968_vm9, %v6570_v25, %v1288_v22  ;;  %v829_v17 = vsel %vm818_vm4, nan, %v828_v35  ;;  %vm1132_vm4 = vcmp.eq.s32.totalorder %v1130_v62, 0  ;;  %v1716_v50 = vperm.slane %v984_v32, 6 }
 0x1c9   : > { %v2974_v42 = vsel %vm2967_vm2, %v2970_v8, %v2973_v1  ;;  %v1618_v43 = vperm.slane %v829_v17, 0  ;;  %v1625_v54 = vperm.slane %v829_v17, 1  ;;  %v1639_v23 = vperm.slane %v829_v17, 3 }
 0x1ca   : > { %v6589_v28 = vsel %vm1283_vm8, nan, %v2974_v42  ;;  %v1646_v26 = vperm.slane %v829_v17, 4  ;;  %v1660_v55 = vperm.slane %v829_v17, 6  ;;  %v1632_v6 = vperm.slane %v829_v17, 2 }
 0x1cb   : > { %v1667_v53 = vperm.slane %v829_v17, 7  ;;  %v1653_v19 = vperm.slane %v829_v17, 5  ;;  %v1134_v10 = vsel %vm1132_vm4, %v7985_v51, %v7984_v18  ;;  %v1695_v1 = vperm.slane %v984_v32, 3 }
 0x1cc   : > { %1588 = vperm.xlu1 %5351, %v1583_v63   ;;  %1602 = vperm.xlu0 %5350, %v1597_v14   ;;  %v1138_v47 = vsel %vm1131_vm15, %v1134_v10, %v1137_v11  ;;  %v1284_v8 = vadd.s32 3, %v6561_v38 }
 0x1cd   : > { %1574 = vperm.xlu2 %5349, %v1569_v44   ;;  %v1139_v9 = vsel %vm1128_vm11, nan, %v1138_v47 }
 0x1ce   : > { %v1730_v42 = vperm.slane %v1139_v9, 0  ;;  %v1744_v30 = vperm.slane %v1139_v9, 2  ;;  %v1285_v63 = vand.u32 3, %v1284_v8  ;;  %v1751_v57 = vperm.slane %v1139_v9, 3 }
 0x1cf   : > { %v1765_v15 = vperm.slane %v1139_v9, 5  ;;  %v1737_v44 = vperm.slane %v1139_v9, 1  ;;  %v1758_v37 = vperm.slane %v1139_v9, 4  ;;  %v1779_v24 = vperm.slane %v1139_v9, 7 }
 0x1d0   : > { %vm1287_vm13 = vcmp.eq.s32.totalorder %v1285_v63, 0  ;;  %vm1290_vm7 = vcmp.eq.s32.totalorder %v1285_v63, 2  ;;  %vm1286_vm11 = vcmp.lt.s32.totalorder %v1285_v63, 2  ;;  %v3144_v8 = vperm.slane %v7988_v61, 2 }
 0x1d1   : > { %v1289_v14 = vsel %vm1287_vm13, %v6570_v25, %v1288_v22  ;;  %v1292_v38 = vsel %vm1290_vm7, %v1291_v46, %v6575_v56 }
 0x1d2   : > { %v1293_v35 = vsel %vm1286_vm11, %v1289_v14, %v1292_v38  ;;  %v3151_v14 = vperm.slane %v7988_v61, 3 }
 0x1d3   : > { %v1294_v22 = vsel %vm1283_vm8, nan, %v1293_v35 }
 0x1d4   : > { %1609 = vperm.xlu1 %5351, %v1604_v40   ;;  %1623 = vperm.xlu0 %5350, %v1618_v43   ;;  %v1786_v60 = vperm.slane %v1294_v22, 0  ;;  %v1800_v21 = vperm.slane %v1294_v22, 2  ;;  %v1835_v45 = vperm.slane %v1294_v22, 7 }
 0x1d5   : > { %1595 = vperm.xlu2 %5349, %v1590_v20   ;;  %v1772_v20 = vperm.slane %v1139_v9, 6  ;;  %v3130_v9 = vperm.slane %v7988_v61, 0 }
 0x1dc   : > { %1630 = vperm.xlu1 %5351, %v1625_v54   ;;  %1644 = vperm.xlu0 %5350, %v1639_v23   ;;  %v1439_v54 = vadd.s32 3, %v6489_v48  ;;  %v1793_v23 = vperm.slane %v1294_v22, 1  ;;  %v1814_v48 = vperm.slane %v1294_v22, 4 }
 0x1dd   : > { %1616 = vperm.xlu2 %5349, %v1611_v5   ;;  %v1807_v5 = vperm.slane %v1294_v22, 3 }
 0x1de   : > { %v1440_v34 = vand.u32 3, %v1439_v54 }
 0x1e0   : > { %vm1442_vm9 = vcmp.eq.s32.totalorder %v1440_v34, 0  ;;  %vm1445_vm2 = vcmp.eq.s32.totalorder %v1440_v34, 2  ;;  %vm1441_vm8 = vcmp.lt.s32.totalorder %v1440_v34, 2 }
 0x1e4   : > { %1651 = vperm.xlu1 %5351, %v1646_v26   ;;  %1665 = vperm.xlu0 %5350, %v1660_v55   ;;  %v1444_v26 = vsel %vm1442_vm9, %v6498_v41, %v1443_v31  ;;  %v1828_v55 = vperm.slane %v1294_v22, 6 }
 0x1e5   : > { %1637 = vperm.xlu2 %5349, %v1632_v6   ;;  %v1447_v6 = vsel %vm1445_vm2, %v1446_v33, %v6502_v52 }
 0x1e6   : > { %v1448_v32 = vsel %vm1441_vm8, %v1444_v26, %v1447_v6  ;;  %v3179_v26 = vperm.slane %v7988_v61, 7 }
 0x1e7   : > { %v1449_v31 = vsel %vm1438_vm6, nan, %v1448_v32  ;;  %vm4282_vm6 = vcmask 130048  }
 0x1e8   : > { %v1849_v62 = vperm.slane %v1449_v31, 1  ;;  %v1842_v18 = vperm.slane %v1449_v31, 0  ;;  %v1877_v4 = vperm.slane %v1449_v31, 5  ;;  %v1891_v11 = vperm.slane %v1449_v31, 7 }
 0x1ec   : > { %1672 = vperm.xlu1 %5351, %v1667_v53   ;;  %1686 = vperm.xlu0 %5350, %v1681_v12  }
 0x1ed   : > { %1658 = vperm.xlu2 %5349, %v1653_v19  }
 0x1f4   : > { %1693 = vperm.xlu1 %5351, %v1688_v58   ;;  %1707 = vperm.xlu0 %5350, %v1702_v49   ;;  %v1821_v58 = vperm.slane %v1294_v22, 5  ;;  %v1856_v49 = vperm.slane %v1449_v31, 2  ;;  %v3172_v22 = vperm.slane %v7988_v61, 6 }
 0x1f5   : > { %1679 = vperm.xlu2 %5349, %v1674_v2   ;;  %v1870_v2 = vperm.slane %v1449_v31, 4 }
 0x1f7   : > { %v6609_v3 = vpop.permute.xlu2 %1455 }
 0x1fc   : > { %1714 = vperm.xlu1 %5351, %v1709_v36   ;;  %1728 = vperm.xlu0 %5350, %v1723_v27   ;;  %v1863_v36 = vperm.slane %v1449_v31, 3 }
 0x1fd   : > { %1700 = vperm.xlu2 %5349, %v1695_v1  }
 0x1ff   : > { %v6619_v59 = vpop.permute.xlu2 %1476 }
 0x204   : > { %1735 = vperm.xlu1 %5351, %v1730_v42   ;;  %1749 = vperm.xlu0 %5350, %v1744_v30   ;;  %v1884_v42 = vperm.slane %v1449_v31, 6 }
 0x205   : > { %1721 = vperm.xlu2 %5349, %v1716_v50  }
 0x207   : > { %v6622_v7 = vpop.permute.xlu2 %1490 }
 0x20c   : > { %1756 = vperm.xlu1 %5351, %v1751_v57   ;;  %1770 = vperm.xlu0 %5350, %v1765_v15   ;;  %v3165_v57 = vperm.slane %v7988_v61, 5  ;;  %v3137_v15 = vperm.slane %v7988_v61, 1 }
 0x20d   : > { %1742 = vperm.xlu2 %5349, %v1737_v44  }
 0x20e   : > { %v6630_v17 = vpop.permute.xlu1 %1469  ;;  %v6632_v40 = vpop.permute.xlu0 %1462 }
 0x20f   : > { %v6636_v43 = vpop.permute.xlu2 %1511 }
 0x214   : > { %1777 = vperm.xlu1 %5351, %v1772_v20   ;;  %1791 = vperm.xlu0 %5350, %v1786_v60   ;;  %v7989_v20 = vld [vmem:[#allocation10_spill] sm:$0xff] }
 0x215   : > { %1763 = vperm.xlu2 %5349, %v1758_v37   ;;  %v3186_v60 = vperm.slane %v7989_v20, 0  ;;  %v3158_v37 = vperm.slane %v7988_v61, 4  ;;  %v3207_v34 = vperm.slane %v7989_v20, 3  ;;  %v3228_v32 = vperm.slane %v7989_v20, 6 }
 0x216   : > { %v6638_v25 = vpop.permute.xlu1 %1483  ;;  %v6640_v56 = vpop.permute.xlu0 %1497  ;;  %v3200_v31 = vperm.slane %v7989_v20, 2 }
 0x217   : > { %v6642_v46 = vpop.permute.xlu2 %1532 }
 0x21c   : > { %1798 = vperm.xlu1 %5351, %v1793_v23   ;;  %1812 = vperm.xlu0 %5350, %v1807_v5  }
 0x21d   : > { %1784 = vperm.xlu2 %5349, %v1779_v24   ;;  %v3193_v24 = vperm.slane %v7989_v20, 1 }
 0x21e   : > { %v6645_v29 = vpop.permute.xlu1 %1504  ;;  %v6647_v39 = vpop.permute.xlu0 %1518 }
 0x21f   : > { %v6649_v0 = vpop.permute.xlu2 %1553 }
 0x224   : > { %1819 = vperm.xlu1 %5351, %v1814_v48   ;;  %1833 = vperm.xlu0 %5350, %v1828_v55  }
 0x225   : > { %1805 = vperm.xlu2 %5349, %v1800_v21   ;;  %v3214_v21 = vperm.slane %v7989_v20, 4 }
 0x226   : > { %v6657_v53 = vpop.permute.xlu1 %1525  ;;  %v6659_v12 = vpop.permute.xlu0 %1539 }
 0x227   : > { %v6663_v19 = vpop.permute.xlu2 %1574 }
 0x22c   : > { %1840 = vperm.xlu1 %5351, %v1835_v45   ;;  %1854 = vperm.xlu0 %5350, %v1849_v62  }
 0x22d   : > { %1826 = vperm.xlu2 %5349, %v1821_v58  }
 0x22e   : > { %v6665_v41 = vpop.permute.xlu1 %1546  ;;  %v6667_v52 = vpop.permute.xlu0 %1560 }
 0x22f   : > { %v6669_v33 = vpop.permute.xlu2 %1595 }
 0x234   : > { %1861 = vperm.xlu1 %5351, %v1856_v49   ;;  %1875 = vperm.xlu0 %5350, %v1870_v2   ;;  %v3235_v49 = vperm.slane %v7989_v20, 7  ;;  %v7992_v2 = vld [vmem:[#allocation7_spill] sm:$0xff] }
 0x235   : > { %1847 = vperm.xlu2 %5349, %v1842_v18   ;;  %v3249_v18 = vperm.slane %v7992_v2, 1 }
 0x236   : > { %v6671_v13 = vpop.permute.xlu1 %1567  ;;  %v6673_v51 = vpop.permute.xlu0 %1581 }
 0x237   : > { %v6675_v10 = vpop.permute.xlu2 %1616 }
 0x23c   : > { %1882 = vperm.xlu1 %5351, %v1877_v4   ;;  %1896 = vperm.xlu0 %5350, %v1891_v11   ;;  %v3221_v4 = vperm.slane %v7989_v20, 5  ;;  %v3291_v20 = vperm.slane %v7992_v2, 7 }
 0x23d   : > { %1868 = vperm.xlu2 %5349, %v1863_v36  }
 0x23e   : > { %v6677_v27 = vpop.permute.xlu1 %1588  ;;  %v6679_v1 = vpop.permute.xlu0 %1602 }
 0x23f   : > { %v6681_v47 = vpop.permute.xlu2 %1637 }
 0x244   : > { %3135 = vperm.xlu1 %5351, %v3130_v9   ;;  %3149 = vperm.xlu0 %5350, %v3144_v8   ;;  %v3256_v9 = vperm.slane %v7992_v2, 2  ;;  %v3270_v8 = vperm.slane %v7992_v2, 4 }
 0x245   : > { %1889 = vperm.xlu2 %5349, %v1884_v42   ;;  %v3242_v42 = vperm.slane %v7992_v2, 0 }
 0x246   : > { %v6685_v30 = vpop.permute.xlu1 %1609  ;;  %v6687_v50 = vpop.permute.xlu0 %1623 }
 0x247   : > { %v6689_v63 = vpop.permute.xlu2 %1658 }
 0x24c   : > { %3156 = vperm.xlu1 %5351, %v3151_v14   ;;  %3170 = vperm.xlu0 %5350, %v3165_v57  }
 0x24d   : > { %3142 = vperm.xlu2 %5349, %v3137_v15  }
 0x24e   : > { %v6694_v38 = vpop.permute.xlu1 %1630  ;;  %v6696_v44 = vpop.permute.xlu0 %1644 }
 0x24f   : > { %v6698_v35 = vpop.permute.xlu2 %1679 }
 0x254   : > { %3177 = vperm.xlu1 %5351, %v3172_v22   ;;  %3191 = vperm.xlu0 %5350, %v3186_v60   ;;  %v3277_v22 = vperm.slane %v7992_v2, 5  ;;  %v3263_v60 = vperm.slane %v7992_v2, 3 }
 0x255   : > { %3163 = vperm.xlu2 %5349, %v3158_v37  }
 0x256   : > { %v6703_v54 = vpop.permute.xlu1 %1651  ;;  %v6705_v23 = vpop.permute.xlu0 %1665 }
 0x257   : > { %v6707_v5 = vpop.permute.xlu2 %1700 }
 0x25c   : > { %3198 = vperm.xlu1 %5351, %v3193_v24   ;;  %3212 = vperm.xlu0 %5350, %v3207_v34  }
 0x25d   : > { %3184 = vperm.xlu2 %5349, %v3179_v26   ;;  %v8000_v26 = vld [vmem:[#allocation9_spill] sm:$0xff] }
 0x25e   : > { %v6712_v48 = vpop.permute.xlu1 %1672  ;;  %v6714_v55 = vpop.permute.xlu0 %1686 }
 0x25f   : > { %v6716_v6 = vpop.permute.xlu2 %1721 }
 0x264   : > { %3219 = vperm.xlu1 %5351, %v3214_v21   ;;  %3233 = vperm.xlu0 %5350, %v3228_v32   ;;  %v3298_v21 = vperm.slane %v8000_v26, 0  ;;  %v3312_v32 = vperm.slane %v8000_v26, 2 }
 0x265   : > { %3205 = vperm.xlu2 %5349, %v3200_v31   ;;  %v3284_v31 = vperm.slane %v7992_v2, 6 }
 0x266   : > { %v6721_v45 = vpop.permute.xlu1 %1693  ;;  %v6723_v62 = vpop.permute.xlu0 %1707 }
 0x267   : > { %7990 = vst [vmem:[#allocation5_spill] sm:$0xff] %v6723_v62  ;;  %v6725_v58 = vpop.permute.xlu2 %1742 }
 0x268   : > { %7991 = vst [vmem:[#allocation3_spill] sm:$0xff] %v6725_v58 }
 0x26c   : > { %3240 = vperm.xlu1 %5351, %v3235_v49   ;;  %3254 = vperm.xlu0 %5350, %v3249_v18  }
 0x26d   : > { %3226 = vperm.xlu2 %5349, %v3221_v4  }
 0x26e   : > { %v6730_v11 = vpop.permute.xlu1 %1714  ;;  %v6732_v36 = vpop.permute.xlu0 %1728 }
 0x26f   : > { %7993 = vst [vmem:[#allocation8_spill] sm:$0xff] %v6732_v36  ;;  %v6734_v61 = vpop.permute.xlu2 %1763 }
 0x270   : > { %7994 = vst [vmem:[#allocation10_spill] sm:$0xff] %v6734_v61 }
 0x274   : > { %3261 = vperm.xlu1 %5351, %v3256_v9   ;;  %3275 = vperm.xlu0 %5350, %v3270_v8   ;;  %v3319_v9 = vperm.slane %v8000_v26, 3  ;;  %v3333_v8 = vperm.slane %v8000_v26, 5 }
 0x275   : > { %3247 = vperm.xlu2 %5349, %v3242_v42   ;;  %v3305_v42 = vperm.slane %v8000_v26, 1 }
 0x276   : > { %v6739_v14 = vpop.permute.xlu1 %1735  ;;  %v6741_v57 = vpop.permute.xlu0 %1749 }
 0x277   : > { %7995 = vst [vmem:[#allocation7_spill] sm:$0xff] %v6741_v57  ;;  %v6743_v15 = vpop.permute.xlu2 %1784 }
 0x278   : > { %7996 = vst [vmem:[#allocation11_spill] sm:$0xff] %v6743_v15 }
 0x27c   : > { %3282 = vperm.xlu1 %5351, %v3277_v22   ;;  %3296 = vperm.xlu0 %5350, %v3291_v20  }
 0x27d   : > { %3268 = vperm.xlu2 %5349, %v3263_v60   ;;  %v3340_v60 = vperm.slane %v8000_v26, 6 }
 0x27e   : > { %v6748_v37 = vpop.permute.xlu1 %1756  ;;  %v6750_v24 = vpop.permute.xlu0 %1770 }
 0x27f   : > { %7997 = vst [vmem:[#allocation12_spill] sm:$0xff] %v6748_v37  ;;  %v6752_v34 = vpop.permute.xlu2 %1805 }
 0x280   : > { %7998 = vst [vmem:[#allocation13_spill] sm:$0xff] %v6750_v24 }
 0x281   : > { %7999 = vst [vmem:[#allocation14_spill] sm:$0xff] %v6752_v34 }
 0x284   : > { %3303 = vperm.xlu1 %5351, %v3298_v21   ;;  %3317 = vperm.xlu0 %5350, %v3312_v32   ;;  %v8007_v21 = vld [vmem:[#allocation4_spill] sm:$0xff] }
 0x285   : > { %3289 = vperm.xlu2 %5349, %v3284_v31   ;;  %v3354_v32 = vperm.slane %v8007_v21, 0  ;;  %v3326_v31 = vperm.slane %v8000_v26, 4 }
 0x286   : > { %v6757_v49 = vpop.permute.xlu1 %1777  ;;  %v6759_v18 = vpop.permute.xlu0 %1791 }
 0x287   : > { %8001 = vst [vmem:[#allocation9_spill] sm:$0xff] %v6757_v49  ;;  %v6761_v4 = vpop.permute.xlu2 %1826 }
 0x288   : > { %8002 = vst [vmem:[#allocation15_spill] sm:$0xff] %v6759_v18 }
 0x289   : > { %8003 = vst [vmem:[#allocation16_spill] sm:$0xff] %v6761_v4 }
 0x28c   : > { %3324 = vperm.xlu1 %5351, %v3319_v9   ;;  %3338 = vperm.xlu0 %5350, %v3333_v8  }
 0x28d   : > { %3310 = vperm.xlu2 %5349, %v3305_v42   ;;  %v3361_v42 = vperm.slane %v8007_v21, 1 }
 0x28e   : > { %v6766_v22 = vpop.permute.xlu1 %1798  ;;  %v6768_v2 = vpop.permute.xlu0 %1812 }
 0x28f   : > { %8004 = vst [vmem:[#allocation17_spill] sm:$0xff] %v6766_v22  ;;  %v6770_v20 = vpop.permute.xlu2 %1847  ;;  %v3403_v22 = vperm.slane %v8007_v21, 7 }
 0x290   : > { %8005 = vst [vmem:[#allocation18_spill] sm:$0xff] %v6768_v2  ;;  %v3347_v2 = vperm.slane %v8000_v26, 7  ;;  %v5360_v26 = vld [vmem:[%s7872_s0 + $0x1] ss:$0 sm:$0xff] }
 0x291   : > { %8006 = vst [vmem:[#allocation19_spill] sm:$0xff] %v6770_v20  ;;  %v3375_v20 = vperm.slane %v8007_v21, 3 }
 0x294   : > { %3345 = vperm.xlu1 %5351, %v3340_v60   ;;  %3359 = vperm.xlu0 %5350, %v3354_v32  }
 0x295   : > { %3331 = vperm.xlu2 %5349, %v3326_v31   ;;  %v3382_v31 = vperm.slane %v8007_v21, 4 }
 0x296   : > { %v6775_v4 = vpop.permute.xlu1 %1819  ;;  %v6777_v9 = vpop.permute.xlu0 %1833 }
 0x297   : > { %8008 = vst [vmem:[#allocation4_spill] sm:$0xff] %v6775_v4  ;;  %v6779_v8 = vpop.permute.xlu2 %1868 }
 0x298   : > { %8009 = vst [vmem:[#allocation20_spill] sm:$0xff] %v6777_v9  ;;  %v3396_v9 = vperm.slane %v8007_v21, 6 }
 0x299   : > { %8010 = vst [vmem:[#allocation21_spill] sm:$0xff] %v6779_v8  ;;  %v3368_v8 = vperm.slane %v8007_v21, 2 }
 0x29c   : > { %3366 = vperm.xlu1 %5351, %v3361_v42   ;;  %3380 = vperm.xlu0 %5350, %v3375_v20  }
 0x29d   : > { %3352 = vperm.xlu2 %5349, %v3347_v2   ;;  %v5361_v2 = vld [vmem:[%s7873_s1 + $0x1] ss:$0 sm:$0xff] }
 0x29e   : > { %v6784_v18 = vpop.permute.xlu1 %1840  ;;  %v6786_v60 = vpop.permute.xlu0 %1854 }
 0x29f   : > { %8011 = vst [vmem:[#allocation22_spill] sm:$0xff] %v6784_v18  ;;  %v6788_v32 = vpop.permute.xlu2 %1889  ;;  %v4412_v18 = vmul.f32 %v5360_v26, %v6632_v40 }
 0x2a0   : > { %8012 = vst [vmem:[#allocation23_spill] sm:$0xff] %v6786_v60  ;;  %v4155_v60 = vmul.f32 %v5361_v2, %v6632_v40 }
 0x2a1   : > { %8013 = vst [vmem:[#allocation24_spill] sm:$0xff] %v6788_v32 }
 0x2a4   : > { %3387 = vperm.xlu1 %5351, %v3382_v31   ;;  %3401 = vperm.xlu0 %5350, %v3396_v9   ;;  %v8016_v31 = vld [vmem:[#allocation6_spill] sm:$0xff] }
 0x2a5   : > { %3373 = vperm.xlu2 %5349, %v3368_v8   ;;  %v3417_v9 = vperm.slane %v8016_v31, 1  ;;  %v3389_v8 = vperm.slane %v8007_v21, 5  ;;  %v3459_v49 = vperm.slane %v8016_v31, 7 }
 0x2a6   : > { %v6800_v20 = vpop.permute.xlu1 %1861  ;;  %v6802_v42 = vpop.permute.xlu0 %1875 }
 0x2a7   : > { %8014 = vst [vmem:[#allocation25_spill] sm:$0xff] %v6800_v20  ;;  %v3143_v32 = vpop.permute.xlu2 %3142  ;;  %v5365_v20 = vld [vmem:[%s7873_s1 + $0x4] ss:$0 sm:$0xff] }
 0x2a8   : > { %8015 = vst [vmem:[#allocation26_spill] sm:$0xff] %v6802_v42  ;;  %v3899_v34 = vmul.f32 %v5360_v26, %v3143_v32  ;;  %v4348_v4 = vmul.f32 %v5361_v2, %v3143_v32  ;;  %v5364_v42 = vld [vmem:[%s7872_s0 + $0x4] ss:$0 sm:$0xff]  ;;  %v5353_v26 = vld [vmem:[%s7873_s1] ss:$0 sm:$0xff] }
 0x2a9   : > { %v4415_v21 = vmul.f32 %v5364_v42, %v6638_v25  ;;  %v5359_v2 = vld [vmem:[%s7873_s1 + $0x2] ss:$0 sm:$0xff] }
 0x2aa   : > { %v4219_v24 = vadd.f32 %v4155_v60, %v3899_v34  ;;  %v4476_v15 = vsub.f32 %v4348_v4, %v4412_v18  ;;  %v4158_v4 = vmul.f32 %v5365_v20, %v6638_v25 }
 0x2ac   : > { %4284 = vst.msk [vmem:[%s6815_s25 + $0x8] sm:$0xff] %vm4282_vm6, %v4219_v24  ;;  %3408 = vperm.xlu1 %5351, %v3403_v22   ;;  %3422 = vperm.xlu0 %5350, %v3417_v9   ;;  %v3424_v24 = vperm.slane %v8016_v31, 2  ;;  %v3438_v22 = vperm.slane %v8016_v31, 4 }
 0x2ad   : > { %5248 = vst.msk [vmem:[%s6815_s25 + $0x208] sm:$0xff] %vm4282_vm6, %v4476_v15  ;;  %3394 = vperm.xlu2 %5349, %v3389_v8   ;;  %v5352_v15 = vld [vmem:[%s7872_s0] ss:$0 sm:$0xff]  ;;  %v5371_v8 = vld [vmem:[%s7873_s1 + $0x7] ss:$0 sm:$0xff] }
 0x2ae   : > { %v6821_v40 = vpop.permute.xlu1 %1882  ;;  %v6823_v34 = vpop.permute.xlu0 %1896  ;;  %v4161_v36 = vmul.f32 %v5371_v8, %v6645_v29 }
 0x2af   : > { %8017 = vst [vmem:[#allocation6_spill] sm:$0xff] %v6821_v40  ;;  %v3164_v18 = vpop.permute.xlu2 %3163 }
 0x2b0   : > { %8018 = vst [vmem:[#allocation27_spill] sm:$0xff] %v6823_v34  ;;  %v3902_v60 = vmul.f32 %v5364_v42, %v3164_v18  ;;  %v4351_v32 = vmul.f32 %v5365_v20, %v3164_v18  ;;  %v3410_v20 = vperm.slane %v8016_v31, 0  ;;  %v5358_v42 = vld [vmem:[%s7872_s0 + $0x2] ss:$0 sm:$0xff]  ;;  %v4154_v18 = vmul.f32 %v5353_v26, %v6609_v3 }
 0x2b1   : > { %v4413_v57 = vmul.f32 %v5358_v42, %v6630_v17 }
 0x2b2   : > { %v4222_v25 = vadd.f32 %v4158_v4, %v3902_v60  ;;  %v4479_v9 = vsub.f32 %v4351_v32, %v4415_v21  ;;  %v4411_v4 = vmul.f32 %v5352_v15, %v6609_v3  ;;  %v4156_v21 = vmul.f32 %v5359_v2, %v6630_v17  ;;  %v5370_v60 = vld [vmem:[%s7872_s0 + $0x7] ss:$0 sm:$0xff]  ;;  %v5357_v17 = vld [vmem:[%s7873_s1 + $0x5] ss:$0 sm:$0xff] }
 0x2b4   : > { %4287 = vst.msk [vmem:[%s6815_s25 + $0x20] sm:$0xff] %vm4282_vm6, %v4222_v25  ;;  %3429 = vperm.xlu1 %5351, %v3424_v24   ;;  %3443 = vperm.xlu0 %5350, %v3438_v22   ;;  %v3445_v22 = vperm.slane %v8016_v31, 5 }
 0x2b5   : > { %5251 = vst.msk [vmem:[%s6815_s25 + $0x220] sm:$0xff] %vm4282_vm6, %v4479_v9  ;;  %3415 = vperm.xlu2 %5349, %v3410_v20  }
 0x2b6   : > { %v3136_v32 = vpop.permute.xlu1 %3135  ;;  %v3150_v24 = vpop.permute.xlu0 %3149 }
 0x2b7   : > { %v3898_v25 = vmul.f32 %v5352_v15, %v3136_v32  ;;  %v4347_v34 = vmul.f32 %v5353_v26, %v3136_v32  ;;  %v3900_v40 = vmul.f32 %v5358_v42, %v3150_v24  ;;  %v4349_v9 = vmul.f32 %v5359_v2, %v3150_v24  ;;  %v3185_v20 = vpop.permute.xlu2 %3184  ;;  %v5354_v15 = vld [vmem:[%s7872_s0 + $0x3] ss:$0 sm:$0xff] }
 0x2b8   : > { %v3905_v61 = vmul.f32 %v5370_v60, %v3185_v20  ;;  %v4354_v3 = vmul.f32 %v5371_v8, %v3185_v20  ;;  %v5355_v26 = vld [vmem:[%s7873_s1 + $0x3] ss:$0 sm:$0xff]  ;;  %v4418_v2 = vmul.f32 %v5370_v60, %v6645_v29  ;;  %v5356_v8 = vld [vmem:[%s7872_s0 + $0x5] ss:$0 sm:$0xff]  ;;  %v5377_v29 = vld [vmem:[%s7873_s1 + $0xa] ss:$0 sm:$0xff] }
 0x2b9   : > { %v4218_v58 = vadd.f32 %v4154_v18, %v3898_v25  ;;  %v4475_v37 = vsub.f32 %v4347_v34, %v4411_v4  ;;  %v4220_v62 = vadd.f32 %v4156_v21, %v3900_v40  ;;  %v4477_v42 = vsub.f32 %v4349_v9, %v4413_v57  ;;  %v5376_v57 = vld [vmem:[%s7872_s0 + $0xa] ss:$0 sm:$0xff] }
 0x2ba   : > { %v4225_v34 = vadd.f32 %v4161_v36, %v3905_v61  ;;  %v3431_v40 = vperm.slane %v8016_v31, 3  ;;  %v4482_v18 = vsub.f32 %v4354_v3, %v4418_v2  ;;  %v4414_v36 = vmul.f32 %v5354_v15, %v6619_v59 }
 0x2bb   : > { %4283 = vst.msk [vmem:[%s6815_s25] sm:$0xff] %vm4282_vm6, %v4218_v58  ;;  %v4157_v58 = vmul.f32 %v5355_v26, %v6619_v59  ;;  %v4159_v61 = vmul.f32 %v5357_v17, %v6622_v7  ;;  %v3466_v4 = vperm.slane %v6589_v28, 0  ;;  %v4416_v24 = vmul.f32 %v5356_v8, %v6622_v7  ;;  %v5366_v7 = vld [vmem:[%s7872_s0 + $0x6] ss:$0 sm:$0xff] }
 0x2bc   : > { %5247 = vst.msk [vmem:[%s6815_s25 + $0x200] sm:$0xff] %vm4282_vm6, %v4475_v37  ;;  %3450 = vperm.xlu1 %5351, %v3445_v22   ;;  %3464 = vperm.xlu0 %5350, %v3459_v49   ;;  %v3480_v9 = vperm.slane %v6589_v28, 2  ;;  %v4164_v20 = vmul.f32 %v5377_v29, %v6657_v53 }
 0x2bd   : > { %4285 = vst.msk [vmem:[%s6815_s25 + $0x10] sm:$0xff] %vm4282_vm6, %v4220_v62  ;;  %3436 = vperm.xlu2 %5349, %v3431_v40  }
 0x2be   : > { %5249 = vst.msk [vmem:[%s6815_s25 + $0x210] sm:$0xff] %vm4282_vm6, %v4477_v42  ;;  %v3157_v37 = vpop.permute.xlu1 %3156  ;;  %v3171_v49 = vpop.permute.xlu0 %3170  ;;  %v4421_v42 = vmul.f32 %v5376_v57, %v6657_v53  ;;  %v5383_v53 = vld [vmem:[%s7873_s1 + $0xd] ss:$0 sm:$0xff] }
 0x2bf   : > { %4290 = vst.msk [vmem:[%s6815_s25 + $0x38] sm:$0xff] %vm4282_vm6, %v4225_v34  ;;  %v3901_v62 = vmul.f32 %v5354_v15, %v3157_v37  ;;  %v4350_v21 = vmul.f32 %v5355_v26, %v3157_v37  ;;  %v3903_v60 = vmul.f32 %v5356_v8, %v3171_v49  ;;  %v4352_v32 = vmul.f32 %v5357_v17, %v3171_v49  ;;  %v3206_v59 = vpop.permute.xlu2 %3205  ;;  %v5363_v26 = vld [vmem:[%s7873_s1 + $0x8] ss:$0 sm:$0xff]  ;;  %v5367_v17 = vld [vmem:[%s7873_s1 + $0x6] ss:$0 sm:$0xff] }
 0x2c0   : > { %5254 = vst.msk [vmem:[%s6815_s25 + $0x238] sm:$0xff] %vm4282_vm6, %v4482_v18  ;;  %v3908_v22 = vmul.f32 %v5376_v57, %v3206_v59  ;;  %v4357_v25 = vmul.f32 %v5377_v29, %v3206_v59  ;;  %v3452_v8 = vperm.slane %v8016_v31, 6  ;;  %v5362_v18 = vld [vmem:[%s7872_s0 + $0x8] ss:$0 sm:$0xff]  ;;  %v4162_v31 = vmul.f32 %v5363_v26, %v6636_v43 }
 0x2c1   : > { %v4221_v3 = vadd.f32 %v4157_v58, %v3901_v62  ;;  %v4478_v2 = vsub.f32 %v4350_v21, %v4414_v36  ;;  %v4223_v15 = vadd.f32 %v4159_v61, %v3903_v60  ;;  %v4480_v34 = vsub.f32 %v4352_v32, %v4416_v24  ;;  %v5382_v61 = vld [vmem:[%s7872_s0 + $0xd] ss:$0 sm:$0xff] }
 0x2c2   : > { %v4228_v40 = vadd.f32 %v4164_v20, %v3908_v22  ;;  %v4485_v29 = vsub.f32 %v4357_v25, %v4421_v42  ;;  %v4160_v58 = vmul.f32 %v5367_v17, %v6640_v56  ;;  %v4417_v36 = vmul.f32 %v5366_v7, %v6640_v56 }
 0x2c3   : > { %4286 = vst.msk [vmem:[%s6815_s25 + $0x18] sm:$0xff] %vm4282_vm6, %v4221_v3  ;;  %v3487_v49 = vperm.slane %v6589_v28, 3  ;;  %v4419_v56 = vmul.f32 %v5362_v18, %v6636_v43  ;;  %v3501_v22 = vperm.slane %v6589_v28, 5  ;;  %v4167_v25 = vmul.f32 %v5383_v53, %v6665_v41  ;;  %v5372_v43 = vld [vmem:[%s7872_s0 + $0x9] ss:$0 sm:$0xff] }
 0x2c4   : > { %5250 = vst.msk [vmem:[%s6815_s25 + $0x218] sm:$0xff] %vm4282_vm6, %v4478_v2  ;;  %3471 = vperm.xlu1 %5351, %v3466_v4   ;;  %3485 = vperm.xlu0 %5350, %v3480_v9   ;;  %v5369_v2 = vld [vmem:[%s7873_s1 + $0xb] ss:$0 sm:$0xff]  ;;  %v3473_v42 = vperm.slane %v6589_v28, 1 }
 0x2c5   : > { %4288 = vst.msk [vmem:[%s6815_s25 + $0x28] sm:$0xff] %vm4282_vm6, %v4223_v15  ;;  %3457 = vperm.xlu2 %5349, %v3452_v8   ;;  %v5373_v15 = vld [vmem:[%s7873_s1 + $0x9] ss:$0 sm:$0xff]  ;;  %v4165_v8 = vmul.f32 %v5369_v2, %v6642_v46 }
 0x2c6   : > { %5252 = vst.msk [vmem:[%s6815_s25 + $0x228] sm:$0xff] %vm4282_vm6, %v4480_v34  ;;  %v3178_v57 = vpop.permute.xlu1 %3177  ;;  %v3192_v37 = vpop.permute.xlu0 %3191  ;;  %v5368_v34 = vld [vmem:[%s7872_s0 + $0xb] ss:$0 sm:$0xff] }
 0x2c7   : > { %4293 = vst.msk [vmem:[%s6815_s25 + $0x50] sm:$0xff] %vm4282_vm6, %v4228_v40  ;;  %v3904_v4 = vmul.f32 %v5366_v7, %v3178_v57  ;;  %v4353_v62 = vmul.f32 %v5367_v17, %v3178_v57  ;;  %v3906_v21 = vmul.f32 %v5362_v18, %v3192_v37  ;;  %v4355_v60 = vmul.f32 %v5363_v26, %v3192_v37  ;;  %v3227_v32 = vpop.permute.xlu2 %3226 }
 0x2c8   : > { %5257 = vst.msk [vmem:[%s6815_s25 + $0x250] sm:$0xff] %vm4282_vm6, %v4485_v29  ;;  %v3911_v59 = vmul.f32 %v5382_v61, %v3227_v32  ;;  %v4360_v24 = vmul.f32 %v5383_v53, %v3227_v32  ;;  %v4424_v26 = vmul.f32 %v5382_v61, %v6665_v41  ;;  %v5389_v41 = vld [vmem:[%s7873_s1 + $0x10] ss:$0 sm:$0xff]  ;;  %v4163_v18 = vmul.f32 %v5373_v15, %v6647_v39 }
 0x2c9   : > { %v4224_v9 = vadd.f32 %v4160_v58, %v3904_v4  ;;  %v4481_v20 = vsub.f32 %v4353_v62, %v4417_v36  ;;  %v4226_v3 = vadd.f32 %v4162_v31, %v3906_v21  ;;  %v4483_v7 = vsub.f32 %v4355_v60, %v4419_v56  ;;  %v5388_v53 = vld [vmem:[%s7872_s0 + $0x10] ss:$0 sm:$0xff] }
 0x2ca   : > { %v4231_v17 = vadd.f32 %v4167_v25, %v3911_v59  ;;  %v4488_v40 = vsub.f32 %v4360_v24, %v4424_v26  ;;  %v4420_v29 = vmul.f32 %v5372_v43, %v6647_v39  ;;  %v3522_v36 = vperm.slane %v6519_v16, 0  ;;  %v5379_v25 = vld [vmem:[%s7873_s1 + $0xc] ss:$0 sm:$0xff] }
 0x2cb   : > { %4289 = vst.msk [vmem:[%s6815_s25 + $0x30] sm:$0xff] %vm4282_vm6, %v4224_v9  ;;  %v4422_v39 = vmul.f32 %v5368_v34, %v6642_v46  ;;  %v3508_v60 = vperm.slane %v6589_v28, 6  ;;  %v4170_v32 = vmul.f32 %v5389_v41, %v6671_v13  ;;  %v5378_v46 = vld [vmem:[%s7872_s0 + $0xc] ss:$0 sm:$0xff]  ;;  %v4427_v9 = vmul.f32 %v5388_v53, %v6671_v13  ;;  %v5395_v13 = vld [vmem:[%s7873_s1 + $0x13] ss:$0 sm:$0xff] }
 0x2cc   : > { %5253 = vst.msk [vmem:[%s6815_s25 + $0x230] sm:$0xff] %vm4282_vm6, %v4481_v20  ;;  %3492 = vperm.xlu1 %5351, %v3487_v49   ;;  %3506 = vperm.xlu0 %5350, %v3501_v22   ;;  %v5375_v22 = vld [vmem:[%s7873_s1 + $0xe] ss:$0 sm:$0xff] }
 0x2cd   : > { %4291 = vst.msk [vmem:[%s6815_s25 + $0x40] sm:$0xff] %vm4282_vm6, %v4226_v3  ;;  %3478 = vperm.xlu2 %5349, %v3473_v42   ;;  %v4168_v26 = vmul.f32 %v5375_v22, %v6649_v0  ;;  %v5394_v42 = vld [vmem:[%s7872_s0 + $0x13] ss:$0 sm:$0xff] }
 0x2ce   : > { %5255 = vst.msk [vmem:[%s6815_s25 + $0x240] sm:$0xff] %vm4282_vm6, %v4483_v7  ;;  %v3199_v31 = vpop.permute.xlu1 %3198  ;;  %v3213_v58 = vpop.permute.xlu0 %3212  ;;  %v4166_v7 = vmul.f32 %v5379_v25, %v6659_v12 }
 0x2cf   : > { %4296 = vst.msk [vmem:[%s6815_s25 + $0x68] sm:$0xff] %vm4282_vm6, %v4231_v17  ;;  %v3907_v61 = vmul.f32 %v5372_v43, %v3199_v31  ;;  %v4356_v57 = vmul.f32 %v5373_v15, %v3199_v31  ;;  %v3909_v37 = vmul.f32 %v5368_v34, %v3213_v58  ;;  %v4358_v49 = vmul.f32 %v5369_v2, %v3213_v58  ;;  %v3248_v4 = vpop.permute.xlu2 %3247  ;;  %v5374_v43 = vld [vmem:[%s7872_s0 + $0xe] ss:$0 sm:$0xff] }
 0x2d0   : > { %5260 = vst.msk [vmem:[%s6815_s25 + $0x268] sm:$0xff] %vm4282_vm6, %v4488_v40  ;;  %v3914_v62 = vmul.f32 %v5388_v53, %v3248_v4  ;;  %v4363_v21 = vmul.f32 %v5389_v41, %v3248_v4  ;;  %v3494_v2 = vperm.slane %v6589_v28, 4  ;;  %v4423_v17 = vmul.f32 %v5378_v46, %v6659_v12 }
 0x2d1   : > { %v4227_v56 = vadd.f32 %v4163_v18, %v3907_v61  ;;  %v4484_v59 = vsub.f32 %v4356_v57, %v4420_v29  ;;  %v4229_v24 = vadd.f32 %v4165_v8, %v3909_v37  ;;  %v4486_v20 = vsub.f32 %v4358_v49, %v4422_v39  ;;  %v5381_v39 = vld [vmem:[%s7873_s1 + $0x11] ss:$0 sm:$0xff] }
 0x2d2   : > { %v4234_v3 = vadd.f32 %v4170_v32, %v3914_v62  ;;  %v4491_v15 = vsub.f32 %v4363_v21, %v4427_v9  ;;  %v3529_v41 = vperm.slane %v6519_v16, 1  ;;  %v4425_v12 = vmul.f32 %v5374_v43, %v6649_v0  ;;  %v5384_v0 = vld [vmem:[%s7872_s0 + $0xf] ss:$0 sm:$0xff] }
 0x2d3   : > { %4292 = vst.msk [vmem:[%s6815_s25 + $0x48] sm:$0xff] %vm4282_vm6, %v4227_v56  ;;  %v3543_v61 = vperm.slane %v6519_v16, 3  ;;  %v4173_v57 = vmul.f32 %v5395_v13, %v6677_v27  ;;  %v5385_v62 = vld [vmem:[%s7873_s1 + $0xf] ss:$0 sm:$0xff]  ;;  %v4430_v21 = vmul.f32 %v5394_v42, %v6677_v27  ;;  %v3515_v56 = vperm.slane %v6589_v28, 7 }
 0x2d4   : > { %5256 = vst.msk [vmem:[%s6815_s25 + $0x248] sm:$0xff] %vm4282_vm6, %v4484_v59  ;;  %3513 = vperm.xlu1 %5351, %v3508_v60   ;;  %3527 = vperm.xlu0 %5350, %v3522_v36   ;;  %v5380_v59 = vld [vmem:[%s7872_s0 + $0x11] ss:$0 sm:$0xff]  ;;  %v5401_v27 = vld [vmem:[%s7873_s1 + $0x16] ss:$0 sm:$0xff]  ;;  %v4171_v28 = vmul.f32 %v5381_v39, %v6663_v19 }
 0x2d5   : > { %4294 = vst.msk [vmem:[%s6815_s25 + $0x58] sm:$0xff] %vm4282_vm6, %v4229_v24  ;;  %3499 = vperm.xlu2 %5349, %v3494_v2  }
 0x2d6   : > { %5258 = vst.msk [vmem:[%s6815_s25 + $0x258] sm:$0xff] %vm4282_vm6, %v4486_v20  ;;  %v3220_v34 = vpop.permute.xlu1 %3219  ;;  %v3234_v40 = vpop.permute.xlu0 %3233 }
 0x2d7   : > { %4299 = vst.msk [vmem:[%s6815_s25 + $0x80] sm:$0xff] %vm4282_vm6, %v4234_v3  ;;  %v3910_v8 = vmul.f32 %v5378_v46, %v3220_v34  ;;  %v4359_v18 = vmul.f32 %v5379_v25, %v3220_v34  ;;  %v3912_v29 = vmul.f32 %v5374_v43, %v3234_v40  ;;  %v4361_v53 = vmul.f32 %v5375_v22, %v3234_v40  ;;  %v3269_v31 = vpop.permute.xlu2 %3268  ;;  %v5400_v25 = vld [vmem:[%s7872_s0 + $0x16] ss:$0 sm:$0xff] }
 0x2d8   : > { %5263 = vst.msk [vmem:[%s6815_s25 + $0x280] sm:$0xff] %vm4282_vm6, %v4491_v15  ;;  %v3917_v58 = vmul.f32 %v5394_v42, %v3269_v31  ;;  %v4366_v36 = vmul.f32 %v5395_v13, %v3269_v31  ;;  %v4169_v22 = vmul.f32 %v5385_v62, %v6667_v52  ;;  %v4426_v46 = vmul.f32 %v5384_v0, %v6667_v52 }
 0x2d9   : > { %v4230_v37 = vadd.f32 %v4166_v7, %v3910_v8  ;;  %v4487_v49 = vsub.f32 %v4359_v18, %v4423_v17  ;;  %v4232_v4 = vadd.f32 %v4168_v26, %v3912_v29  ;;  %v4489_v60 = vsub.f32 %v4361_v53, %v4425_v12  ;;  %v5387_v18 = vld [vmem:[%s7873_s1 + $0x14] ss:$0 sm:$0xff]  ;;  %v5391_v29 = vld [vmem:[%s7873_s1 + $0x12] ss:$0 sm:$0xff] }
 0x2da   : > { %v4237_v32 = vadd.f32 %v4173_v57, %v3917_v58  ;;  %v4494_v24 = vsub.f32 %v4366_v36, %v4430_v21  ;;  %v3550_v3 = vperm.slane %v6519_v16, 4  ;;  %v4428_v52 = vmul.f32 %v5380_v59, %v6663_v19  ;;  %v5390_v19 = vld [vmem:[%s7872_s0 + $0x12] ss:$0 sm:$0xff]  ;;  %v5386_v36 = vld [vmem:[%s7872_s0 + $0x14] ss:$0 sm:$0xff] }
 0x2db   : > { %4295 = vst.msk [vmem:[%s6815_s25 + $0x60] sm:$0xff] %vm4282_vm6, %v4230_v37  ;;  %v3564_v42 = vperm.slane %v6519_v16, 6  ;;  %v4176_v34 = vmul.f32 %v5401_v27, %v6685_v30  ;;  %v4433_v53 = vmul.f32 %v5400_v25, %v6685_v30  ;;  %v3536_v58 = vperm.slane %v6519_v16, 2  ;;  %v5407_v30 = vld [vmem:[%s7873_s1 + $0x19] ss:$0 sm:$0xff] }
 0x2dc   : > { %5259 = vst.msk [vmem:[%s6815_s25 + $0x260] sm:$0xff] %vm4282_vm6, %v4487_v49  ;;  %3534 = vperm.xlu1 %5351, %v3529_v41   ;;  %3548 = vperm.xlu0 %5350, %v3543_v61   ;;  %v4174_v57 = vmul.f32 %v5387_v18, %v6669_v33  ;;  %v4172_v37 = vmul.f32 %v5391_v29, %v6673_v51 }
 0x2dd   : > { %4297 = vst.msk [vmem:[%s6815_s25 + $0x70] sm:$0xff] %vm4282_vm6, %v4232_v4  ;;  %3520 = vperm.xlu2 %5349, %v3515_v56   ;;  %v4429_v49 = vmul.f32 %v5390_v19, %v6673_v51  ;;  %v5406_v4 = vld [vmem:[%s7872_s0 + $0x19] ss:$0 sm:$0xff] }
 0x2de   : > { %5261 = vst.msk [vmem:[%s6815_s25 + $0x270] sm:$0xff] %vm4282_vm6, %v4489_v60  ;;  %v3241_v9 = vpop.permute.xlu1 %3240  ;;  %v3255_v20 = vpop.permute.xlu0 %3254 }
 0x2df   : > { %4302 = vst.msk [vmem:[%s6815_s25 + $0x98] sm:$0xff] %vm4282_vm6, %v4237_v32  ;;  %v3913_v2 = vmul.f32 %v5384_v0, %v3241_v9  ;;  %v4362_v43 = vmul.f32 %v5385_v62, %v3241_v9  ;;  %v3915_v15 = vmul.f32 %v5380_v59, %v3255_v20  ;;  %v4364_v13 = vmul.f32 %v5381_v39, %v3255_v20  ;;  %v3290_v26 = vpop.permute.xlu2 %3289  ;;  %v5393_v9 = vld [vmem:[%s7873_s1 + $0x17] ss:$0 sm:$0xff]  ;;  %v5397_v20 = vld [vmem:[%s7873_s1 + $0x15] ss:$0 sm:$0xff] }
 0x2e0   : > { %5266 = vst.msk [vmem:[%s6815_s25 + $0x298] sm:$0xff] %vm4282_vm6, %v4494_v24  ;;  %v3920_v7 = vmul.f32 %v5400_v25, %v3290_v26  ;;  %v4369_v17 = vmul.f32 %v5401_v27, %v3290_v26  ;;  %v4431_v59 = vmul.f32 %v5386_v36, %v6669_v33  ;;  %v3571_v27 = vperm.slane %v6519_v16, 7  ;;  %v5396_v33 = vld [vmem:[%s7872_s0 + $0x15] ss:$0 sm:$0xff] }
 0x2e1   : > { %v4233_v40 = vadd.f32 %v4169_v22, %v3913_v2  ;;  %v4490_v41 = vsub.f32 %v4362_v43, %v4426_v46  ;;  %v4235_v8 = vadd.f32 %v4171_v28, %v3915_v15  ;;  %v4492_v31 = vsub.f32 %v4364_v13, %v4428_v52  ;;  %v5392_v13 = vld [vmem:[%s7872_s0 + $0x17] ss:$0 sm:$0xff] }
 0x2e2   : > { %v4240_v12 = vadd.f32 %v4176_v34, %v3920_v7  ;;  %v4497_v61 = vsub.f32 %v4369_v17, %v4433_v53  ;;  %v4179_v28 = vmul.f32 %v5407_v30, %v6694_v38  ;;  %v3557_v15 = vperm.slane %v6519_v16, 5  ;;  %v5412_v17 = vld [vmem:[%s7872_s0 + $0x1c] ss:$0 sm:$0xff] }
 0x2e3   : > { %4298 = vst.msk [vmem:[%s6815_s25 + $0x78] sm:$0xff] %vm4282_vm6, %v4233_v40  ;;  %v4177_v52 = vmul.f32 %v5393_v9, %v6675_v10  ;;  %v4175_v16 = vmul.f32 %v5397_v20, %v6679_v1  ;;  %v4432_v7 = vmul.f32 %v5396_v33, %v6679_v1 }
 0x2e4   : > { %5262 = vst.msk [vmem:[%s6815_s25 + $0x278] sm:$0xff] %vm4282_vm6, %v4490_v41  ;;  %3555 = vperm.xlu1 %5351, %v3550_v3   ;;  %3569 = vperm.xlu0 %5350, %v3564_v42   ;;  %v4436_v3 = vmul.f32 %v5406_v4, %v6694_v38  ;;  %v5413_v38 = vld [vmem:[%s7873_s1 + $0x1c] ss:$0 sm:$0xff] }
 0x2e5   : > { %4300 = vst.msk [vmem:[%s6815_s25 + $0x88] sm:$0xff] %vm4282_vm6, %v4235_v8  ;;  %3541 = vperm.xlu2 %5349, %v3536_v58  }
 0x2e6   : > { %5264 = vst.msk [vmem:[%s6815_s25 + $0x288] sm:$0xff] %vm4282_vm6, %v4492_v31  ;;  %v3262_v39 = vpop.permute.xlu1 %3261  ;;  %v3276_v0 = vpop.permute.xlu0 %3275  ;;  %v4182_v31 = vmul.f32 %v5413_v38, %v6703_v54 }
 0x2e7   : > { %4305 = vst.msk [vmem:[%s6815_s25 + $0xb0] sm:$0xff] %vm4282_vm6, %v4240_v12  ;;  %v3916_v62 = vmul.f32 %v5390_v19, %v3262_v39  ;;  %v4365_v21 = vmul.f32 %v5391_v29, %v3262_v39  ;;  %v3918_v60 = vmul.f32 %v5386_v36, %v3276_v0  ;;  %v4367_v32 = vmul.f32 %v5387_v18, %v3276_v0  ;;  %v3311_v56 = vpop.permute.xlu2 %3310  ;;  %v5419_v0 = vld [vmem:[%s7873_s1 + $0x1f] ss:$0 sm:$0xff] }
 0x2e8   : > { %5269 = vst.msk [vmem:[%s6815_s25 + $0x2b0] sm:$0xff] %vm4282_vm6, %v4497_v61  ;;  %v3923_v51 = vmul.f32 %v5406_v4, %v3311_v56  ;;  %v4372_v24 = vmul.f32 %v5407_v30, %v3311_v56  ;;  %v4434_v29 = vmul.f32 %v5392_v13, %v6675_v10  ;;  %v5399_v61 = vld [vmem:[%s7873_s1 + $0x1a] ss:$0 sm:$0xff]  ;;  %v5402_v10 = vld [vmem:[%s7872_s0 + $0x18] ss:$0 sm:$0xff] }
 0x2e9   : > { %v4236_v22 = vadd.f32 %v4172_v37, %v3916_v62  ;;  %v4493_v46 = vsub.f32 %v4365_v21, %v4429_v49  ;;  %v4238_v25 = vadd.f32 %v4174_v57, %v3918_v60  ;;  %v4495_v2 = vsub.f32 %v4367_v32, %v4431_v59  ;;  %v5403_v30 = vld [vmem:[%s7873_s1 + $0x18] ss:$0 sm:$0xff]  ;;  %v5398_v4 = vld [vmem:[%s7872_s0 + $0x1a] ss:$0 sm:$0xff]  ;;  %v5418_v60 = vld [vmem:[%s7872_s0 + $0x1f] ss:$0 sm:$0xff] }
 0x2ea   : > { %v4243_v43 = vadd.f32 %v4179_v28, %v3923_v51  ;;  %v4500_v26 = vsub.f32 %v4372_v24, %v4436_v3  ;;  %v4439_v57 = vmul.f32 %v5412_v17, %v6703_v54  ;;  %v4180_v54 = vmul.f32 %v5399_v61, %v6681_v47  ;;  %v5405_v3 = vld [vmem:[%s7873_s1 + $0x1d] ss:$0 sm:$0xff] }
 0x2eb   : > { %4301 = vst.msk [vmem:[%s6815_s25 + $0x90] sm:$0xff] %vm4282_vm6, %v4236_v22  ;;  %v4178_v62 = vmul.f32 %v5403_v30, %v6687_v50  ;;  %v4435_v21 = vmul.f32 %v5402_v10, %v6687_v50  ;;  %v4437_v22 = vmul.f32 %v5398_v4, %v6681_v47  ;;  %v5408_v47 = vld [vmem:[%s7872_s0 + $0x1b] ss:$0 sm:$0xff] }
 0x2ec   : > { %5265 = vst.msk [vmem:[%s6815_s25 + $0x290] sm:$0xff] %vm4282_vm6, %v4493_v46  ;;  %3576 = vperm.xlu1 %5351, %v3571_v27  }
 0x2ed   : > { %4303 = vst.msk [vmem:[%s6815_s25 + $0xa0] sm:$0xff] %vm4282_vm6, %v4238_v25  ;;  %3562 = vperm.xlu2 %5349, %v3557_v15   ;;  %v4185_v25 = vmul.f32 %v5419_v0, %v6712_v48 }
 0x2ee   : > { %5267 = vst.msk [vmem:[%s6815_s25 + $0x2a0] sm:$0xff] %vm4282_vm6, %v4495_v2  ;;  %v3283_v42 = vpop.permute.xlu1 %3282  ;;  %v3297_v34 = vpop.permute.xlu0 %3296  ;;  %v5409_v2 = vld [vmem:[%s7873_s1 + $0x1b] ss:$0 sm:$0xff] }
 0x2ef   : > { %4308 = vst.msk [vmem:[%s6815_s25 + $0xc8] sm:$0xff] %vm4282_vm6, %v4243_v43  ;;  %v3919_v40 = vmul.f32 %v5396_v33, %v3283_v42  ;;  %v4368_v41 = vmul.f32 %v5397_v20, %v3283_v42  ;;  %v3921_v8 = vmul.f32 %v5392_v13, %v3297_v34  ;;  %v4370_v18 = vmul.f32 %v5393_v9, %v3297_v34  ;;  %v3332_v19 = vpop.permute.xlu2 %3331 }
 0x2f0   : > { %5272 = vst.msk [vmem:[%s6815_s25 + $0x2c8] sm:$0xff] %vm4282_vm6, %v4500_v26  ;;  %v3926_v1 = vmul.f32 %v5412_v17, %v3332_v19  ;;  %v4375_v53 = vmul.f32 %v5413_v38, %v3332_v19  ;;  %v4442_v43 = vmul.f32 %v5418_v60, %v6712_v48  ;;  %v5404_v26 = vld [vmem:[%s7872_s0 + $0x1d] ss:$0 sm:$0xff]  ;;  %v4183_v48 = vmul.f32 %v5405_v3, %v6689_v63  ;;  %v5424_v17 = vld [vmem:[%s7872_s0 + $0x22] ss:$0 sm:$0xff] }
 0x2f1   : > { %v4239_v12 = vadd.f32 %v4175_v16, %v3919_v40  ;;  %v4496_v58 = vsub.f32 %v4368_v41, %v4432_v7  ;;  %v4241_v36 = vadd.f32 %v4177_v52, %v3921_v8  ;;  %v4498_v37 = vsub.f32 %v4370_v18, %v4434_v29  ;;  %v5425_v52 = vld [vmem:[%s7873_s1 + $0x22] ss:$0 sm:$0xff] }
 0x2f2   : > { %v4246_v49 = vadd.f32 %v4182_v31, %v3926_v1  ;;  %v4503_v39 = vsub.f32 %v4375_v53, %v4439_v57  ;;  %v4181_v16 = vmul.f32 %v5409_v2, %v6696_v44  ;;  %v4438_v7 = vmul.f32 %v5408_v47, %v6696_v44 }
 0x2f3   : > { %4304 = vst.msk [vmem:[%s6815_s25 + $0xa8] sm:$0xff] %vm4282_vm6, %v4239_v12  ;;  %v4440_v29 = vmul.f32 %v5404_v26, %v6689_v63  ;;  %v4188_v53 = vmul.f32 %v5425_v52, %v6721_v45  ;;  %v5414_v63 = vld [vmem:[%s7872_s0 + $0x1e] ss:$0 sm:$0xff] }
 0x2f4   : > { %5268 = vst.msk [vmem:[%s6815_s25 + $0x2a8] sm:$0xff] %vm4282_vm6, %v4496_v58 }
 0x2f5   : > { %4306 = vst.msk [vmem:[%s6815_s25 + $0xb8] sm:$0xff] %vm4282_vm6, %v4241_v36  ;;  %v5411_v36 = vld [vmem:[%s7873_s1 + $0x20] ss:$0 sm:$0xff] }
 0x2f6   : > { %5270 = vst.msk [vmem:[%s6815_s25 + $0x2b8] sm:$0xff] %vm4282_vm6, %v4498_v37  ;;  %v3304_v32 = vpop.permute.xlu1 %3303  ;;  %v3318_v56 = vpop.permute.xlu0 %3317  ;;  %v5410_v37 = vld [vmem:[%s7872_s0 + $0x20] ss:$0 sm:$0xff] }
 0x2f7   : > { %4311 = vst.msk [vmem:[%s6815_s25 + $0xe0] sm:$0xff] %vm4282_vm6, %v4246_v49  ;;  %v3922_v59 = vmul.f32 %v5402_v10, %v3304_v32  ;;  %v4371_v51 = vmul.f32 %v5403_v30, %v3304_v32  ;;  %v3924_v24 = vmul.f32 %v5398_v4, %v3318_v56  ;;  %v4373_v27 = vmul.f32 %v5399_v61, %v3318_v56  ;;  %v3353_v28 = vpop.permute.xlu2 %3352  ;;  %v5415_v61 = vld [vmem:[%s7873_s1 + $0x1e] ss:$0 sm:$0xff]  ;;  %v5431_v4 = vld [vmem:[%s7873_s1 + $0x25] ss:$0 sm:$0xff] }
 0x2f8   : > { %5275 = vst.msk [vmem:[%s6815_s25 + $0x2e0] sm:$0xff] %vm4282_vm6, %v4503_v39  ;;  %v3929_v50 = vmul.f32 %v5418_v60, %v3353_v28  ;;  %v4378_v46 = vmul.f32 %v5419_v0, %v3353_v28  ;;  %v4445_v10 = vmul.f32 %v5424_v17, %v6721_v45  ;;  %v4186_v45 = vmul.f32 %v5411_v36, %v6698_v35 }
 0x2f9   : > { %v4242_v9 = vadd.f32 %v4178_v62, %v3922_v59  ;;  %v4499_v33 = vsub.f32 %v4371_v51, %v4435_v21  ;;  %v4244_v20 = vadd.f32 %v4180_v54, %v3924_v24  ;;  %v4501_v15 = vsub.f32 %v4373_v27, %v4437_v22  ;;  %v5430_v54 = vld [vmem:[%s7872_s0 + $0x25] ss:$0 sm:$0xff] }
 0x2fa   : > { %v4249_v13 = vadd.f32 %v4185_v25, %v3929_v50  ;;  %v4506_v38 = vsub.f32 %v4378_v46, %v4442_v43  ;;  %v4184_v39 = vmul.f32 %v5415_v61, %v6705_v23  ;;  %v4441_v0 = vmul.f32 %v5414_v63, %v6705_v23  ;;  %v5417_v25 = vld [vmem:[%s7873_s1 + $0x23] ss:$0 sm:$0xff]  ;;  %v5437_v43 = vld [vmem:[%s7873_s1 + $0x28] ss:$0 sm:$0xff] }
 0x2fb   : > { %4307 = vst.msk [vmem:[%s6815_s25 + $0xc0] sm:$0xff] %vm4282_vm6, %v4242_v9  ;;  %v4443_v24 = vmul.f32 %v5410_v37, %v6698_v35  ;;  %v4191_v28 = vmul.f32 %v5431_v4, %v6730_v11  ;;  %v5420_v35 = vld [vmem:[%s7872_s0 + $0x21] ss:$0 sm:$0xff] }
 0x2fc   : > { %5271 = vst.msk [vmem:[%s6815_s25 + $0x2c0] sm:$0xff] %vm4282_vm6, %v4499_v33  ;;  %v5421_v9 = vld [vmem:[%s7873_s1 + $0x21] ss:$0 sm:$0xff]  ;;  %v4448_v33 = vmul.f32 %v5430_v54, %v6730_v11  ;;  %v4189_v11 = vmul.f32 %v5417_v25, %v6707_v5 }
 0x2fd   : > { %4309 = vst.msk [vmem:[%s6815_s25 + $0xd0] sm:$0xff] %vm4282_vm6, %v4244_v20 }
 0x2fe   : > { %5273 = vst.msk [vmem:[%s6815_s25 + $0x2d0] sm:$0xff] %vm4282_vm6, %v4501_v15  ;;  %v3325_v42 = vpop.permute.xlu1 %3324  ;;  %v3339_v34 = vpop.permute.xlu0 %3338  ;;  %v4187_v15 = vmul.f32 %v5421_v9, %v6714_v55 }
 0x2ff   : > { %4314 = vst.msk [vmem:[%s6815_s25 + $0xf8] sm:$0xff] %vm4282_vm6, %v4249_v13  ;;  %v3925_v40 = vmul.f32 %v5408_v47, %v3325_v42  ;;  %v4374_v41 = vmul.f32 %v5409_v2, %v3325_v42  ;;  %v3927_v8 = vmul.f32 %v5404_v26, %v3339_v34  ;;  %v4376_v18 = vmul.f32 %v5405_v3, %v3339_v34  ;;  %v3374_v19 = vpop.permute.xlu2 %3373  ;;  %v5416_v47 = vld [vmem:[%s7872_s0 + $0x23] ss:$0 sm:$0xff]  ;;  %v5436_v26 = vld [vmem:[%s7872_s0 + $0x28] ss:$0 sm:$0xff] }
 0x300   : > { %5278 = vst.msk [vmem:[%s6815_s25 + $0x2f8] sm:$0xff] %vm4282_vm6, %v4506_v38  ;;  %v3932_v44 = vmul.f32 %v5424_v17, %v3374_v19  ;;  %v4381_v1 = vmul.f32 %v5425_v52, %v3374_v19  ;;  %v4444_v13 = vmul.f32 %v5420_v35, %v6714_v55  ;;  %v4446_v34 = vmul.f32 %v5416_v47, %v6707_v5  ;;  %v5426_v5 = vld [vmem:[%s7872_s0 + $0x24] ss:$0 sm:$0xff] }
 0x301   : > { %v4245_v31 = vadd.f32 %v4181_v16, %v3925_v40  ;;  %v4502_v12 = vsub.f32 %v4374_v41, %v4438_v7  ;;  %v4247_v58 = vadd.f32 %v4183_v48, %v3927_v8  ;;  %v4504_v30 = vsub.f32 %v4376_v18, %v4440_v29  ;;  %v5423_v29 = vld [vmem:[%s7873_s1 + $0x26] ss:$0 sm:$0xff] }
 0x302   : > { %v4252_v57 = vadd.f32 %v4188_v53, %v3932_v44  ;;  %v4509_v49 = vsub.f32 %v4381_v1, %v4445_v10  ;;  %v4194_v41 = vmul.f32 %v5437_v43, %v6739_v14  ;;  %v5427_v44 = vld [vmem:[%s7873_s1 + $0x24] ss:$0 sm:$0xff]  ;;  %v4451_v1 = vmul.f32 %v5436_v26, %v6739_v14 }
 0x303   : > { %4310 = vst.msk [vmem:[%s6815_s25 + $0xd8] sm:$0xff] %vm4282_vm6, %v4245_v31  ;;  %v4192_v14 = vmul.f32 %v5423_v29, %v6716_v6 }
 0x304   : > { %5274 = vst.msk [vmem:[%s6815_s25 + $0x2d8] sm:$0xff] %vm4282_vm6, %v4502_v12  ;;  %v5422_v12 = vld [vmem:[%s7872_s0 + $0x26] ss:$0 sm:$0xff] }
 0x305   : > { %4312 = vst.msk [vmem:[%s6815_s25 + $0xe8] sm:$0xff] %vm4282_vm6, %v4247_v58 }
 0x306   : > { %5276 = vst.msk [vmem:[%s6815_s25 + $0x2e8] sm:$0xff] %vm4282_vm6, %v4504_v30  ;;  %v3346_v62 = vpop.permute.xlu1 %3345  ;;  %v3360_v21 = vpop.permute.xlu0 %3359  ;;  %v5442_v30 = vld [vmem:[%s7872_s0 + $0x2b] ss:$0 sm:$0xff] }
 0x307   : > { %4317 = vst.msk [vmem:[%s6815_s25 + $0x110] sm:$0xff] %vm4282_vm6, %v4252_v57  ;;  %v3928_v60 = vmul.f32 %v5414_v63, %v3346_v62  ;;  %v4377_v32 = vmul.f32 %v5415_v61, %v3346_v62  ;;  %v3930_v56 = vmul.f32 %v5410_v37, %v3360_v21  ;;  %v4379_v59 = vmul.f32 %v5411_v36, %v3360_v21  ;;  %v3395_v51 = vpop.permute.xlu2 %3394  ;;  %v5443_v36 = vld [vmem:[%s7873_s1 + $0x2b] ss:$0 sm:$0xff]  ;;  %v8019_v63 = vld [vmem:[#allocation5_spill] sm:$0xff] }
 0x308   : > { %5281 = vst.msk [vmem:[%s6815_s25 + $0x310] sm:$0xff] %vm4282_vm6, %v4509_v49  ;;  %v3935_v23 = vmul.f32 %v5430_v54, %v3395_v51  ;;  %v4384_v27 = vmul.f32 %v5431_v4, %v3395_v51  ;;  %v4190_v61 = vmul.f32 %v5427_v44, %v8019_v63  ;;  %v4447_v10 = vmul.f32 %v5426_v5, %v8019_v63 }
 0x309   : > { %v4248_v22 = vadd.f32 %v4184_v39, %v3928_v60  ;;  %v4505_v50 = vsub.f32 %v4377_v32, %v4441_v0  ;;  %v4250_v46 = vadd.f32 %v4186_v45, %v3930_v56  ;;  %v4507_v20 = vsub.f32 %v4379_v59, %v4443_v24  ;;  %v8020_v60 = vld [vmem:[#allocation12_spill] sm:$0xff] }
 0x30a   : > { %v4255_v3 = vadd.f32 %v4191_v28, %v3935_v23  ;;  %v4512_v2 = vsub.f32 %v4384_v27, %v4448_v33  ;;  %v4449_v54 = vmul.f32 %v5422_v12, %v6716_v6  ;;  %v4197_v32 = vmul.f32 %v5443_v36, %v8020_v60  ;;  %v5429_v24 = vld [vmem:[%s7873_s1 + $0x29] ss:$0 sm:$0xff]  ;;  %v5432_v6 = vld [vmem:[%s7872_s0 + $0x27] ss:$0 sm:$0xff] }
 0x30b   : > { %4313 = vst.msk [vmem:[%s6815_s25 + $0xf0] sm:$0xff] %vm4282_vm6, %v4248_v22  ;;  %v5433_v23 = vld [vmem:[%s7873_s1 + $0x27] ss:$0 sm:$0xff]  ;;  %v4454_v27 = vmul.f32 %v5442_v30, %v8020_v60  ;;  %v8022_v33 = vld [vmem:[#allocation8_spill] sm:$0xff] }
 0x30c   : > { %5277 = vst.msk [vmem:[%s6815_s25 + $0x2f0] sm:$0xff] %vm4282_vm6, %v4505_v50  ;;  %v5428_v50 = vld [vmem:[%s7872_s0 + $0x29] ss:$0 sm:$0xff] }
 0x30d   : > { %4315 = vst.msk [vmem:[%s6815_s25 + $0x100] sm:$0xff] %vm4282_vm6, %v4250_v46 }
 0x30e   : > { %5279 = vst.msk [vmem:[%s6815_s25 + $0x300] sm:$0xff] %vm4282_vm6, %v4507_v20  ;;  %v3367_v38 = vpop.permute.xlu1 %3366  ;;  %v3381_v52 = vpop.permute.xlu0 %3380  ;;  %v4193_v20 = vmul.f32 %v5433_v23, %v8022_v33 }
 0x30f   : > { %4320 = vst.msk [vmem:[%s6815_s25 + $0x128] sm:$0xff] %vm4282_vm6, %v4255_v3  ;;  %v3931_v48 = vmul.f32 %v5420_v35, %v3367_v38  ;;  %v4380_v16 = vmul.f32 %v5421_v9, %v3367_v38  ;;  %v3933_v7 = vmul.f32 %v5416_v47, %v3381_v52  ;;  %v4382_v17 = vmul.f32 %v5417_v25, %v3381_v52  ;;  %v3416_v42 = vpop.permute.xlu2 %3415  ;;  %v5449_v25 = vld [vmem:[%s7873_s1 + $0x2e] ss:$0 sm:$0xff]  ;;  %v8021_v35 = vld [vmem:[#allocation3_spill] sm:$0xff] }
 0x310   : > { %5284 = vst.msk [vmem:[%s6815_s25 + $0x328] sm:$0xff] %vm4282_vm6, %v4512_v2  ;;  %v3938_v55 = vmul.f32 %v5436_v26, %v3416_v42  ;;  %v4387_v40 = vmul.f32 %v5437_v43, %v3416_v42  ;;  %v4195_v9 = vmul.f32 %v5429_v24, %v8021_v35  ;;  %v4450_v3 = vmul.f32 %v5432_v6, %v8022_v33  ;;  %v5448_v47 = vld [vmem:[%s7872_s0 + $0x2e] ss:$0 sm:$0xff] }
 0x311   : > { %v4251_v8 = vadd.f32 %v4187_v15, %v3931_v48  ;;  %v4508_v18 = vsub.f32 %v4380_v16, %v4444_v13  ;;  %v4253_v19 = vadd.f32 %v4189_v11, %v3933_v7  ;;  %v4510_v53 = vsub.f32 %v4382_v17, %v4446_v34  ;;  %v8023_v7 = vld [vmem:[#allocation9_spill] sm:$0xff] }
 0x312   : > { %v4258_v31 = vadd.f32 %v4194_v41, %v3938_v55  ;;  %v4515_v58 = vsub.f32 %v4387_v40, %v4451_v1  ;;  %v4452_v52 = vmul.f32 %v5428_v50, %v8021_v35  ;;  %v4200_v17 = vmul.f32 %v5449_v25, %v8023_v7  ;;  %v5435_v40 = vld [vmem:[%s7873_s1 + $0x2c] ss:$0 sm:$0xff]  ;;  %v5438_v41 = vld [vmem:[%s7872_s0 + $0x2a] ss:$0 sm:$0xff]  ;;  %v5455_v1 = vld [vmem:[%s7873_s1 + $0x31] ss:$0 sm:$0xff] }
 0x313   : > { %4316 = vst.msk [vmem:[%s6815_s25 + $0x108] sm:$0xff] %vm4282_vm6, %v4251_v8  ;;  %v5439_v8 = vld [vmem:[%s7873_s1 + $0x2a] ss:$0 sm:$0xff] }
 0x314   : > { %5280 = vst.msk [vmem:[%s6815_s25 + $0x308] sm:$0xff] %vm4282_vm6, %v4508_v18  ;;  %v4457_v18 = vmul.f32 %v5448_v47, %v8023_v7 }
 0x315   : > { %4318 = vst.msk [vmem:[%s6815_s25 + $0x118] sm:$0xff] %vm4282_vm6, %v4253_v19 }
 0x316   : > { %5282 = vst.msk [vmem:[%s6815_s25 + $0x318] sm:$0xff] %vm4282_vm6, %v4510_v53  ;;  %v3388_v57 = vpop.permute.xlu1 %3387  ;;  %v3402_v37 = vpop.permute.xlu0 %3401  ;;  %v8024_v53 = vld [vmem:[#allocation10_spill] sm:$0xff] }
 0x317   : > { %4323 = vst.msk [vmem:[%s6815_s25 + $0x140] sm:$0xff] %vm4282_vm6, %v4258_v31  ;;  %v3934_v49 = vmul.f32 %v5426_v5, %v3388_v57  ;;  %v4383_v4 = vmul.f32 %v5427_v44, %v3388_v57  ;;  %v3936_v45 = vmul.f32 %v5422_v12, %v3402_v37  ;;  %v4385_v39 = vmul.f32 %v5423_v29, %v3402_v37  ;;  %v3437_v0 = vpop.permute.xlu2 %3436  ;;  %v5434_v5 = vld [vmem:[%s7872_s0 + $0x2c] ss:$0 sm:$0xff]  ;;  %v8025_v12 = vld [vmem:[#allocation7_spill] sm:$0xff] }
 0x318   : > { %5287 = vst.msk [vmem:[%s6815_s25 + $0x340] sm:$0xff] %vm4282_vm6, %v4515_v58  ;;  %v3941_v62 = vmul.f32 %v5442_v30, %v3437_v0  ;;  %v4390_v21 = vmul.f32 %v5443_v36, %v3437_v0  ;;  %v4198_v31 = vmul.f32 %v5435_v40, %v8024_v53  ;;  %v4196_v58 = vmul.f32 %v5439_v8, %v8025_v12  ;;  %v8026_v0 = vld [vmem:[#allocation17_spill] sm:$0xff] }
 0x319   : > { %v4254_v56 = vadd.f32 %v4190_v61, %v3934_v49  ;;  %v4511_v59 = vsub.f32 %v4383_v4, %v4447_v10  ;;  %v4256_v51 = vadd.f32 %v4192_v14, %v3936_v45  ;;  %v4513_v28 = vsub.f32 %v4385_v39, %v4449_v54  ;;  %v5454_v14 = vld [vmem:[%s7872_s0 + $0x31] ss:$0 sm:$0xff] }
 0x31a   : > { %v4261_v22 = vadd.f32 %v4197_v32, %v3941_v62  ;;  %v4518_v46 = vsub.f32 %v4390_v21, %v4454_v27  ;;  %v4453_v36 = vmul.f32 %v5438_v41, %v8025_v12  ;;  %v4455_v4 = vmul.f32 %v5434_v5, %v8024_v53  ;;  %v5441_v32 = vld [vmem:[%s7873_s1 + $0x2f] ss:$0 sm:$0xff] }
 0x31b   : > { %4319 = vst.msk [vmem:[%s6815_s25 + $0x120] sm:$0xff] %vm4282_vm6, %v4254_v56  ;;  %v4203_v54 = vmul.f32 %v5455_v1, %v8026_v0  ;;  %v5444_v56 = vld [vmem:[%s7872_s0 + $0x2d] ss:$0 sm:$0xff] }
 0x31c   : > { %5283 = vst.msk [vmem:[%s6815_s25 + $0x320] sm:$0xff] %vm4282_vm6, %v4511_v59  ;;  %v5445_v59 = vld [vmem:[%s7873_s1 + $0x2d] ss:$0 sm:$0xff] }
 0x31d   : > { %4321 = vst.msk [vmem:[%s6815_s25 + $0x130] sm:$0xff] %vm4282_vm6, %v4256_v51  ;;  %v4460_v51 = vmul.f32 %v5454_v14, %v8026_v0 }
 0x31e   : > { %5285 = vst.msk [vmem:[%s6815_s25 + $0x330] sm:$0xff] %vm4282_vm6, %v4513_v28  ;;  %v3409_v2 = vpop.permute.xlu1 %3408  ;;  %v3423_v43 = vpop.permute.xlu0 %3422  ;;  %v5461_v28 = vld [vmem:[%s7873_s1 + $0x34] ss:$0 sm:$0xff] }
 0x31f   : > { %4326 = vst.msk [vmem:[%s6815_s25 + $0x158] sm:$0xff] %vm4282_vm6, %v4261_v22  ;;  %v3937_v11 = vmul.f32 %v5432_v6, %v3409_v2  ;;  %v4386_v15 = vmul.f32 %v5433_v23, %v3409_v2  ;;  %v3939_v13 = vmul.f32 %v5428_v50, %v3423_v43  ;;  %v4388_v26 = vmul.f32 %v5429_v24, %v3423_v43  ;;  %v3458_v38 = vpop.permute.xlu2 %3457  ;;  %v5440_v23 = vld [vmem:[%s7872_s0 + $0x2f] ss:$0 sm:$0xff]  ;;  %v8027_v22 = vld [vmem:[#allocation11_spill] sm:$0xff] }
 0x320   : > { %5290 = vst.msk [vmem:[%s6815_s25 + $0x358] sm:$0xff] %vm4282_vm6, %v4518_v46  ;;  %v3944_v48 = vmul.f32 %v5448_v47, %v3458_v38  ;;  %v4393_v16 = vmul.f32 %v5449_v25, %v3458_v38  ;;  %v4201_v50 = vmul.f32 %v5441_v32, %v8027_v22  ;;  %v8028_v46 = vld [vmem:[#allocation13_spill] sm:$0xff]  ;;  %v8029_v38 = vld [vmem:[#allocation4_spill] sm:$0xff] }
 0x321   : > { %v4257_v42 = vadd.f32 %v4193_v20, %v3937_v11  ;;  %v4514_v34 = vsub.f32 %v4386_v15, %v4450_v3  ;;  %v4259_v55 = vadd.f32 %v4195_v9, %v3939_v13  ;;  %v4516_v19 = vsub.f32 %v4388_v26, %v4452_v52  ;;  %v5460_v9 = vld [vmem:[%s7872_s0 + $0x34] ss:$0 sm:$0xff] }
 0x322   : > { %v4264_v29 = vadd.f32 %v4200_v17, %v3944_v48  ;;  %v4521_v44 = vsub.f32 %v4393_v16, %v4457_v18  ;;  %v4199_v25 = vmul.f32 %v5445_v59, %v8028_v46  ;;  %v4456_v35 = vmul.f32 %v5444_v56, %v8028_v46  ;;  %v5447_v17 = vld [vmem:[%s7873_s1 + $0x32] ss:$0 sm:$0xff] }
 0x323   : > { %4322 = vst.msk [vmem:[%s6815_s25 + $0x138] sm:$0xff] %vm4282_vm6, %v4257_v42  ;;  %v4458_v15 = vmul.f32 %v5440_v23, %v8027_v22  ;;  %v4206_v52 = vmul.f32 %v5461_v28, %v8029_v38  ;;  %v5450_v42 = vld [vmem:[%s7872_s0 + $0x30] ss:$0 sm:$0xff] }
 0x324   : > { %5286 = vst.msk [vmem:[%s6815_s25 + $0x338] sm:$0xff] %vm4282_vm6, %v4514_v34  ;;  %v5451_v34 = vld [vmem:[%s7873_s1 + $0x30] ss:$0 sm:$0xff] }
 0x325   : > { %4324 = vst.msk [vmem:[%s6815_s25 + $0x148] sm:$0xff] %vm4282_vm6, %v4259_v55  ;;  %v4463_v55 = vmul.f32 %v5460_v9, %v8029_v38 }
 0x326   : > { %5288 = vst.msk [vmem:[%s6815_s25 + $0x348] sm:$0xff] %vm4282_vm6, %v4516_v19  ;;  %v3430_v63 = vpop.permute.xlu1 %3429  ;;  %v3444_v61 = vpop.permute.xlu0 %3443  ;;  %v5467_v19 = vld [vmem:[%s7873_s1 + $0x37] ss:$0 sm:$0xff] }
 0x327   : > { %4329 = vst.msk [vmem:[%s6815_s25 + $0x170] sm:$0xff] %vm4282_vm6, %v4264_v29  ;;  %v3940_v10 = vmul.f32 %v5438_v41, %v3430_v63  ;;  %v4389_v30 = vmul.f32 %v5439_v8, %v3430_v63  ;;  %v3942_v57 = vmul.f32 %v5434_v5, %v3444_v61  ;;  %v4391_v37 = vmul.f32 %v5435_v40, %v3444_v61  ;;  %v3479_v49 = vpop.permute.xlu2 %3478  ;;  %v5446_v8 = vld [vmem:[%s7872_s0 + $0x32] ss:$0 sm:$0xff]  ;;  %v8030_v29 = vld [vmem:[#allocation14_spill] sm:$0xff] }
 0x328   : > { %5293 = vst.msk [vmem:[%s6815_s25 + $0x370] sm:$0xff] %vm4282_vm6, %v4521_v44  ;;  %v3947_v45 = vmul.f32 %v5454_v14, %v3479_v49  ;;  %v4396_v39 = vmul.f32 %v5455_v1, %v3479_v49  ;;  %v4204_v5 = vmul.f32 %v5447_v17, %v8030_v29  ;;  %v8031_v44 = vld [vmem:[#allocation15_spill] sm:$0xff]  ;;  %v8032_v49 = vld [vmem:[#allocation22_spill] sm:$0xff] }
 0x329   : > { %v4260_v62 = vadd.f32 %v4196_v58, %v3940_v10  ;;  %v4517_v21 = vsub.f32 %v4389_v30, %v4453_v36  ;;  %v4262_v60 = vadd.f32 %v4198_v31, %v3942_v57  ;;  %v4519_v24 = vsub.f32 %v4391_v37, %v4455_v4  ;;  %v5466_v31 = vld [vmem:[%s7872_s0 + $0x37] ss:$0 sm:$0xff] }
 0x32a   : > { %v4267_v6 = vadd.f32 %v4203_v54, %v3947_v45  ;;  %v4524_v27 = vsub.f32 %v4396_v39, %v4460_v51  ;;  %v4202_v1 = vmul.f32 %v5451_v34, %v8031_v44  ;;  %v4459_v53 = vmul.f32 %v5450_v42, %v8031_v44  ;;  %v5453_v54 = vld [vmem:[%s7873_s1 + $0x35] ss:$0 sm:$0xff] }
 0x32b   : > { %4325 = vst.msk [vmem:[%s6815_s25 + $0x150] sm:$0xff] %vm4282_vm6, %v4260_v62  ;;  %v4461_v30 = vmul.f32 %v5446_v8, %v8030_v29  ;;  %v4209_v4 = vmul.f32 %v5467_v19, %v8032_v49  ;;  %v5456_v62 = vld [vmem:[%s7872_s0 + $0x33] ss:$0 sm:$0xff] }
 0x32c   : > { %5289 = vst.msk [vmem:[%s6815_s25 + $0x350] sm:$0xff] %vm4282_vm6, %v4517_v21  ;;  %v5457_v21 = vld [vmem:[%s7873_s1 + $0x33] ss:$0 sm:$0xff] }
 0x32d   : > { %4327 = vst.msk [vmem:[%s6815_s25 + $0x160] sm:$0xff] %vm4282_vm6, %v4262_v60  ;;  %v4466_v60 = vmul.f32 %v5466_v31, %v8032_v49 }
 0x32e   : > { %5291 = vst.msk [vmem:[%s6815_s25 + $0x360] sm:$0xff] %vm4282_vm6, %v4519_v24  ;;  %v3451_v33 = vpop.permute.xlu1 %3450  ;;  %v3465_v20 = vpop.permute.xlu0 %3464  ;;  %v5473_v24 = vld [vmem:[%s7873_s1 + $0x3a] ss:$0 sm:$0xff] }
 0x32f   : > { %4332 = vst.msk [vmem:[%s6815_s25 + $0x188] sm:$0xff] %vm4282_vm6, %v4267_v6  ;;  %v3943_v3 = vmul.f32 %v5444_v56, %v3451_v33  ;;  %v4392_v47 = vmul.f32 %v5445_v59, %v3451_v33  ;;  %v3945_v2 = vmul.f32 %v5440_v23, %v3465_v20  ;;  %v4394_v43 = vmul.f32 %v5441_v32, %v3465_v20  ;;  %v3500_v11 = vpop.permute.xlu2 %3499  ;;  %v5452_v59 = vld [vmem:[%s7872_s0 + $0x35] ss:$0 sm:$0xff]  ;;  %v8033_v6 = vld [vmem:[#allocation16_spill] sm:$0xff] }
 0x330   : > { %5296 = vst.msk [vmem:[%s6815_s25 + $0x388] sm:$0xff] %vm4282_vm6, %v4524_v27  ;;  %v3950_v13 = vmul.f32 %v5460_v9, %v3500_v11  ;;  %v4399_v26 = vmul.f32 %v5461_v28, %v3500_v11  ;;  %v4207_v23 = vmul.f32 %v5453_v54, %v8033_v6  ;;  %v8034_v27 = vld [vmem:[#allocation18_spill] sm:$0xff]  ;;  %v8035_v11 = vld [vmem:[#allocation25_spill] sm:$0xff] }
 0x331   : > { %v4263_v48 = vadd.f32 %v4199_v25, %v3943_v3  ;;  %v4520_v16 = vsub.f32 %v4392_v47, %v4456_v35  ;;  %v4265_v7 = vadd.f32 %v4201_v50, %v3945_v2  ;;  %v4522_v40 = vsub.f32 %v4394_v43, %v4458_v15  ;;  %v5472_v50 = vld [vmem:[%s7872_s0 + $0x3a] ss:$0 sm:$0xff] }
 0x332   : > { %v4270_v41 = vadd.f32 %v4206_v52, %v3950_v13  ;;  %v4527_v18 = vsub.f32 %v4399_v26, %v4463_v55  ;;  %v4205_v28 = vmul.f32 %v5457_v21, %v8034_v27  ;;  %v4462_v22 = vmul.f32 %v5456_v62, %v8034_v27  ;;  %v5459_v52 = vld [vmem:[%s7873_s1 + $0x38] ss:$0 sm:$0xff] }
 0x333   : > { %4328 = vst.msk [vmem:[%s6815_s25 + $0x168] sm:$0xff] %vm4282_vm6, %v4263_v48  ;;  %v4464_v47 = vmul.f32 %v5452_v59, %v8033_v6  ;;  %v4212_v15 = vmul.f32 %v5473_v24, %v8035_v11  ;;  %v5462_v48 = vld [vmem:[%s7872_s0 + $0x36] ss:$0 sm:$0xff] }
 0x334   : > { %5292 = vst.msk [vmem:[%s6815_s25 + $0x368] sm:$0xff] %vm4282_vm6, %v4520_v16  ;;  %v5463_v16 = vld [vmem:[%s7873_s1 + $0x36] ss:$0 sm:$0xff] }
 0x335   : > { %4330 = vst.msk [vmem:[%s6815_s25 + $0x178] sm:$0xff] %vm4282_vm6, %v4265_v7  ;;  %v4469_v7 = vmul.f32 %v5472_v50, %v8035_v11 }
 0x336   : > { %5294 = vst.msk [vmem:[%s6815_s25 + $0x378] sm:$0xff] %vm4282_vm6, %v4522_v40  ;;  %v3472_v12 = vpop.permute.xlu1 %3471  ;;  %v3486_v58 = vpop.permute.xlu0 %3485  ;;  %v5477_v40 = vld [vmem:[%s7873_s1 + $0x3d] ss:$0 sm:$0xff] }
 0x337   : > { %4335 = vst.msk [vmem:[%s6815_s25 + $0x1a0] sm:$0xff] %vm4282_vm6, %v4270_v41  ;;  %v3946_v36 = vmul.f32 %v5450_v42, %v3472_v12  ;;  %v4395_v14 = vmul.f32 %v5451_v34, %v3472_v12  ;;  %v3948_v63 = vmul.f32 %v5446_v8, %v3486_v58  ;;  %v4397_v61 = vmul.f32 %v5447_v17, %v3486_v58  ;;  %v3521_v10 = vpop.permute.xlu2 %3520  ;;  %v5458_v34 = vld [vmem:[%s7872_s0 + $0x38] ss:$0 sm:$0xff]  ;;  %v8036_v41 = vld [vmem:[#allocation19_spill] sm:$0xff] }
 0x338   : > { %5299 = vst.msk [vmem:[%s6815_s25 + $0x3a0] sm:$0xff] %vm4282_vm6, %v4527_v18  ;;  %v3953_v57 = vmul.f32 %v5466_v31, %v3521_v10  ;;  %v4402_v37 = vmul.f32 %v5467_v19, %v3521_v10  ;;  %v4210_v8 = vmul.f32 %v5459_v52, %v8036_v41  ;;  %v8037_v18 = vld [vmem:[#allocation20_spill] sm:$0xff]  ;;  %v8038_v10 = vld [vmem:[#allocation6_spill] sm:$0xff] }
 0x339   : > { %v4266_v45 = vadd.f32 %v4202_v1, %v3946_v36  ;;  %v4523_v39 = vsub.f32 %v4395_v14, %v4459_v53  ;;  %v4268_v0 = vadd.f32 %v4204_v5, %v3948_v63  ;;  %v4525_v32 = vsub.f32 %v4397_v61, %v4461_v30  ;;  %v5476_v5 = vld [vmem:[%s7872_s0 + $0x3d] ss:$0 sm:$0xff] }
 0x33a   : > { %v4273_v56 = vadd.f32 %v4209_v4, %v3953_v57  ;;  %v4530_v51 = vsub.f32 %v4402_v37, %v4466_v60  ;;  %v4208_v19 = vmul.f32 %v5463_v16, %v8037_v18  ;;  %v4465_v29 = vmul.f32 %v5462_v48, %v8037_v18  ;;  %v5465_v4 = vld [vmem:[%s7873_s1 + $0x3b] ss:$0 sm:$0xff]  ;;  %v5479_v18 = vld [vmem:[%s7873_s1 + $0x3f] ss:$0 sm:$0xff] }
 0x33b   : > { %4331 = vst.msk [vmem:[%s6815_s25 + $0x180] sm:$0xff] %vm4282_vm6, %v4266_v45  ;;  %v4467_v14 = vmul.f32 %v5458_v34, %v8036_v41  ;;  %v4215_v30 = vmul.f32 %v5477_v40, %v8038_v10  ;;  %v5468_v45 = vld [vmem:[%s7872_s0 + $0x39] ss:$0 sm:$0xff] }
 0x33c   : > { %5295 = vst.msk [vmem:[%s6815_s25 + $0x380] sm:$0xff] %vm4282_vm6, %v4523_v39  ;;  %v5469_v39 = vld [vmem:[%s7873_s1 + $0x39] ss:$0 sm:$0xff] }
 0x33d   : > { %4333 = vst.msk [vmem:[%s6815_s25 + $0x190] sm:$0xff] %vm4282_vm6, %v4268_v0  ;;  %v4472_v0 = vmul.f32 %v5476_v5, %v8038_v10  ;;  %v4905_v10 = vld [vmem:[%s6815_s25 + $0x28] sm:$0xff] (%p5561_p4) }
 0x33e   : > { %5297 = vst.msk [vmem:[%s6815_s25 + $0x390] sm:$0xff] %vm4282_vm6, %v4525_v32  ;;  %v3493_v46 = vpop.permute.xlu1 %3492  ;;  %v3507_v25 = vpop.permute.xlu0 %3506  ;;  %v8039_v32 = vld [vmem:[#allocation21_spill] sm:$0xff] }
 0x33f   : > { %4338 = vst.msk [vmem:[%s6815_s25 + $0x1b8] sm:$0xff] %vm4282_vm6, %v4273_v56  ;;  %v3949_v35 = vmul.f32 %v5456_v62, %v3493_v46  ;;  %v4398_v9 = vmul.f32 %v5457_v21, %v3493_v46  ;;  %v3951_v33 = vmul.f32 %v5452_v59, %v3507_v25  ;;  %v4400_v20 = vmul.f32 %v5453_v54, %v3507_v25  ;;  %v3542_v3 = vpop.permute.xlu2 %3541  ;;  %v5464_v21 = vld [vmem:[%s7872_s0 + $0x3b] ss:$0 sm:$0xff]  ;;  %v8040_v59 = vld [vmem:[#allocation23_spill] sm:$0xff] }
 0x340   : > { %5302 = vst.msk [vmem:[%s6815_s25 + $0x3b8] sm:$0xff] %vm4282_vm6, %v4530_v51  ;;  %v3956_v2 = vmul.f32 %v5472_v50, %v3542_v3  ;;  %v4405_v43 = vmul.f32 %v5473_v24, %v3542_v3  ;;  %v4213_v56 = vmul.f32 %v5465_v4, %v8039_v32  ;;  %v4211_v51 = vmul.f32 %v5469_v39, %v8040_v59  ;;  %v5475_v3 = vld [vmem:[%s7873_s1 + $0x3c] ss:$0 sm:$0xff] }
 0x341   : > { %v4269_v13 = vadd.f32 %v4205_v28, %v3949_v35  ;;  %v4526_v26 = vsub.f32 %v4398_v9, %v4462_v22  ;;  %v4271_v38 = vadd.f32 %v4207_v23, %v3951_v33  ;;  %v4528_v17 = vsub.f32 %v4400_v20, %v4464_v47  ;;  %v5471_v33 = vld [vmem:[%s7873_s1 + $0x3e] ss:$0 sm:$0xff]  ;;  %v5474_v20 = vld [vmem:[%s7872_s0 + $0x3c] ss:$0 sm:$0xff]  ;;  %4906 = vst [vmem:[%s7604_s23 + $0x50] sm:$0xff] (%p5561_p4), %v4905_v10  ;;  %v5033_v10 = vld [vmem:[%s6815_s25 + $0x228] sm:$0xff] (%p5561_p4) }
 0x342   : > { %v4276_v42 = vadd.f32 %v4212_v15, %v3956_v2  ;;  %v4533_v55 = vsub.f32 %v4405_v43, %v4469_v7  ;;  %v4468_v24 = vmul.f32 %v5468_v45, %v8040_v59  ;;  %v4470_v46 = vmul.f32 %v5464_v21, %v8039_v32  ;;  %v5470_v2 = vld [vmem:[%s7872_s0 + $0x3e] ss:$0 sm:$0xff]  ;;  %v8041_v43 = vld [vmem:[#allocation24_spill] sm:$0xff]  ;;  %v4931_v32 = vld [vmem:[%s6815_s25 + $0x90] sm:$0xff] (%p5561_p4)  ;;  %5034 = vst [vmem:[%s7604_s23 + $0x450] sm:$0xff] (%p5561_p4), %v5033_v10 }
 0x343   : > { %4334 = vst.msk [vmem:[%s6815_s25 + $0x198] sm:$0xff] %vm4282_vm6, %v4269_v13  ;;  %v4216_v11 = vmul.f32 %v5471_v33, %v8041_v43  ;;  %v8042_v15 = vld [vmem:[#allocation26_spill] sm:$0xff]  ;;  %v4935_v59 = vld [vmem:[%s6815_s25 + $0xa0] sm:$0xff] (%p5561_p4) }
 0x344   : > { %5298 = vst.msk [vmem:[%s6815_s25 + $0x398] sm:$0xff] %vm4282_vm6, %v4526_v26  ;;  %v4214_v13 = vmul.f32 %v5475_v3, %v8042_v15  ;;  %v4471_v26 = vmul.f32 %v5474_v20, %v8042_v15  ;;  %v4975_v15 = vld [vmem:[%s6815_s25 + $0x140] sm:$0xff] (%p5561_p4) }
 0x345   : > { %4336 = vst.msk [vmem:[%s6815_s25 + $0x1a8] sm:$0xff] %vm4282_vm6, %v4271_v38 }
 0x346   : > { %5300 = vst.msk [vmem:[%s6815_s25 + $0x3a8] sm:$0xff] %vm4282_vm6, %v4528_v17  ;;  %v3514_v44 = vpop.permute.xlu1 %3513  ;;  %v3528_v1 = vpop.permute.xlu0 %3527 }
 0x347   : > { %4341 = vst.msk [vmem:[%s6815_s25 + $0x1d0] sm:$0xff] %vm4282_vm6, %v4276_v42  ;;  %v3952_v53 = vmul.f32 %v5462_v48, %v3514_v44  ;;  %v4401_v31 = vmul.f32 %v5463_v16, %v3514_v44  ;;  %v3954_v12 = vmul.f32 %v5458_v34, %v3528_v1  ;;  %v4403_v58 = vmul.f32 %v5459_v52, %v3528_v1  ;;  %v3563_v36 = vpop.permute.xlu2 %3562 }
 0x348   : > { %5305 = vst.msk [vmem:[%s6815_s25 + $0x3d0] sm:$0xff] %vm4282_vm6, %v4533_v55  ;;  %v3959_v63 = vmul.f32 %v5476_v5, %v3563_v36  ;;  %v4408_v61 = vmul.f32 %v5477_v40, %v3563_v36  ;;  %v4473_v42 = vmul.f32 %v5470_v2, %v8041_v43  ;;  %v4897_v36 = vld [vmem:[%s6815_s25 + $0x8] sm:$0xff] (%p5561_p4)  ;;  %v4971_v43 = vld [vmem:[%s6815_s25 + $0x130] sm:$0xff] (%p5561_p4) }
 0x349   : > { %v4272_v57 = vadd.f32 %v4208_v19, %v3952_v53  ;;  %v4529_v37 = vsub.f32 %v4401_v31, %v4465_v29  ;;  %v4274_v49 = vadd.f32 %v4210_v8, %v3954_v12  ;;  %v4531_v54 = vsub.f32 %v4403_v58, %v4467_v14  ;;  %v5478_v8 = vld [vmem:[%s7872_s0 + $0x3f] ss:$0 sm:$0xff]  ;;  %v8043_v29 = vld [vmem:[#allocation27_spill] sm:$0xff]  ;;  %v4899_v14 = vld [vmem:[%s6815_s25 + $0x10] sm:$0xff] (%p5561_p4)  ;;  %4898 = vst [vmem:[%s7604_s23 + $0x10] sm:$0xff] (%p5561_p4), %v4897_v36 }
 0x34a   : > { %v4279_v62 = vadd.f32 %v4215_v30, %v3959_v63  ;;  %v4536_v60 = vsub.f32 %v4408_v61, %v4472_v0  ;;  %v4217_v5 = vmul.f32 %v5479_v18, %v8043_v29  ;;  %v4474_v44 = vmul.f32 %v5478_v8, %v8043_v29  ;;  %v4895_v58 = vld [vmem:[%s6815_s25] sm:$0xff] (%p5561_p4)  ;;  %v4901_v63 = vld [vmem:[%s6815_s25 + $0x18] sm:$0xff] (%p5561_p4)  ;;  %4900 = vst [vmem:[%s7604_s23 + $0x20] sm:$0xff] (%p5561_p4), %v4899_v14  ;;  %v4907_v30 = vld [vmem:[%s6815_s25 + $0x30] sm:$0xff] (%p5561_p4) }
 0x34b   : > { %4337 = vst.msk [vmem:[%s6815_s25 + $0x1b0] sm:$0xff] %vm4282_vm6, %v4272_v57  ;;  %v4903_v61 = vld [vmem:[%s6815_s25 + $0x20] sm:$0xff] (%p5561_p4)  ;;  %v4909_v57 = vld [vmem:[%s6815_s25 + $0x38] sm:$0xff] (%p5561_p4)  ;;  %v4921_v0 = vld [vmem:[%s6815_s25 + $0x68] sm:$0xff] (%p5561_p4) }
 0x34c   : > { %5301 = vst.msk [vmem:[%s6815_s25 + $0x3b0] sm:$0xff] %vm4282_vm6, %v4529_v37  ;;  %v4911_v37 = vld [vmem:[%s6815_s25 + $0x40] sm:$0xff] (%p5561_p4)  ;;  %v5025_v36 = vld [vmem:[%s6815_s25 + $0x208] sm:$0xff] (%p5561_p4)  ;;  %v5027_v14 = vld [vmem:[%s6815_s25 + $0x210] sm:$0xff] (%p5561_p4) }
 0x34d   : > { %4339 = vst.msk [vmem:[%s6815_s25 + $0x1c0] sm:$0xff] %vm4282_vm6, %v4274_v49  ;;  %v4913_v49 = vld [vmem:[%s6815_s25 + $0x48] sm:$0xff] (%p5561_p4) }
 0x34e   : > { %5303 = vst.msk [vmem:[%s6815_s25 + $0x3c0] sm:$0xff] %vm4282_vm6, %v4531_v54  ;;  %v3535_v6 = vpop.permute.xlu1 %3534  ;;  %v3549_v23 = vpop.permute.xlu0 %3548  ;;  %v4923_v54 = vld [vmem:[%s6815_s25 + $0x70] sm:$0xff] (%p5561_p4) }
 0x34f   : > { %4344 = vst.msk [vmem:[%s6815_s25 + $0x1e8] sm:$0xff] %vm4282_vm6, %v4279_v62  ;;  %v3955_v27 = vmul.f32 %v5468_v45, %v3535_v6  ;;  %v4404_v28 = vmul.f32 %v5469_v39, %v3535_v6  ;;  %v3957_v22 = vmul.f32 %v5464_v21, %v3549_v23  ;;  %v4406_v50 = vmul.f32 %v5465_v4, %v3549_v23  ;;  %v4915_v4 = vld [vmem:[%s6815_s25 + $0x50] sm:$0xff] (%p5561_p4)  ;;  %v4917_v45 = vld [vmem:[%s6815_s25 + $0x58] sm:$0xff] (%p5561_p4)  ;;  %v4919_v39 = vld [vmem:[%s6815_s25 + $0x60] sm:$0xff] (%p5561_p4) }
 0x350   : > { %5308 = vst.msk [vmem:[%s6815_s25 + $0x3e8] sm:$0xff] %vm4282_vm6, %v4536_v60  ;;  %v4925_v62 = vld [vmem:[%s6815_s25 + $0x78] sm:$0xff] (%p5561_p4)  ;;  %v4927_v21 = vld [vmem:[%s6815_s25 + $0x80] sm:$0xff] (%p5561_p4)  ;;  %v4929_v60 = vld [vmem:[%s6815_s25 + $0x88] sm:$0xff] (%p5561_p4) }
 0x351   : > { %v4275_v25 = vadd.f32 %v4211_v51, %v3955_v27  ;;  %v4532_v35 = vsub.f32 %v4404_v28, %v4468_v24  ;;  %v4277_v9 = vadd.f32 %v4213_v56, %v3957_v22  ;;  %v4534_v47 = vsub.f32 %v4406_v50, %v4470_v46  ;;  %4896 = vst [vmem:[%s7604_s23] sm:$0xff] (%p5561_p4), %v4895_v58  ;;  %v4933_v56 = vld [vmem:[%s6815_s25 + $0x98] sm:$0xff] (%p5561_p4)  ;;  %v4937_v51 = vld [vmem:[%s6815_s25 + $0xa8] sm:$0xff] (%p5561_p4)  ;;  %v4939_v24 = vld [vmem:[%s6815_s25 + $0xb0] sm:$0xff] (%p5561_p4) }
 0x352   : > { %4902 = vst [vmem:[%s7604_s23 + $0x30] sm:$0xff] (%p5561_p4), %v4901_v63  ;;  %v4941_v6 = vld [vmem:[%s6815_s25 + $0xb8] sm:$0xff] (%p5561_p4)  ;;  %v4943_v23 = vld [vmem:[%s6815_s25 + $0xc0] sm:$0xff] (%p5561_p4)  ;;  %v4945_v27 = vld [vmem:[%s6815_s25 + $0xc8] sm:$0xff] (%p5561_p4) }
 0x353   : > { %4340 = vst.msk [vmem:[%s6815_s25 + $0x1c8] sm:$0xff] %vm4282_vm6, %v4275_v25  ;;  %v4947_v28 = vld [vmem:[%s6815_s25 + $0xd0] sm:$0xff] (%p5561_p4)  ;;  %v4949_v22 = vld [vmem:[%s6815_s25 + $0xd8] sm:$0xff] (%p5561_p4)  ;;  %v4951_v50 = vld [vmem:[%s6815_s25 + $0xe0] sm:$0xff] (%p5561_p4) }
 0x354   : > { %5304 = vst.msk [vmem:[%s6815_s25 + $0x3c8] sm:$0xff] %vm4282_vm6, %v4532_v35  ;;  %v4953_v46 = vld [vmem:[%s6815_s25 + $0xe8] sm:$0xff] (%p5561_p4)  ;;  %v4955_v25 = vld [vmem:[%s6815_s25 + $0xf0] sm:$0xff] (%p5561_p4)  ;;  %v4957_v35 = vld [vmem:[%s6815_s25 + $0xf8] sm:$0xff] (%p5561_p4) }
 0x355   : > { %4342 = vst.msk [vmem:[%s6815_s25 + $0x1d8] sm:$0xff] %vm4282_vm6, %v4277_v9  ;;  %v4959_v9 = vld [vmem:[%s6815_s25 + $0x100] sm:$0xff] (%p5561_p4)  ;;  %v5029_v63 = vld [vmem:[%s6815_s25 + $0x218] sm:$0xff] (%p5561_p4) }
 0x356   : > { %5306 = vst.msk [vmem:[%s6815_s25 + $0x3d8] sm:$0xff] %vm4282_vm6, %v4534_v47  ;;  %v3556_v38 = vpop.permute.xlu1 %3555  ;;  %v3570_v52 = vpop.permute.xlu0 %3569  ;;  %v4967_v47 = vld [vmem:[%s6815_s25 + $0x120] sm:$0xff] (%p5561_p4) }
 0x357   : > { %v3958_v48 = vmul.f32 %v5474_v20, %v3556_v38  ;;  %v4407_v16 = vmul.f32 %v5475_v3, %v3556_v38  ;;  %v3960_v7 = vmul.f32 %v5470_v2, %v3570_v52  ;;  %v4409_v17 = vmul.f32 %v5471_v33, %v3570_v52  ;;  %4904 = vst [vmem:[%s7604_s23 + $0x40] sm:$0xff] (%p5561_p4), %v4903_v61  ;;  %v4961_v33 = vld [vmem:[%s6815_s25 + $0x108] sm:$0xff] (%p5561_p4)  ;;  %v4963_v20 = vld [vmem:[%s6815_s25 + $0x110] sm:$0xff] (%p5561_p4)  ;;  %v4965_v3 = vld [vmem:[%s6815_s25 + $0x118] sm:$0xff] (%p5561_p4) }
 0x358   : > { %4908 = vst [vmem:[%s7604_s23 + $0x60] sm:$0xff] (%p5561_p4), %v4907_v30  ;;  %v4969_v2 = vld [vmem:[%s6815_s25 + $0x128] sm:$0xff] (%p5561_p4)  ;;  %v4981_v38 = vld [vmem:[%s6815_s25 + $0x158] sm:$0xff] (%p5561_p4)  ;;  %v4983_v52 = vld [vmem:[%s6815_s25 + $0x160] sm:$0xff] (%p5561_p4) }
 0x359   : > { %v4278_v34 = vadd.f32 %v4214_v13, %v3958_v48  ;;  %v4535_v55 = vsub.f32 %v4407_v16, %v4471_v26  ;;  %v4280_v40 = vadd.f32 %v4216_v11, %v3960_v7  ;;  %v4537_v41 = vsub.f32 %v4409_v17, %v4473_v42  ;;  %4910 = vst [vmem:[%s7604_s23 + $0x70] sm:$0xff] (%p5561_p4), %v4909_v57  ;;  %v4973_v11 = vld [vmem:[%s6815_s25 + $0x138] sm:$0xff] (%p5561_p4)  ;;  %v4977_v13 = vld [vmem:[%s6815_s25 + $0x148] sm:$0xff] (%p5561_p4)  ;;  %v4979_v26 = vld [vmem:[%s6815_s25 + $0x150] sm:$0xff] (%p5561_p4) }
 0x35a   : > { %4912 = vst [vmem:[%s7604_s23 + $0x80] sm:$0xff] (%p5561_p4), %v4911_v37  ;;  %v4985_v48 = vld [vmem:[%s6815_s25 + $0x168] sm:$0xff] (%p5561_p4)  ;;  %v4987_v16 = vld [vmem:[%s6815_s25 + $0x170] sm:$0xff] (%p5561_p4)  ;;  %v4989_v7 = vld [vmem:[%s6815_s25 + $0x178] sm:$0xff] (%p5561_p4) }
 0x35b   : > { %4343 = vst.msk [vmem:[%s6815_s25 + $0x1e0] sm:$0xff] %vm4282_vm6, %v4278_v34  ;;  %v4991_v17 = vld [vmem:[%s6815_s25 + $0x180] sm:$0xff] (%p5561_p4)  ;;  %v4993_v42 = vld [vmem:[%s6815_s25 + $0x188] sm:$0xff] (%p5561_p4)  ;;  %v4995_v34 = vld [vmem:[%s6815_s25 + $0x190] sm:$0xff] (%p5561_p4) }
 0x35c   : > { %5307 = vst.msk [vmem:[%s6815_s25 + $0x3e0] sm:$0xff] %vm4282_vm6, %v4535_v55  ;;  %v4997_v55 = vld [vmem:[%s6815_s25 + $0x198] sm:$0xff] (%p5561_p4)  ;;  %v5009_v29 = vld [vmem:[%s6815_s25 + $0x1c8] sm:$0xff] (%p5561_p4)  ;;  %v5023_v58 = vld [vmem:[%s6815_s25 + $0x200] sm:$0xff] (%p5561_p4) }
 0x35d   : > { %4345 = vst.msk [vmem:[%s6815_s25 + $0x1f0] sm:$0xff] %vm4282_vm6, %v4280_v40  ;;  %v4999_v40 = vld [vmem:[%s6815_s25 + $0x1a0] sm:$0xff] (%p5561_p4)  ;;  %v5035_v30 = vld [vmem:[%s6815_s25 + $0x230] sm:$0xff] (%p5561_p4)  ;;  %v5037_v57 = vld [vmem:[%s6815_s25 + $0x238] sm:$0xff] (%p5561_p4) }
 0x35e   : > { %5309 = vst.msk [vmem:[%s6815_s25 + $0x3f0] sm:$0xff] %vm4282_vm6, %v4537_v41  ;;  %v3577_v19 = vpop.permute.xlu1 %3576  ;;  %v5001_v41 = vld [vmem:[%s6815_s25 + $0x1a8] sm:$0xff] (%p5561_p4)  ;;  %v5031_v61 = vld [vmem:[%s6815_s25 + $0x220] sm:$0xff] (%p5561_p4) }
 0x35f   : > { %v3961_v1 = vmul.f32 %v5478_v8, %v3577_v19  ;;  %v4410_v53 = vmul.f32 %v5479_v18, %v3577_v19  ;;  %4914 = vst [vmem:[%s7604_s23 + $0x90] sm:$0xff] (%p5561_p4), %v4913_v49  ;;  %v5003_v8 = vld [vmem:[%s6815_s25 + $0x1b0] sm:$0xff] (%p5561_p4)  ;;  %v5005_v18 = vld [vmem:[%s6815_s25 + $0x1b8] sm:$0xff] (%p5561_p4)  ;;  %v5007_v19 = vld [vmem:[%s6815_s25 + $0x1c0] sm:$0xff] (%p5561_p4) }
 0x360   : > { %4610 = sbr.rel (!%p5561_p4) target bundleno = 983 (0x3d7), region = 36  ;;  %4916 = vst [vmem:[%s7604_s23 + $0xa0] sm:$0xff] (%p5561_p4), %v4915_v4  ;;  %v5039_v37 = vld [vmem:[%s6815_s25 + $0x240] sm:$0xff] (%p5561_p4)  ;;  %v5041_v49 = vld [vmem:[%s6815_s25 + $0x248] sm:$0xff] (%p5561_p4)  ;;  %v5043_v4 = vld [vmem:[%s6815_s25 + $0x250] sm:$0xff] (%p5561_p4) }
 0x361   : > { %v4281_v31 = vadd.f32 %v4217_v5, %v3961_v1  ;;  %v4538_v12 = vsub.f32 %v4410_v53, %v4474_v44  ;;  %4918 = vst [vmem:[%s7604_s23 + $0xb0] sm:$0xff] (%p5561_p4), %v4917_v45  ;;  %v5011_v5 = vld [vmem:[%s6815_s25 + $0x1d0] sm:$0xff] (%p5561_p4)  ;;  %v5013_v44 = vld [vmem:[%s6815_s25 + $0x1d8] sm:$0xff] (%p5561_p4)  ;;  %v5017_v53 = vld [vmem:[%s6815_s25 + $0x1e8] sm:$0xff] (%p5561_p4) }
 0x362   : > { %4920 = vst [vmem:[%s7604_s23 + $0xc0] sm:$0xff] (%p5561_p4), %v4919_v39  ;;  %v5015_v1 = vld [vmem:[%s6815_s25 + $0x1e0] sm:$0xff] (%p5561_p4)  ;;  %v5045_v45 = vld [vmem:[%s6815_s25 + $0x258] sm:$0xff] (%p5561_p4) }
 0x363   : > { %4346 = vst.msk [vmem:[%s6815_s25 + $0x1f8] sm:$0xff] %vm4282_vm6, %v4281_v31  ;;  %v5047_v39 = vld [vmem:[%s6815_s25 + $0x260] sm:$0xff] (%p5561_p4) }
 0x364   : > { %5310 = vst.msk [vmem:[%s6815_s25 + $0x3f8] sm:$0xff] %vm4282_vm6, %v4538_v12  ;;  %v5019_v31 = vld [vmem:[%s6815_s25 + $0x1f0] sm:$0xff] (%p5561_p4) }
 0x365   : > { %4922 = vst [vmem:[%s7604_s23 + $0xd0] sm:$0xff] %v4921_v0  ;;  %v5049_v0 = vld [vmem:[%s6815_s25 + $0x268] sm:$0xff] }
 0x366   : > { %4924 = vst [vmem:[%s7604_s23 + $0xe0] sm:$0xff] %v4923_v54  ;;  %v5051_v54 = vld [vmem:[%s6815_s25 + $0x270] sm:$0xff] }
 0x367   : > { %4926 = vst [vmem:[%s7604_s23 + $0xf0] sm:$0xff] %v4925_v62  ;;  %v5053_v62 = vld [vmem:[%s6815_s25 + $0x278] sm:$0xff] }
 0x368   : > { %4928 = vst [vmem:[%s7604_s23 + $0x100] sm:$0xff] %v4927_v21  ;;  %v5055_v21 = vld [vmem:[%s6815_s25 + $0x280] sm:$0xff] }
 0x369   : > { %4930 = vst [vmem:[%s7604_s23 + $0x110] sm:$0xff] %v4929_v60  ;;  %v5057_v60 = vld [vmem:[%s6815_s25 + $0x288] sm:$0xff] }
 0x36a   : > { %4932 = vst [vmem:[%s7604_s23 + $0x120] sm:$0xff] %v4931_v32  ;;  %v5021_v12 = vld [vmem:[%s6815_s25 + $0x1f8] sm:$0xff]  ;;  %v5059_v32 = vld [vmem:[%s6815_s25 + $0x290] sm:$0xff] }
 0x36b   : > { %4934 = vst [vmem:[%s7604_s23 + $0x130] sm:$0xff] %v4933_v56  ;;  %v5061_v56 = vld [vmem:[%s6815_s25 + $0x298] sm:$0xff] }
 0x36c   : > { %4936 = vst [vmem:[%s7604_s23 + $0x140] sm:$0xff] %v4935_v59  ;;  %v5063_v59 = vld [vmem:[%s6815_s25 + $0x2a0] sm:$0xff] }
 0x36d   : > { %4938 = vst [vmem:[%s7604_s23 + $0x150] sm:$0xff] %v4937_v51  ;;  %v5065_v51 = vld [vmem:[%s6815_s25 + $0x2a8] sm:$0xff] }
 0x36e   : > { %4940 = vst [vmem:[%s7604_s23 + $0x160] sm:$0xff] %v4939_v24  ;;  %v5067_v24 = vld [vmem:[%s6815_s25 + $0x2b0] sm:$0xff] }
 0x36f   : > { %4942 = vst [vmem:[%s7604_s23 + $0x170] sm:$0xff] %v4941_v6  ;;  %v5069_v6 = vld [vmem:[%s6815_s25 + $0x2b8] sm:$0xff] }
 0x370   : > { %4944 = vst [vmem:[%s7604_s23 + $0x180] sm:$0xff] %v4943_v23  ;;  %v5071_v23 = vld [vmem:[%s6815_s25 + $0x2c0] sm:$0xff] }
 0x371   : > { %4946 = vst [vmem:[%s7604_s23 + $0x190] sm:$0xff] %v4945_v27  ;;  %v5073_v27 = vld [vmem:[%s6815_s25 + $0x2c8] sm:$0xff] }
 0x372   : > { %4948 = vst [vmem:[%s7604_s23 + $0x1a0] sm:$0xff] %v4947_v28  ;;  %v5075_v28 = vld [vmem:[%s6815_s25 + $0x2d0] sm:$0xff] }
 0x373   : > { %4950 = vst [vmem:[%s7604_s23 + $0x1b0] sm:$0xff] %v4949_v22  ;;  %v5077_v22 = vld [vmem:[%s6815_s25 + $0x2d8] sm:$0xff] }
 0x374   : > { %4952 = vst [vmem:[%s7604_s23 + $0x1c0] sm:$0xff] %v4951_v50  ;;  %v5079_v50 = vld [vmem:[%s6815_s25 + $0x2e0] sm:$0xff] }
 0x375   : > { %4954 = vst [vmem:[%s7604_s23 + $0x1d0] sm:$0xff] %v4953_v46  ;;  %v5081_v46 = vld [vmem:[%s6815_s25 + $0x2e8] sm:$0xff] }
 0x376   : > { %4956 = vst [vmem:[%s7604_s23 + $0x1e0] sm:$0xff] %v4955_v25  ;;  %v5083_v25 = vld [vmem:[%s6815_s25 + $0x2f0] sm:$0xff] }
 0x377   : > { %4958 = vst [vmem:[%s7604_s23 + $0x1f0] sm:$0xff] %v4957_v35  ;;  %v5085_v35 = vld [vmem:[%s6815_s25 + $0x2f8] sm:$0xff] }
 0x378   : > { %4960 = vst [vmem:[%s7604_s23 + $0x200] sm:$0xff] %v4959_v9  ;;  %v5087_v9 = vld [vmem:[%s6815_s25 + $0x300] sm:$0xff] }
 0x379   : > { %4962 = vst [vmem:[%s7604_s23 + $0x210] sm:$0xff] %v4961_v33  ;;  %v5089_v33 = vld [vmem:[%s6815_s25 + $0x308] sm:$0xff] }
 0x37a   : > { %4964 = vst [vmem:[%s7604_s23 + $0x220] sm:$0xff] %v4963_v20  ;;  %v5091_v20 = vld [vmem:[%s6815_s25 + $0x310] sm:$0xff] }
 0x37b   : > { %4966 = vst [vmem:[%s7604_s23 + $0x230] sm:$0xff] %v4965_v3  ;;  %v5093_v3 = vld [vmem:[%s6815_s25 + $0x318] sm:$0xff] }
 0x37c   : > { %4968 = vst [vmem:[%s7604_s23 + $0x240] sm:$0xff] %v4967_v47  ;;  %v5095_v47 = vld [vmem:[%s6815_s25 + $0x320] sm:$0xff] }
 0x37d   : > { %4970 = vst [vmem:[%s7604_s23 + $0x250] sm:$0xff] %v4969_v2  ;;  %v5097_v2 = vld [vmem:[%s6815_s25 + $0x328] sm:$0xff] }
 0x37e   : > { %4972 = vst [vmem:[%s7604_s23 + $0x260] sm:$0xff] %v4971_v43  ;;  %v5099_v43 = vld [vmem:[%s6815_s25 + $0x330] sm:$0xff] }
 0x37f   : > { %4974 = vst [vmem:[%s7604_s23 + $0x270] sm:$0xff] %v4973_v11  ;;  %v5101_v11 = vld [vmem:[%s6815_s25 + $0x338] sm:$0xff] }
 0x380   : > { %4976 = vst [vmem:[%s7604_s23 + $0x280] sm:$0xff] %v4975_v15  ;;  %v5103_v15 = vld [vmem:[%s6815_s25 + $0x340] sm:$0xff] }
 0x381   : > { %4978 = vst [vmem:[%s7604_s23 + $0x290] sm:$0xff] %v4977_v13  ;;  %v5105_v13 = vld [vmem:[%s6815_s25 + $0x348] sm:$0xff] }
 0x382   : > { %4980 = vst [vmem:[%s7604_s23 + $0x2a0] sm:$0xff] %v4979_v26  ;;  %v5107_v26 = vld [vmem:[%s6815_s25 + $0x350] sm:$0xff] }
 0x383   : > { %4982 = vst [vmem:[%s7604_s23 + $0x2b0] sm:$0xff] %v4981_v38  ;;  %v5109_v38 = vld [vmem:[%s6815_s25 + $0x358] sm:$0xff] }
 0x384   : > { %4984 = vst [vmem:[%s7604_s23 + $0x2c0] sm:$0xff] %v4983_v52  ;;  %v5111_v52 = vld [vmem:[%s6815_s25 + $0x360] sm:$0xff] }
 0x385   : > { %4986 = vst [vmem:[%s7604_s23 + $0x2d0] sm:$0xff] %v4985_v48  ;;  %v5113_v48 = vld [vmem:[%s6815_s25 + $0x368] sm:$0xff] }
 0x386   : > { %4988 = vst [vmem:[%s7604_s23 + $0x2e0] sm:$0xff] %v4987_v16  ;;  %v5115_v16 = vld [vmem:[%s6815_s25 + $0x370] sm:$0xff] }
 0x387   : > { %4990 = vst [vmem:[%s7604_s23 + $0x2f0] sm:$0xff] %v4989_v7  ;;  %v5117_v7 = vld [vmem:[%s6815_s25 + $0x378] sm:$0xff] }
 0x388   : > { %4992 = vst [vmem:[%s7604_s23 + $0x300] sm:$0xff] %v4991_v17  ;;  %v5119_v17 = vld [vmem:[%s6815_s25 + $0x380] sm:$0xff] }
 0x389   : > { %4994 = vst [vmem:[%s7604_s23 + $0x310] sm:$0xff] %v4993_v42  ;;  %v5121_v42 = vld [vmem:[%s6815_s25 + $0x388] sm:$0xff] }
 0x38a   : > { %4996 = vst [vmem:[%s7604_s23 + $0x320] sm:$0xff] %v4995_v34  ;;  %v5123_v34 = vld [vmem:[%s6815_s25 + $0x390] sm:$0xff] }
 0x38b   : > { %4998 = vst [vmem:[%s7604_s23 + $0x330] sm:$0xff] %v4997_v55  ;;  %v5125_v55 = vld [vmem:[%s6815_s25 + $0x398] sm:$0xff] }
 0x38c   : > { %5000 = vst [vmem:[%s7604_s23 + $0x340] sm:$0xff] %v4999_v40  ;;  %v5127_v40 = vld [vmem:[%s6815_s25 + $0x3a0] sm:$0xff] }
 0x38d   : > { %5002 = vst [vmem:[%s7604_s23 + $0x350] sm:$0xff] %v5001_v41  ;;  %v5129_v41 = vld [vmem:[%s6815_s25 + $0x3a8] sm:$0xff] }
 0x38e   : > { %5004 = vst [vmem:[%s7604_s23 + $0x360] sm:$0xff] %v5003_v8  ;;  %v5131_v8 = vld [vmem:[%s6815_s25 + $0x3b0] sm:$0xff] }
 0x38f   : > { %5006 = vst [vmem:[%s7604_s23 + $0x370] sm:$0xff] %v5005_v18  ;;  %v5133_v18 = vld [vmem:[%s6815_s25 + $0x3b8] sm:$0xff] }
 0x390   : > { %5008 = vst [vmem:[%s7604_s23 + $0x380] sm:$0xff] %v5007_v19  ;;  %v5135_v19 = vld [vmem:[%s6815_s25 + $0x3c0] sm:$0xff] }
 0x391   : > { %5010 = vst [vmem:[%s7604_s23 + $0x390] sm:$0xff] %v5009_v29  ;;  %v5137_v29 = vld [vmem:[%s6815_s25 + $0x3c8] sm:$0xff] }
 0x392   : > { %5012 = vst [vmem:[%s7604_s23 + $0x3a0] sm:$0xff] %v5011_v5  ;;  %v5139_v5 = vld [vmem:[%s6815_s25 + $0x3d0] sm:$0xff] }
 0x393   : > { %5014 = vst [vmem:[%s7604_s23 + $0x3b0] sm:$0xff] %v5013_v44  ;;  %v5141_v44 = vld [vmem:[%s6815_s25 + $0x3d8] sm:$0xff] }
 0x394   : > { %5016 = vst [vmem:[%s7604_s23 + $0x3c0] sm:$0xff] %v5015_v1  ;;  %v5143_v1 = vld [vmem:[%s6815_s25 + $0x3e0] sm:$0xff] }
 0x395   : > { %5018 = vst [vmem:[%s7604_s23 + $0x3d0] sm:$0xff] %v5017_v53  ;;  %v5145_v53 = vld [vmem:[%s6815_s25 + $0x3e8] sm:$0xff] }
 0x396   : > { %5020 = vst [vmem:[%s7604_s23 + $0x3e0] sm:$0xff] %v5019_v31  ;;  %v5147_v31 = vld [vmem:[%s6815_s25 + $0x3f0] sm:$0xff] }
 0x397   : > { %5022 = vst [vmem:[%s7604_s23 + $0x3f0] sm:$0xff] %v5021_v12  ;;  %v5149_v12 = vld [vmem:[%s6815_s25 + $0x3f8] sm:$0xff] }
 0x398   : > { %5024 = vst [vmem:[%s7604_s23 + $0x400] sm:$0xff] %v5023_v58 }
 0x399   : > { %5026 = vst [vmem:[%s7604_s23 + $0x410] sm:$0xff] %v5025_v36 }
 0x39a   : > { %5028 = vst [vmem:[%s7604_s23 + $0x420] sm:$0xff] %v5027_v14 }
 0x39b   : > { %5030 = vst [vmem:[%s7604_s23 + $0x430] sm:$0xff] %v5029_v63 }
 0x39c   : > { %5032 = vst [vmem:[%s7604_s23 + $0x440] sm:$0xff] %v5031_v61 }
 0x39d   : > { %5036 = vst [vmem:[%s7604_s23 + $0x460] sm:$0xff] %v5035_v30 }
 0x39e   : > { %5038 = vst [vmem:[%s7604_s23 + $0x470] sm:$0xff] %v5037_v57 }
 0x39f   : > { %5040 = vst [vmem:[%s7604_s23 + $0x480] sm:$0xff] %v5039_v37 }
 0x3a0   : > { %5042 = vst [vmem:[%s7604_s23 + $0x490] sm:$0xff] %v5041_v49 }
 0x3a1   : > { %5044 = vst [vmem:[%s7604_s23 + $0x4a0] sm:$0xff] %v5043_v4 }
 0x3a2   : > { %5046 = vst [vmem:[%s7604_s23 + $0x4b0] sm:$0xff] %v5045_v45 }
 0x3a3   : > { %5048 = vst [vmem:[%s7604_s23 + $0x4c0] sm:$0xff] %v5047_v39 }
 0x3a4   : > { %5050 = vst [vmem:[%s7604_s23 + $0x4d0] sm:$0xff] %v5049_v0 }
 0x3a5   : > { %5052 = vst [vmem:[%s7604_s23 + $0x4e0] sm:$0xff] %v5051_v54 }
 0x3a6   : > { %5054 = vst [vmem:[%s7604_s23 + $0x4f0] sm:$0xff] %v5053_v62 }
 0x3a7   : > { %5056 = vst [vmem:[%s7604_s23 + $0x500] sm:$0xff] %v5055_v21 }
 0x3a8   : > { %5058 = vst [vmem:[%s7604_s23 + $0x510] sm:$0xff] %v5057_v60 }
 0x3a9   : > { %5060 = vst [vmem:[%s7604_s23 + $0x520] sm:$0xff] %v5059_v32 }
 0x3aa   : > { %5062 = vst [vmem:[%s7604_s23 + $0x530] sm:$0xff] %v5061_v56 }
 0x3ab   : > { %5064 = vst [vmem:[%s7604_s23 + $0x540] sm:$0xff] %v5063_v59 }
 0x3ac   : > { %5066 = vst [vmem:[%s7604_s23 + $0x550] sm:$0xff] %v5065_v51 }
 0x3ad   : > { %5068 = vst [vmem:[%s7604_s23 + $0x560] sm:$0xff] %v5067_v24 }
 0x3ae   : > { %5070 = vst [vmem:[%s7604_s23 + $0x570] sm:$0xff] %v5069_v6 }
 0x3af   : > { %5072 = vst [vmem:[%s7604_s23 + $0x580] sm:$0xff] %v5071_v23 }
 0x3b0   : > { %5074 = vst [vmem:[%s7604_s23 + $0x590] sm:$0xff] %v5073_v27 }
 0x3b1   : > { %5076 = vst [vmem:[%s7604_s23 + $0x5a0] sm:$0xff] %v5075_v28 }
 0x3b2   : > { %5078 = vst [vmem:[%s7604_s23 + $0x5b0] sm:$0xff] %v5077_v22 }
 0x3b3   : > { %5080 = vst [vmem:[%s7604_s23 + $0x5c0] sm:$0xff] %v5079_v50 }
 0x3b4   : > { %5082 = vst [vmem:[%s7604_s23 + $0x5d0] sm:$0xff] %v5081_v46 }
 0x3b5   : > { %5084 = vst [vmem:[%s7604_s23 + $0x5e0] sm:$0xff] %v5083_v25 }
 0x3b6   : > { %5086 = vst [vmem:[%s7604_s23 + $0x5f0] sm:$0xff] %v5085_v35 }
 0x3b7   : > { %5088 = vst [vmem:[%s7604_s23 + $0x600] sm:$0xff] %v5087_v9 }
 0x3b8   : > { %5090 = vst [vmem:[%s7604_s23 + $0x610] sm:$0xff] %v5089_v33 }
 0x3b9   : > { %5092 = vst [vmem:[%s7604_s23 + $0x620] sm:$0xff] %v5091_v20 }
 0x3ba   : > { %5094 = vst [vmem:[%s7604_s23 + $0x630] sm:$0xff] %v5093_v3 }
 0x3bb   : > { %5096 = vst [vmem:[%s7604_s23 + $0x640] sm:$0xff] %v5095_v47 }
 0x3bc   : > { %5098 = vst [vmem:[%s7604_s23 + $0x650] sm:$0xff] %v5097_v2 }
 0x3bd   : > { %5100 = vst [vmem:[%s7604_s23 + $0x660] sm:$0xff] %v5099_v43 }
 0x3be   : > { %5102 = vst [vmem:[%s7604_s23 + $0x670] sm:$0xff] %v5101_v11 }
 0x3bf   : > { %5104 = vst [vmem:[%s7604_s23 + $0x680] sm:$0xff] %v5103_v15 }
 0x3c0   : > { %5106 = vst [vmem:[%s7604_s23 + $0x690] sm:$0xff] %v5105_v13 }
 0x3c1   : > { %5108 = vst [vmem:[%s7604_s23 + $0x6a0] sm:$0xff] %v5107_v26 }
 0x3c2   : > { %5110 = vst [vmem:[%s7604_s23 + $0x6b0] sm:$0xff] %v5109_v38 }
 0x3c3   : > { %5112 = vst [vmem:[%s7604_s23 + $0x6c0] sm:$0xff] %v5111_v52 }
 0x3c4   : > { %5114 = vst [vmem:[%s7604_s23 + $0x6d0] sm:$0xff] %v5113_v48 }
 0x3c5   : > { %5116 = vst [vmem:[%s7604_s23 + $0x6e0] sm:$0xff] %v5115_v16 }
 0x3c6   : > { %5118 = vst [vmem:[%s7604_s23 + $0x6f0] sm:$0xff] %v5117_v7 }
 0x3c7   : > { %5120 = vst [vmem:[%s7604_s23 + $0x700] sm:$0xff] %v5119_v17 }
 0x3c8   : > { %5122 = vst [vmem:[%s7604_s23 + $0x710] sm:$0xff] %v5121_v42 }
 0x3c9   : > { %5124 = vst [vmem:[%s7604_s23 + $0x720] sm:$0xff] %v5123_v34 }
 0x3ca   : > { %5126 = vst [vmem:[%s7604_s23 + $0x730] sm:$0xff] %v5125_v55 }
 0x3cb   : > { %5128 = vst [vmem:[%s7604_s23 + $0x740] sm:$0xff] %v5127_v40 }
 0x3cc   : > { %5130 = vst [vmem:[%s7604_s23 + $0x750] sm:$0xff] %v5129_v41 }
 0x3cd   : > { %5132 = vst [vmem:[%s7604_s23 + $0x760] sm:$0xff] %v5131_v8 }
 0x3ce   : > { %5134 = vst [vmem:[%s7604_s23 + $0x770] sm:$0xff] %v5133_v18 }
 0x3cf   : > { %5136 = vst [vmem:[%s7604_s23 + $0x780] sm:$0xff] %v5135_v19 }
 0x3d0   : > { %5138 = vst [vmem:[%s7604_s23 + $0x790] sm:$0xff] %v5137_v29 }
 0x3d1   : > { %5140 = vst [vmem:[%s7604_s23 + $0x7a0] sm:$0xff] %v5139_v5 }
 0x3d2   : > { %5142 = vst [vmem:[%s7604_s23 + $0x7b0] sm:$0xff] %v5141_v44 }
 0x3d3   : > { %5144 = vst [vmem:[%s7604_s23 + $0x7c0] sm:$0xff] %v5143_v1 }
 0x3d4   : > { %5146 = vst [vmem:[%s7604_s23 + $0x7d0] sm:$0xff] %v5145_v53 }
 0x3d5   : > { %5148 = vst [vmem:[%s7604_s23 + $0x7e0] sm:$0xff] %v5147_v31 }
 0x3d6   : > { %5150 = vst [vmem:[%s7604_s23 + $0x7f0] sm:$0xff] %v5149_v12 }
 0x3d7 PF: > { %p10_p7 = scmp.ge.s32.totalorder %s5548_s16, 4   ;;  %s8044_s12 = smov %s5498_s13 }
 0x3d8   : > { %s8045_s13 = smov %s5559_s19  ;;  %s8046_s14 = smov %s5548_s16 }
 0x3d9   :  { %12 = sbr.rel (!%p10_p7) target bundleno = 2 (0x2), region = 98 }

</bundles_post_ra>
